<compile_context>
chip_gen: v6e
topology: v6e:2x2x1
jax: 0.10.0
libtpu: 0.0.40
codegen_flags: <defaults>
</compile_context>

<pallas_src>
import functools

import jax
import jax.numpy as jnp
from jax import lax
from jax.experimental import pallas as pl
from jax.experimental.pallas import tpu as pltpu


PAD_C = 128                 # lane-dense padded class dimension for both heads
NEG = -1e9                  # pad-bias: exp(NEG - m) == 0 in f32 -> exact softmax
VMEM_LIMIT = 32 * 1024 * 1024


# ------------------------- encoder: fused conv3x3+ReLU -----------------------

def _conv_relu_kernel(x_ref, w_ref, b_ref, o_ref, *, th, w):
    """In-kernel im2col: 9 shifted accumulating matmuls on a resident padded image.

    x_ref : (1, H+2, W+2, C_in) bf16, resident across the row-tile grid axis.
    w_ref : (9, C_in, CF) bf16 (one (C_in, CF) slice per 3x3 tap).
    b_ref : (1, CF) f32.
    o_ref : (1, th*w, CF) bf16 output rows for this tile.
    """
    cf = o_ref.shape[-1]
    r0 = pl.program_id(1) * th
    acc = jnp.zeros((th * w, cf), jnp.float32)
    for dh in range(3):
        slab_rows = x_ref[0, pl.ds(r0 + dh, th)]             # (th, w+2, C_in) bf16
        for dw in range(3):
            slab = slab_rows[:, dw:dw + w, :]                 # (th, w, C_in)
            acc = acc + jnp.dot(slab.reshape(th * w, slab.shape[-1]),
                                w_ref[dh * 3 + dw],
                                preferred_element_type=jnp.float32)
    o_ref[0] = jnp.maximum(acc + b_ref[...], 0.0).astype(o_ref.dtype)


def conv3x3_relu(x_pad, w_stack, b_mat, *, h, w, block_rows=512):
    """x_pad (N, H+2, W+2, C_in) bf16 -> feature rows (N, H*W, CF) bf16."""
    n, _, _, c_in = x_pad.shape
    cf = w_stack.shape[-1]
    th = max(1, min(h, block_rows // max(w, 1)))
    while h % th:                                             # th must divide H
        th -= 1
    tm = th * w
    grid = (n, h // th)
    return pl.pallas_call(
        functools.partial(_conv_relu_kernel, th=th, w=w),
        out_shape=jax.ShapeDtypeStruct((n, h * w, cf), jnp.bfloat16),
        grid_spec=pltpu.PrefetchScalarGridSpec(
            num_scalar_prefetch=0,
            grid=grid,
            in_specs=[
                # whole padded image, resident across the row-tile axis (1 DMA / image)
                pl.BlockSpec((1, h + 2, w + 2, c_in), lambda i, t: (i, 0, 0, 0)),
                pl.BlockSpec((9, c_in, cf), lambda i, t: (0, 0, 0)),
                pl.BlockSpec((1, cf), lambda i, t: (0, 0)),
            ],
            out_specs=pl.BlockSpec((1, tm, cf), lambda i, t: (i, t, 0)),
        ),
        compiler_params=pltpu.CompilerParams(
            dimension_semantics=("parallel", "arbitrary"),
            vmem_limit_bytes=VMEM_LIMIT),
    )(x_pad, w_stack, b_mat)


# ---------------------- segmentation head (1x1 conv + CE) --------------------

def _seg_head_kernel_loss(f_ref, w_ref, b_ref, lab_ref, logit_ref, loss_ref,
                          *, hw, n_cls):
    feats = f_ref[0]                                          # (tm, CF) bf16
    logits = jnp.dot(feats, w_ref[...],
                     preferred_element_type=jnp.float32) + b_ref[...]   # (tm, 128)
    # store only the real class columns (review item 2/10): tiny writeback.
    logit_ref[0] = logits[:, :n_cls]

    @pl.when(pl.program_id(1) == 0)
    def _():
        loss_ref[...] = jnp.zeros_like(loss_ref)

    tm, cp = logits.shape
    labels = lab_ref[0]                                       # (tm, 1) int32
    col = lax.broadcasted_iota(jnp.int32, (tm, cp), 1)
    onehot = col == labels
    m = jnp.max(logits, axis=-1, keepdims=True)
    lse = m + jnp.log(jnp.sum(jnp.exp(logits - m), axis=-1, keepdims=True))
    picked = jnp.sum(jnp.where(onehot, logits, 0.0), axis=-1, keepdims=True)
    # Rows past HW (only when tm does not divide HW) hold unspecified data; the
    # where() selects 0.0 for them, which keeps the forward value exact.
    row = pl.program_id(1) * tm + lax.broadcasted_iota(jnp.int32, (tm, 1), 0)
    contrib = jnp.where(row < hw, lse - picked, 0.0)
    loss_ref[...] = loss_ref[...] + jnp.sum(contrib)


def _seg_head_kernel_no_loss(f_ref, w_ref, b_ref, logit_ref, *, n_cls):
    feats = f_ref[0]
    logits = jnp.dot(feats, w_ref[...],
                     preferred_element_type=jnp.float32) + b_ref[...]
    logit_ref[0] = logits[:, :n_cls]


def seg_head_forward(feat_rows, w_pad, b_pad, n_cls, labels=None, *, block_rows=512):
    """feat_rows (N, HW, CF) bf16 -> (real-class logits (N,HW,n_cls) f32, per-image CE sums)."""
    n, hw, cf = feat_rows.shape
    cp = w_pad.shape[1]
    tm = min(block_rows, hw)
    grid = (n, pl.cdiv(hw, tm))

    if labels is None:
        logits = pl.pallas_call(
            functools.partial(_seg_head_kernel_no_loss, n_cls=n_cls),
            out_shape=jax.ShapeDtypeStruct((n, hw, n_cls), jnp.float32),
            grid_spec=pltpu.PrefetchScalarGridSpec(
                num_scalar_prefetch=0,
                grid=grid,
                in_specs=[
                    pl.BlockSpec((1, tm, cf), lambda i, t: (i, t, 0)),
                    pl.BlockSpec((cf, cp), lambda i, t: (0, 0)),
                    pl.BlockSpec((1, cp), lambda i, t: (0, 0)),
                ],
                out_specs=pl.BlockSpec((1, tm, n_cls), lambda i, t: (i, t, 0)),
            ),
            compiler_params=pltpu.CompilerParams(
                dimension_semantics=("parallel", "parallel"),
                vmem_limit_bytes=VMEM_LIMIT),
        )(feat_rows, w_pad, b_pad)
        return logits, None

    logits, partials = pl.pallas_call(
        functools.partial(_seg_head_kernel_loss, hw=hw, n_cls=n_cls),
        out_shape=(jax.ShapeDtypeStruct((n, hw, n_cls), jnp.float32),
                   jax.ShapeDtypeStruct((n, 1, 1), jnp.float32)),
        grid_spec=pltpu.PrefetchScalarGridSpec(
            num_scalar_prefetch=0,
            grid=grid,
            in_specs=[
                pl.BlockSpec((1, tm, cf), lambda i, t: (i, t, 0)),
                pl.BlockSpec((cf, cp), lambda i, t: (0, 0)),
                pl.BlockSpec((1, cp), lambda i, t: (0, 0)),
                pl.BlockSpec((1, tm, 1), lambda i, t: (i, t, 0)),
            ],
            out_specs=[
                pl.BlockSpec((1, tm, n_cls), lambda i, t: (i, t, 0)),
                pl.BlockSpec((1, 1, 1), lambda i, t: (i, 0, 0)),   # resident accumulator
            ],
        ),
        compiler_params=pltpu.CompilerParams(
            dimension_semantics=("parallel", "arbitrary"),
            vmem_limit_bytes=VMEM_LIMIT),
    )(feat_rows, w_pad, b_pad, labels)
    return logits, partials


# --------------- classification head: tiled pool + batched linear+CE ---------

def _pool_kernel(f_ref, pool_ref, *, hw, tm):
    """Tiled global-average pool with resident (1,1,CF) f32 accumulator."""
    t = pl.program_id(1)

    @pl.when(t == 0)
    def _():
        pool_ref[...] = jnp.zeros_like(pool_ref)

    vals = f_ref[0].astype(jnp.float32)                        # (tm, CF)
    if hw % tm != 0:
        row = t * tm + lax.broadcasted_iota(jnp.int32, (tm, 1), 0)
        vals = jnp.where(row < hw, vals, 0.0)
    pool_ref[0] = pool_ref[0] + jnp.sum(vals, axis=0, keepdims=True)

    @pl.when(t == pl.num_programs(1) - 1)
    def _():
        pool_ref[...] = pool_ref[...] * (1.0 / hw)


def global_avg_pool(feat_rows, *, block_rows=512):
    """feat_rows (N, HW, CF) bf16 -> pooled (N, 1, CF) f32."""
    n, hw, cf = feat_rows.shape
    tm = min(block_rows, hw)
    grid = (n, pl.cdiv(hw, tm))
    return pl.pallas_call(
        functools.partial(_pool_kernel, hw=hw, tm=tm),
        out_shape=jax.ShapeDtypeStruct((n, 1, cf), jnp.float32),
        grid_spec=pltpu.PrefetchScalarGridSpec(
            num_scalar_prefetch=0,
            grid=grid,
            in_specs=[pl.BlockSpec((1, tm, cf), lambda i, t: (i, t, 0))],
            out_specs=pl.BlockSpec((1, 1, cf), lambda i, t: (i, 0, 0)),
        ),
        compiler_params=pltpu.CompilerParams(
            dimension_semantics=("parallel", "arbitrary"),
            vmem_limit_bytes=VMEM_LIMIT),
    )(feat_rows)


def _cls_head_kernel_loss(pool_ref, w_ref, b_ref, lab_ref, logit_ref, loss_ref,
                          *, n_cls):
    pooled = pool_ref[...][:, 0, :]                            # (N, CF) f32
    logits = jnp.dot(pooled.astype(jnp.bfloat16), w_ref[...],
                     preferred_element_type=jnp.float32) + b_ref[...]   # (N, 128)
    logit_ref[...] = logits[:, :n_cls]

    nb, cp = logits.shape
    labels = lab_ref[...]                                      # (N, 1) int32
    # NOTE: a label >= n_cls would silently pick a -1e9 padded logit (huge loss).
    col = lax.broadcasted_iota(jnp.int32, (nb, cp), 1)
    m = jnp.max(logits, axis=-1, keepdims=True)
    lse = m + jnp.log(jnp.sum(jnp.exp(logits - m), axis=-1, keepdims=True))
    picked = jnp.sum(jnp.where(col == labels, logits, 0.0), axis=-1, keepdims=True)
    loss_ref[...] = jnp.sum(lse - picked, axis=(0, 1), keepdims=True)


def _cls_head_kernel_no_loss(pool_ref, w_ref, b_ref, logit_ref, *, n_cls):
    pooled = pool_ref[...][:, 0, :]
    logits = jnp.dot(pooled.astype(jnp.bfloat16), w_ref[...],
                     preferred_element_type=jnp.float32) + b_ref[...]
    logit_ref[...] = logits[:, :n_cls]


def cls_linear_ce(pooled, w_pad, b_pad, n_cls, labels=None):
    """pooled (N, 1, CF) f32 -> (logits (N, n_cls) f32, CE sum over batch (1,1) f32)."""
    n, _, cf = pooled.shape
    cp = w_pad.shape[1]

    if labels is None:
        logits = pl.pallas_call(
            functools.partial(_cls_head_kernel_no_loss, n_cls=n_cls),
            out_shape=jax.ShapeDtypeStruct((n, n_cls), jnp.float32),
            grid_spec=pltpu.PrefetchScalarGridSpec(
                num_scalar_prefetch=0, grid=(1,),
                in_specs=[
                    pl.BlockSpec((n, 1, cf), lambda i: (0, 0, 0)),
                    pl.BlockSpec((cf, cp), lambda i: (0, 0)),
                    pl.BlockSpec((1, cp), lambda i: (0, 0)),
                ],
                out_specs=pl.BlockSpec((n, n_cls), lambda i: (0, 0)),
            ),
            compiler_params=pltpu.CompilerParams(
                dimension_semantics=("arbitrary",),
                vmem_limit_bytes=VMEM_LIMIT),
        )(pooled, w_pad, b_pad)
        return logits, None

    logits, loss_sum = pl.pallas_call(
        functools.partial(_cls_head_kernel_loss, n_cls=n_cls),
        out_shape=(jax.ShapeDtypeStruct((n, n_cls), jnp.float32),
                   jax.ShapeDtypeStruct((1, 1), jnp.float32)),
        grid_spec=pltpu.PrefetchScalarGridSpec(
            num_scalar_prefetch=0, grid=(1,),
            in_specs=[
                pl.BlockSpec((n, 1, cf), lambda i: (0, 0, 0)),
                pl.BlockSpec((cf, cp), lambda i: (0, 0)),
                pl.BlockSpec((1, cp), lambda i: (0, 0)),
                pl.BlockSpec((n, 1), lambda i: (0, 0)),
            ],
            out_specs=[pl.BlockSpec((n, n_cls), lambda i: (0, 0)),
                       pl.BlockSpec((1, 1), lambda i: (0, 0))],
        ),
        compiler_params=pltpu.CompilerParams(
            dimension_semantics=("arbitrary",),
            vmem_limit_bytes=VMEM_LIMIT),
    )(pooled, w_pad, b_pad, labels)
    return logits, loss_sum


# ----------------------------- glue (plain JAX) -----------------------------

def _pad_head(weight, bias, pad_c):
    """(C_out, C_in) torch head -> lane-dense (C_in, pad_c) bf16 W, (1, pad_c) f32 b."""
    c_out, c_in = weight.shape
    w_pad = jnp.zeros((c_in, pad_c), jnp.float32).at[:, :c_out].set(weight.T)
    b_pad = jnp.full((1, pad_c), NEG, jnp.float32).at[0, :c_out].set(bias)
    return w_pad.astype(jnp.bfloat16), b_pad


# ----------------------------- synthetic modules ----------------------------

class Conv3x3ReLUEncoder:
    """Encoder: list of input dicts (NCHW 'image') -> [features (N, H, W, C_FEAT) bf16]."""

    def __init__(self, key, c_in, c_out):
        k1, k2 = jax.random.split(key)
        weight = jax.random.normal(k1, (c_out, c_in, 3, 3), jnp.float32) * 0.1
        bias = jax.random.normal(k2, (c_out,), jnp.float32) * 0.1
        # w_stack[dh*3+dw][c, o] == weight[o, c, dh, dw]  (MXU-ready per-tap slices)
        self.w_stack = jnp.transpose(weight, (2, 3, 1, 0)).reshape(9, c_in, c_out) \
                          .astype(jnp.bfloat16)
        self.b_mat = bias.reshape(1, c_out)
        self.c_in, self.c_out = c_in, c_out

    def __call__(self, inputs):
        x = jnp.stack([inp["image"] for inp in inputs], axis=0)      # (N, C, H, W)
        n, c, h, w = x.shape
        # one cheap transpose/pad of the RAW input (no 9x patch materialization)
        x_cl = jnp.transpose(x, (0, 2, 3, 1)).astype(jnp.bfloat16)   # (N, H, W, C)
        x_pad = jnp.pad(x_cl, ((0, 0), (1, 1), (1, 1), (0, 0)))      # (N, H+2, W+2, C)
        feats = conv3x3_relu(x_pad, self.w_stack, self.b_mat, h=h, w=w)   # (N, HW, CF)
        return [feats.reshape(n, h, w, self.c_out)]                  # channels-last view


class FeaturePassthrough:
    """Intermediate 'classify' decoder module (exercises the decoder[:-1] loop)."""

    def __call__(self, features, inputs):
        return features


class SegmentationHead:
    """Last decoder module for 'segment': fused 1x1-conv logits + pixelwise CE."""

    def __init__(self, key, c_in, num_classes):
        k1, k2 = jax.random.split(key)
        weight = jax.random.normal(k1, (num_classes, c_in), jnp.float32) * 0.1
        bias = jax.random.normal(k2, (num_classes,), jnp.float32) * 0.1
        self.w_pad, self.b_pad = _pad_head(weight, bias, PAD_C)
        self.num_classes = num_classes

    def __call__(self, features, inputs, targets):
        feat = features[0]                                           # (N, H, W, CF) bf16
        n, h, w, cf = feat.shape
        rows = feat.reshape(n, h * w, cf)                            # metadata-only reshape
        labels = None
        if targets is not None:
            labels = jnp.stack(targets, axis=0).reshape(n, h * w, 1).astype(jnp.int32)
        logits, partials = seg_head_forward(rows, self.w_pad, self.b_pad,
                                            self.num_classes, labels)
        # NHWC user-facing output (review item 10: no NCHW transpose round-trip).
        seg = logits.reshape(n, h, w, self.num_classes)
        outputs = [seg[i] for i in range(n)]
        losses = {}
        if targets is not None:
            losses["ce"] = jnp.sum(partials) / jnp.float32(n * h * w)
        return outputs, losses


class ClassificationHead:
    """Last decoder module for 'classify': tiled avg-pool kernel + batched linear+CE kernel."""

    def __init__(self, key, c_in, num_classes):
        k1, k2 = jax.random.split(key)
        weight = jax.random.normal(k1, (num_classes, c_in), jnp.float32) * 0.1
        bias = jax.random.normal(k2, (num_classes,), jnp.float32) * 0.1
        self.w_pad, self.b_pad = _pad_head(weight, bias, PAD_C)
        self.num_classes = num_classes

    def __call__(self, features, inputs, targets):
        feat = features[0]                                           # (N, H, W, CF) bf16
        n, h, w, cf = feat.shape
        rows = feat.reshape(n, h * w, cf)
        pooled = global_avg_pool(rows)                               # (N, 1, CF) f32
        labels = None
        if targets is not None:
            labels = jnp.stack(targets, axis=0).reshape(n, 1).astype(jnp.int32)
        logits, loss_sum = cls_linear_ce(pooled, self.w_pad, self.b_pad,
                                         self.num_classes, labels)
        outputs = [logits[i] for i in range(n)]
        losses = {}
        if targets is not None:
            losses["ce"] = loss_sum[0, 0] / jnp.float32(n)
        return outputs, losses


# ----------------------------- MultiTaskModel -------------------------------

class MultiTaskModel:
    """JAX/Pallas port of rslearn MultiTaskModel forward semantics."""

    def __init__(self, encoder, decoders, lazy_decode=False, loss_weights=None):
        self.lazy_decode = lazy_decode
        self.encoder = list(encoder)
        self.decoders = {name: list(decoder) for name, decoder in decoders.items()}
        if loss_weights is None:
            loss_weights = {name: 1.0 for name in decoders.keys()}
        for name in decoders.keys():
            if name not in loss_weights:
                loss_weights[name] = 1.0
        self.loss_weights = loss_weights

    def apply_decoder(self, features, inputs, targets, decoder, name, outputs, losses):
        cur = features
        for module in decoder[:-1]:
            cur = module(cur, inputs)
        if targets is None:
            cur_targets = None
        else:
            cur_targets = [target[name] for target in targets]
        cur_output, cur_loss_dict = decoder[-1](cur, inputs, cur_targets)
        for idx, entry in enumerate(cur_output):
            outputs[idx][name] = entry
        for loss_name, loss_value in cur_loss_dict.items():
            losses[f"{name}_{loss_name}"] = loss_value * self.loss_weights[name]
        return outputs, losses

    def forward(self, inputs, targets=None):
        features = inputs
        for module in self.encoder:
            features = module(features)
        outputs = [{} for _ in inputs]
        losses = {}
        if self.lazy_decode:
            dataset_source = inputs[0]["dataset_source"]
            decoder = self.decoders[dataset_source]
            self.apply_decoder(features, inputs, targets, decoder, dataset_source,
                               outputs, losses)
        else:
            for name, decoder in self.decoders.items():
                self.apply_decoder(features, inputs, targets, decoder, name,
                                   outputs, losses)
        return outputs, losses

    __call__ = forward


# --------------------------------- main --------------------------------------

if __name__ == "__main__":
    N, C_IN, H, W = 2, 4, 16, 16
    C_FEAT = 128                    # lane-dense feature channels (128-lane axis)
    N_SEG, N_CLS = 3, 5

    root = jax.random.PRNGKey(0)
    k_enc, k_seg, k_cls, k_img, k_segt, k_clst = jax.random.split(root, 6)

    model = MultiTaskModel(
        encoder=[Conv3x3ReLUEncoder(k_enc, C_IN, C_FEAT)],
        decoders={
            "segment": [SegmentationHead(k_seg, C_FEAT, N_SEG)],
            "classify": [FeaturePassthrough(), ClassificationHead(k_cls, C_FEAT, N_CLS)],
        },
        loss_weights={"segment": 1.0, "classify": 0.5},
    )

    images = jax.random.normal(k_img, (N, C_IN, H, W), jnp.float32)
    seg_targets = jax.random.randint(k_segt, (N, H, W), 0, N_SEG, jnp.int32)
    cls_targets = jax.random.randint(k_clst, (N,), 0, N_CLS, jnp.int32)

    inputs = [{"image": images[i], "dataset_source": "segment"} for i in range(N)]
    targets = [{"segment": seg_targets[i], "classify": cls_targets[i]} for i in range(N)]

    outputs, losses = model(inputs, targets)

    jax.block_until_ready(losses)
    jax.block_until_ready([outputs[i]["segment"] for i in range(N)])
    jax.block_until_ready([outputs[i]["classify"] for i in range(N)])

    # ----------------- pure-JAX reference (mimics the kernels' bf16 casts) -----------------
    enc = model.encoder[0]
    x_cl = jnp.transpose(images, (0, 2, 3, 1)).astype(jnp.bfloat16).astype(jnp.float32)
    x_pad = jnp.pad(x_cl, ((0, 0), (1, 1), (1, 1), (0, 0)))
    w9 = enc.w_stack.astype(jnp.float32)
    feat_ref = jnp.zeros((N, H, W, C_FEAT), jnp.float32)
    for dh in range(3):
        for dw in range(3):
            feat_ref = feat_ref + jnp.einsum(
                "nhwc,cf->nhwf", x_pad[:, dh:dh + H, dw:dw + W, :], w9[dh * 3 + dw])
    feat_ref = jnp.maximum(feat_ref + enc.b_mat.reshape(1, 1, 1, C_FEAT), 0.0)
    feat_ref = feat_ref.astype(jnp.bfloat16).astype(jnp.float32)

    def ce_ref(logits, labels):
        lse = jax.nn.logsumexp(logits, axis=-1)
        picked = jnp.take_along_axis(logits, labels[..., None], axis=-1)[..., 0]
        return lse - picked

    seg_head = model.decoders["segment"][0]
    w_seg = seg_head.w_pad.astype(jnp.float32)[:, :N_SEG]
    b_seg = seg_head.b_pad[0, :N_SEG]
    seg_logits_ref = jnp.einsum("nhwc,ck->nhwk", feat_ref, w_seg) + b_seg
    seg_loss_ref = jnp.mean(ce_ref(seg_logits_ref, seg_targets))

    cls_head = model.decoders["classify"][1]
    w_cls = cls_head.w_pad.astype(jnp.float32)[:, :N_CLS]
    b_cls = cls_head.b_pad[0, :N_CLS]
    pooled_ref = jnp.mean(feat_ref, axis=(1, 2)).astype(jnp.bfloat16).astype(jnp.float32)
    cls_logits_ref = pooled_ref @ w_cls + b_cls
    cls_loss_ref = jnp.mean(ce_ref(cls_logits_ref, cls_targets))

    seg_out = jnp.stack([outputs[i]["segment"] for i in range(N)])
    cls_out = jnp.stack([outputs[i]["classify"] for i in range(N)])

    # sanity / correctness checks
    assert outputs[0]["segment"].shape == (H, W, N_SEG)        # NHWC logits (review item 10)
    assert outputs[0]["classify"].shape == (N_CLS,)
    assert set(losses.keys()) == {"segment_ce", "classify_ce"}
    assert all(bool(jnp.isfinite(v)) for v in losses.values())
    assert bool(jnp.allclose(seg_out, seg_logits_ref, rtol=5e-2, atol=5e-2))
    assert bool(jnp.allclose(cls_out, cls_logits_ref, rtol=5e-2, atol=5e-2))
    assert bool(jnp.allclose(losses["segment_ce"], 1.0 * seg_loss_ref, rtol=5e-2, atol=5e-2))
    assert bool(jnp.allclose(losses["classify_ce"], 0.5 * cls_loss_ref, rtol=5e-2, atol=5e-2))

    print("KERNEL_OK")
</pallas_src>

<mosaic_0001>
module attributes {stable_mosaic.version = 11 : i64} {
  func.func @_conv_relu_kernel(%arg0: i32, %arg1: i32, %arg2: memref<1x18x18x4xbf16, #tpu.memory_space<vmem>>, %arg3: memref<9x4x128xbf16, #tpu.memory_space<vmem>>, %arg4: memref<1x128xf32, #tpu.memory_space<vmem>>, %arg5: memref<1x256x128xbf16, #tpu.memory_space<vmem>>) attributes {dimension_semantics = [#tpu.dimension_semantics<parallel>, #tpu.dimension_semantics<arbitrary>], iteration_bounds = array<i64: 2, 1>, scalar_prefetch = 0 : i64, scratch_operands = 0 : i64, tpu.core_type = #tpu.core_type<tc>, window_params = [{transform_indices = @transform_0, window_bounds = array<i64: 1, 18, 18, 4>}, {pipeline_mode = #tpu.pipeline_mode<synchronous>, transform_indices = @transform_1, window_bounds = array<i64: 9, 4, 128>}, {pipeline_mode = #tpu.pipeline_mode<synchronous>, transform_indices = @transform_2, window_bounds = array<i64: 1, 128>}, {transform_indices = @transform_3, window_bounds = array<i64: 1, 256, 128>}]} {
    %c16_i32 = arith.constant 16 : i32
    %0 = arith.muli %arg1, %c16_i32 : i32
    %cst = arith.constant 0.000000e+00 : f32
    %1 = vector.broadcast %cst : f32 to vector<256x128xf32>
    %c0_i32 = arith.constant 0 : i32
    %2 = arith.addi %0, %c0_i32 : i32
    %c0 = arith.constant 0 : index
    %3 = arith.index_cast %2 : i32 to index
    %c0_0 = arith.constant 0 : index
    %c0_1 = arith.constant 0 : index
    %4 = vector.load %arg2[%c0, %3, %c0_0, %c0_1] : memref<1x18x18x4xbf16, #tpu.memory_space<vmem>>, vector<1x16x18x4xbf16>
    %5 = vector.shape_cast %4 : vector<1x16x18x4xbf16> to vector<16x18x4xbf16>
    %6 = vector.extract_strided_slice %5 {offsets = [0, 0, 0], sizes = [16, 16, 4], strides = [1, 1, 1]} : vector<16x18x4xbf16> to vector<16x16x4xbf16>
    %7 = vector.shape_cast %6 : vector<16x16x4xbf16> to vector<256x4xbf16>
    %c0_2 = arith.constant 0 : index
    %c0_3 = arith.constant 0 : index
    %c0_4 = arith.constant 0 : index
    %8 = vector.load %arg3[%c0_2, %c0_3, %c0_4] : memref<9x4x128xbf16, #tpu.memory_space<vmem>>, vector<1x4x128xbf16>
    %9 = vector.shape_cast %8 : vector<1x4x128xbf16> to vector<4x128xbf16>
    %cst_5 = arith.constant dense<0.000000e+00> : vector<256x128xf32>
    %10 = tpu.matmul %7, %9, %cst_5 {dimension_numbers = #tpu.dot_dimension_numbers<[1], [0], [0], [1], [0, 0, 1, 1], [], []>} : vector<256x4xbf16>, vector<4x128xbf16>, vector<256x128xf32> -> vector<256x128xf32>
    %11 = arith.addf %1, %10 : vector<256x128xf32>
    %12 = vector.extract_strided_slice %5 {offsets = [0, 1, 0], sizes = [16, 16, 4], strides = [1, 1, 1]} : vector<16x18x4xbf16> to vector<16x16x4xbf16>
    %13 = vector.shape_cast %12 : vector<16x16x4xbf16> to vector<256x4xbf16>
    %c1 = arith.constant 1 : index
    %c0_6 = arith.constant 0 : index
    %c0_7 = arith.constant 0 : index
    %14 = vector.load %arg3[%c1, %c0_6, %c0_7] : memref<9x4x128xbf16, #tpu.memory_space<vmem>>, vector<1x4x128xbf16>
    %15 = vector.shape_cast %14 : vector<1x4x128xbf16> to vector<4x128xbf16>
    %cst_8 = arith.constant dense<0.000000e+00> : vector<256x128xf32>
    %16 = tpu.matmul %13, %15, %cst_8 {dimension_numbers = #tpu.dot_dimension_numbers<[1], [0], [0], [1], [0, 0, 1, 1], [], []>} : vector<256x4xbf16>, vector<4x128xbf16>, vector<256x128xf32> -> vector<256x128xf32>
    %17 = arith.addf %11, %16 : vector<256x128xf32>
    %18 = vector.extract_strided_slice %5 {offsets = [0, 2, 0], sizes = [16, 16, 4], strides = [1, 1, 1]} : vector<16x18x4xbf16> to vector<16x16x4xbf16>
    %19 = vector.shape_cast %18 : vector<16x16x4xbf16> to vector<256x4xbf16>
    %c2 = arith.constant 2 : index
    %c0_9 = arith.constant 0 : index
    %c0_10 = arith.constant 0 : index
    %20 = vector.load %arg3[%c2, %c0_9, %c0_10] : memref<9x4x128xbf16, #tpu.memory_space<vmem>>, vector<1x4x128xbf16>
    %21 = vector.shape_cast %20 : vector<1x4x128xbf16> to vector<4x128xbf16>
    %cst_11 = arith.constant dense<0.000000e+00> : vector<256x128xf32>
    %22 = tpu.matmul %19, %21, %cst_11 {dimension_numbers = #tpu.dot_dimension_numbers<[1], [0], [0], [1], [0, 0, 1, 1], [], []>} : vector<256x4xbf16>, vector<4x128xbf16>, vector<256x128xf32> -> vector<256x128xf32>
    %23 = arith.addf %17, %22 : vector<256x128xf32>
    %c1_i32 = arith.constant 1 : i32
    %24 = arith.addi %0, %c1_i32 : i32
    %c0_12 = arith.constant 0 : index
    %25 = arith.index_cast %24 : i32 to index
    %c0_13 = arith.constant 0 : index
    %c0_14 = arith.constant 0 : index
    %26 = vector.load %arg2[%c0_12, %25, %c0_13, %c0_14] : memref<1x18x18x4xbf16, #tpu.memory_space<vmem>>, vector<1x16x18x4xbf16>
    %27 = vector.shape_cast %26 : vector<1x16x18x4xbf16> to vector<16x18x4xbf16>
    %28 = vector.extract_strided_slice %27 {offsets = [0, 0, 0], sizes = [16, 16, 4], strides = [1, 1, 1]} : vector<16x18x4xbf16> to vector<16x16x4xbf16>
    %29 = vector.shape_cast %28 : vector<16x16x4xbf16> to vector<256x4xbf16>
    %c3 = arith.constant 3 : index
    %c0_15 = arith.constant 0 : index
    %c0_16 = arith.constant 0 : index
    %30 = vector.load %arg3[%c3, %c0_15, %c0_16] : memref<9x4x128xbf16, #tpu.memory_space<vmem>>, vector<1x4x128xbf16>
    %31 = vector.shape_cast %30 : vector<1x4x128xbf16> to vector<4x128xbf16>
    %cst_17 = arith.constant dense<0.000000e+00> : vector<256x128xf32>
    %32 = tpu.matmul %29, %31, %cst_17 {dimension_numbers = #tpu.dot_dimension_numbers<[1], [0], [0], [1], [0, 0, 1, 1], [], []>} : vector<256x4xbf16>, vector<4x128xbf16>, vector<256x128xf32> -> vector<256x128xf32>
    %33 = arith.addf %23, %32 : vector<256x128xf32>
    %34 = vector.extract_strided_slice %27 {offsets = [0, 1, 0], sizes = [16, 16, 4], strides = [1, 1, 1]} : vector<16x18x4xbf16> to vector<16x16x4xbf16>
    %35 = vector.shape_cast %34 : vector<16x16x4xbf16> to vector<256x4xbf16>
    %c4 = arith.constant 4 : index
    %c0_18 = arith.constant 0 : index
    %c0_19 = arith.constant 0 : index
    %36 = vector.load %arg3[%c4, %c0_18, %c0_19] : memref<9x4x128xbf16, #tpu.memory_space<vmem>>, vector<1x4x128xbf16>
    %37 = vector.shape_cast %36 : vector<1x4x128xbf16> to vector<4x128xbf16>
    %cst_20 = arith.constant dense<0.000000e+00> : vector<256x128xf32>
    %38 = tpu.matmul %35, %37, %cst_20 {dimension_numbers = #tpu.dot_dimension_numbers<[1], [0], [0], [1], [0, 0, 1, 1], [], []>} : vector<256x4xbf16>, vector<4x128xbf16>, vector<256x128xf32> -> vector<256x128xf32>
    %39 = arith.addf %33, %38 : vector<256x128xf32>
    %40 = vector.extract_strided_slice %27 {offsets = [0, 2, 0], sizes = [16, 16, 4], strides = [1, 1, 1]} : vector<16x18x4xbf16> to vector<16x16x4xbf16>
    %41 = vector.shape_cast %40 : vector<16x16x4xbf16> to vector<256x4xbf16>
    %c5 = arith.constant 5 : index
    %c0_21 = arith.constant 0 : index
    %c0_22 = arith.constant 0 : index
    %42 = vector.load %arg3[%c5, %c0_21, %c0_22] : memref<9x4x128xbf16, #tpu.memory_space<vmem>>, vector<1x4x128xbf16>
    %43 = vector.shape_cast %42 : vector<1x4x128xbf16> to vector<4x128xbf16>
    %cst_23 = arith.constant dense<0.000000e+00> : vector<256x128xf32>
    %44 = tpu.matmul %41, %43, %cst_23 {dimension_numbers = #tpu.dot_dimension_numbers<[1], [0], [0], [1], [0, 0, 1, 1], [], []>} : vector<256x4xbf16>, vector<4x128xbf16>, vector<256x128xf32> -> vector<256x128xf32>
    %45 = arith.addf %39, %44 : vector<256x128xf32>
    %c2_i32 = arith.constant 2 : i32
    %46 = arith.addi %0, %c2_i32 : i32
    %c0_24 = arith.constant 0 : index
    %47 = arith.index_cast %46 : i32 to index
    %c0_25 = arith.constant 0 : index
    %c0_26 = arith.constant 0 : index
    %48 = vector.load %arg2[%c0_24, %47, %c0_25, %c0_26] : memref<1x18x18x4xbf16, #tpu.memory_space<vmem>>, vector<1x16x18x4xbf16>
    %49 = vector.shape_cast %48 : vector<1x16x18x4xbf16> to vector<16x18x4xbf16>
    %50 = vector.extract_strided_slice %49 {offsets = [0, 0, 0], sizes = [16, 16, 4], strides = [1, 1, 1]} : vector<16x18x4xbf16> to vector<16x16x4xbf16>
    %51 = vector.shape_cast %50 : vector<16x16x4xbf16> to vector<256x4xbf16>
    %c6 = arith.constant 6 : index
    %c0_27 = arith.constant 0 : index
    %c0_28 = arith.constant 0 : index
    %52 = vector.load %arg3[%c6, %c0_27, %c0_28] : memref<9x4x128xbf16, #tpu.memory_space<vmem>>, vector<1x4x128xbf16>
    %53 = vector.shape_cast %52 : vector<1x4x128xbf16> to vector<4x128xbf16>
    %cst_29 = arith.constant dense<0.000000e+00> : vector<256x128xf32>
    %54 = tpu.matmul %51, %53, %cst_29 {dimension_numbers = #tpu.dot_dimension_numbers<[1], [0], [0], [1], [0, 0, 1, 1], [], []>} : vector<256x4xbf16>, vector<4x128xbf16>, vector<256x128xf32> -> vector<256x128xf32>
    %55 = arith.addf %45, %54 : vector<256x128xf32>
    %56 = vector.extract_strided_slice %49 {offsets = [0, 1, 0], sizes = [16, 16, 4], strides = [1, 1, 1]} : vector<16x18x4xbf16> to vector<16x16x4xbf16>
    %57 = vector.shape_cast %56 : vector<16x16x4xbf16> to vector<256x4xbf16>
    %c7 = arith.constant 7 : index
    %c0_30 = arith.constant 0 : index
    %c0_31 = arith.constant 0 : index
    %58 = vector.load %arg3[%c7, %c0_30, %c0_31] : memref<9x4x128xbf16, #tpu.memory_space<vmem>>, vector<1x4x128xbf16>
    %59 = vector.shape_cast %58 : vector<1x4x128xbf16> to vector<4x128xbf16>
    %cst_32 = arith.constant dense<0.000000e+00> : vector<256x128xf32>
    %60 = tpu.matmul %57, %59, %cst_32 {dimension_numbers = #tpu.dot_dimension_numbers<[1], [0], [0], [1], [0, 0, 1, 1], [], []>} : vector<256x4xbf16>, vector<4x128xbf16>, vector<256x128xf32> -> vector<256x128xf32>
    %61 = arith.addf %55, %60 : vector<256x128xf32>
    %62 = vector.extract_strided_slice %49 {offsets = [0, 2, 0], sizes = [16, 16, 4], strides = [1, 1, 1]} : vector<16x18x4xbf16> to vector<16x16x4xbf16>
    %63 = vector.shape_cast %62 : vector<16x16x4xbf16> to vector<256x4xbf16>
    %c8 = arith.constant 8 : index
    %c0_33 = arith.constant 0 : index
    %c0_34 = arith.constant 0 : index
    %64 = vector.load %arg3[%c8, %c0_33, %c0_34] : memref<9x4x128xbf16, #tpu.memory_space<vmem>>, vector<1x4x128xbf16>
    %65 = vector.shape_cast %64 : vector<1x4x128xbf16> to vector<4x128xbf16>
    %cst_35 = arith.constant dense<0.000000e+00> : vector<256x128xf32>
    %66 = tpu.matmul %63, %65, %cst_35 {dimension_numbers = #tpu.dot_dimension_numbers<[1], [0], [0], [1], [0, 0, 1, 1], [], []>} : vector<256x4xbf16>, vector<4x128xbf16>, vector<256x128xf32> -> vector<256x128xf32>
    %67 = arith.addf %61, %66 : vector<256x128xf32>
    %c0_36 = arith.constant 0 : index
    %c0_37 = arith.constant 0 : index
    %68 = vector.load %arg4[%c0_36, %c0_37] : memref<1x128xf32, #tpu.memory_space<vmem>>, vector<1x128xf32>
    %69 = vector.broadcast %68 : vector<1x128xf32> to vector<256x128xf32>
    %70 = arith.addf %67, %69 : vector<256x128xf32>
    %cst_38 = arith.constant 0.000000e+00 : f32
    %71 = vector.broadcast %cst_38 : f32 to vector<256x128xf32>
    %72 = arith.maximumf %70, %71 : vector<256x128xf32>
    %73 = arith.truncf %72 : vector<256x128xf32> to vector<256x128xbf16>
    %c0_39 = arith.constant 0 : index
    %c0_40 = arith.constant 0 : index
    %c0_41 = arith.constant 0 : index
    %74 = vector.load %arg5[%c0_39, %c0_40, %c0_41] : memref<1x256x128xbf16, #tpu.memory_space<vmem>>, vector<1x256x128xbf16>
    %75 = vector.shape_cast %74 : vector<1x256x128xbf16> to vector<256x128xbf16>
    %76 = vector.shape_cast %73 : vector<256x128xbf16> to vector<1x256x128xbf16>
    tpu.vector_store %arg5[%c0_39, %c0_40, %c0_41], %76 {strides = array<i32>} : memref<1x256x128xbf16, #tpu.memory_space<vmem>>, vector<1x256x128xbf16>,
    return
  }
  func.func @transform_0(%arg0: i32, %arg1: i32) -> (i32, i32, i32, i32) {
    %c0_i32 = arith.constant 0 : i32
    %c0_i32_0 = arith.constant 0 : i32
    %c0_i32_1 = arith.constant 0 : i32
    %c0_i32_2 = arith.constant 0 : i32
    return %arg0, %c0_i32, %c0_i32_0, %c0_i32_1 : i32, i32, i32, i32
  }
  func.func @transform_1(%arg0: i32, %arg1: i32) -> (i32, i32, i32) {
    %c0_i32 = arith.constant 0 : i32
    %c0_i32_0 = arith.constant 0 : i32
    %c0_i32_1 = arith.constant 0 : i32
    %c0_i32_2 = arith.constant 0 : i32
    return %c0_i32, %c0_i32_0, %c0_i32_1 : i32, i32, i32
  }
  func.func @transform_2(%arg0: i32, %arg1: i32) -> (i32, i32) {
    %c0_i32 = arith.constant 0 : i32
    %c0_i32_0 = arith.constant 0 : i32
    %c0_i32_1 = arith.constant 0 : i32
    return %c0_i32, %c0_i32_0 : i32, i32
  }
  func.func @transform_3(%arg0: i32, %arg1: i32) -> (i32, i32, i32) {
    %c0_i32 = arith.constant 0 : i32
    %c0_i32_0 = arith.constant 0 : i32
    return %arg0, %arg1, %c0_i32 : i32, i32, i32
  }
}

</mosaic_0001>

<bundles_post_ra>
// kernel: tpu_custom_call.1
= control target key start
LH: loop header
LB: loop body
LE: loop exit
PB: predicated region body
PF: predicated region fallthrough
CT: control target
= control target key end

     0   :  { %8 = vsyncpa [#allocation3], 0  ;;  %s9062_s0 = inlined_call_operand.vmem [shape: bf16[2,18,18,4], index: 0, kind: input, shape index: {}]   ;;  %s9063_s1 = inlined_call_operand.vmem [shape: bf16[9,4,128], index: 1, kind: input, shape index: {}]   ;;  %s9064_s2 = inlined_call_operand.vmem [shape: f32[1,128], index: 2, kind: input, shape index: {}]   ;;  %s9065_s3 = inlined_call_operand.hbm [shape: bf16[2,256,128], index: 3, kind: output, shape index: {}]  }
   0x1   :  { %10 = vsyncpa [#allocation3 + $0x1], 0  ;;  %s6183_s12 = smov 0   ;;  %s6185_s13 = smov 0  }
   0x2   :  { %s6187_s14 = smov 0   ;;  %s6189_s15 = smov 0  }
   0x3   :  { %s6191_s16 = smov 0   ;;  %s6193_s17 = smov 0  }
   0x4 LB: > { %s4892_s18 = sadd.s32 4294967295, %s6158_s17   ;;  %s4893_s19 = sadd.s32 4294967294, %s6158_s17   ;;  %s6158_s17 = sphi %s6193_s17, %s16_s17   ;;  %s6154_s16 = sphi %s6191_s16, %s9489_s16   ;;  %s6150_s15 = sphi %s6189_s15, %s9488_s15   ;;  %s6146_s14 = sphi %s6187_s14, %s9487_s14   ;;  %s6142_s13 = sphi %s6185_s13, %s9486_s13   ;;  %s6138_s12 = sphi %s6183_s12, %s9485_s12  }
   0x5   : > { %s28_s20 = sadd.s32 1, %s6154_s16  ;;  %s105_s21 = sadd.s32 1, %s6146_s14 }
   0x6   : > { %p30_p0 = scmp.ge.s32.totalorder %s28_s20, 2  ;;  %p115_p1 = scmp.ne.s32.totalorder %s6146_s14, %s6142_s13 }
   0x7   : > { %p116_p2 = scmp.eq.s32.totalorder %s4892_s18, 1  ;;  %p121_p3 = scmp.ne.s32.totalorder %s6142_s13, %s6138_s12 }
   0x8   : > { %s9491_s20 = smov (%p30_p0, %s28_s20), 0  ;;  %p122_p5 = scmp.eq.s32.totalorder %s4893_s19, 1 }
   0x9   : > { %p6223_p4 = por %p116_p2, %p115_p1  ;;  %s100_s23 = ssub.s32 %s6154_s16, %s9491_s20 }
   0xa   : > { %p4896_p6 = scmp.ge.s32.totalorder %s6158_s17, 1  ;;  %p103_p7 = scmp.eq.s32.totalorder %s100_s23, 0 }
   0xb   : > { %p6230_p8 = por %p122_p5, %p121_p3  ;;  %p154_p9 = scmp.lt.s32.totalorder %s6158_s17, 3 }
   0xc   : > { %s6236_s25 = scalar_select %p103_p7, %s6146_s14, %s105_s21  }
   0xd   : > { %p155_p10 = pnand %p4896_p6, %p154_p9 }
   0xf   : > { %158 = sbr.rel (%p155_p10) target bundleno = 588 (0x24c), region = 32 }
  0x14   : > { %v4899_v0 = vld [vmem:[%s9063_s1 + $0x2] sm:$0x3]  ;;  %vm724_vm0 = vcmask 1041408   ;;  %p178_p11 = scmp.lt.s32.totalorder %s6150_s15, 1  ;;  %v237_v2 = vld [vmem:[%s9063_s1] sm:$0x3] }
  0x15   : > { %5967 = vmatprep.subr.msk.bf16.mxu1 %vm724_vm0, %v4899_v0  ;;  %5966 = vmatprep.subr.msk.bf16.mxu0 %vm724_vm0, %v4899_v0  ;;  %v726_v1 = vsel %vm724_vm0, %v4899_v0, 0  ;;  %v4980_v3 = vld [vmem:[%s9063_s1 + $0x4] sm:$0x3]  ;;  %vm238_vm1 = vsmask.f32 3328  ;;  %v6260_v4 = vsel %vm724_vm0, %v237_v2, 0 }
  0x16   : > { %5965 = vmatpush3.bf16.msra.mxu1 %v726_v1  ;;  %5659 = vmatpush3.bf16.msra.mxu0 %v726_v1  ;;  %s179_s30 = scalar_select %p178_p11, %s6150_s15, 1  ;;  %vm239_vm2 = vsmask.f32 7440  ;;  %v6263_v5 = vsel %vm724_vm0, %v4980_v3, 0  ;;  %vm675_vm3 = vcmask 31744   ;;  %v9136_v32 = vmov 0 }
  0x17   : > { %5968 = vmatprep.subr.msk.bf16.mxu1 %vm724_vm0, %v237_v2  ;;  %5969 = vmatprep.subr.msk.bf16.mxu0 %vm724_vm0, %v4980_v3  ;;  %vm6302_vm4 = vmor %vm238_vm1, %vm239_vm2  ;;  %vm1197_vm5 = vcmask 1042432   ;;  %vm1198_vm6 = vcmask 1046532   ;;  %s175_s7 = sand.u32 1, %s6142_s13   ;;  %s5409_s10 = sshll.u32 %s6150_s15, 11 }
  0x18   : > { %s5976_s6 = smul.u32 216, %s179_s30  ;;  %v9137_v32 = vsel %vm6302_vm4, 4294967295, %v9136_v32  ;;  %vm6587_vm7 = vmor %vm1197_vm5, %vm1198_vm6  ;;  %s4897_s8 = sshll.u32 %s175_s7, 7 }
  0x19   : > { %9138 = vst [vmem:[#allocation5_spill] sm:$0xff] %v9137_v32  ;;  %s9009_s21 = scalar_lea.hbm %s9065_s3, %s5409_s10  ;;  %s9017_s15 = scalar_lea.sflag [#allocation3], %s175_s7 }
  0x1a   : > { %s6257_s9 = scalar_lea.vmem %s9062_s0, %s5976_s6  ;;  %s6160_s26 = smov [#allocation2]  }
  0x1b   : > { %v6266_v6 = vld [vmem:[%s6257_s9] sm:$0xf]  ;;  %v6269_v7 = vld [vmem:[%s6257_s9 + $0x4] sm:$0xf]  ;;  %v6272_v8 = vld [vmem:[%s6257_s9 + $0x8] sm:$0x1] }
  0x1c   : > { %v242_v9 = vshrl.u32 %v6266_v6, 16  ;;  %v245_v10 = vshll.u32 %v6266_v6, 16  ;;  %v251_v11 = vshll.u32 %v6269_v7, 16  ;;  %v255_v12 = vshrl.u32 %v6269_v7, 16  ;;  %v6279_v13 = vld [vmem:[%s6257_s9 + $0x60] sm:$0xf] }
  0x1d   : > { %v261_v14 = vshll.u32 %v6272_v8, 16  ;;  %v6284_v16 = vld [vmem:[%s6257_s9 + $0x64] sm:$0xf]  ;;  %v6287_v17 = vld [vmem:[%s6257_s9 + $0x68] sm:$0x1]  ;;  %v434_v23 = vshrl.u32 %v6279_v13, 16 }
  0x1e   : > { %v244_v18 = vrot.slane %v242_v9, 4  ;;  %v247_v19 = vrot.slane %v245_v10, 5  ;;  %v253_v20 = vrot.slane %v251_v11, 5  ;;  %v257_v21 = vrot.slane %v255_v12, 4  ;;  %v6295_v30 = vld [vmem:[%s6257_s9 + $0xc] sm:$0xf] }
  0x1f   : > { %v263_v22 = vrot.slane %v261_v14, 5  ;;  %v437_v24 = vshll.u32 %v6279_v13, 16  ;;  %v443_v25 = vshll.u32 %v6284_v16, 16  ;;  %v447_v28 = vshrl.u32 %v6284_v16, 16  ;;  %v6298_v31 = vld [vmem:[%s6257_s9 + $0x10] sm:$0xf] }
  0x20   : > { %v248_v26 = vor.u32 %v247_v19, %v244_v18  ;;  %v258_v27 = vor.u32 %v257_v21, %v253_v20  ;;  %v453_v29 = vshll.u32 %v6287_v17, 16  ;;  %v436_v33 = vrot.slane %v434_v23, 4  ;;  %v6309_v42 = vld [vmem:[%s6257_s9 + $0x14] sm:$0x1]  ;;  %v6320_v54 = vld [vmem:[%s6257_s9 + $0x6c] sm:$0xf] }
  0x21   : > { %v439_v34 = vrot.slane %v437_v24, 5  ;;  %v445_v35 = vrot.slane %v443_v25, 5  ;;  %v449_v39 = vrot.slane %v447_v28, 4  ;;  %v266_v43 = vshrl.u32 %v6295_v30, 16  ;;  %9139 = vst [vmem:[#allocation6_spill] sm:$0xff] %v6320_v54  ;;  %s6086_s27 = sshll.u32 %s6160_s26, 4  ;;  %s6087_s27 = int_to_ptr.vmem [resolvable:$false] %s6086_s27 }
  0x22   : > { %v249_v37 = vrot.slane %v248_v26, 4  ;;  %v259_v38 = vrot.slane %v258_v27, 4  ;;  %v455_v40 = vrot.slane %v453_v29, 5  ;;  %v269_v44 = vshll.u32 %v6295_v30, 16  ;;  %v6324_v59 = vld [vmem:[%s6257_s9 + $0x70] sm:$0xf] }
  0x23   : > { %v440_v41 = vor.u32 %v439_v34, %v436_v33  ;;  %v275_v45 = vshll.u32 %v6298_v31, 16  ;;  %v450_v48 = vor.u32 %v449_v39, %v445_v35  ;;  %v279_v49 = vshrl.u32 %v6298_v31, 16  ;;  %v6332_v0 = vld [vmem:[%s6257_s9 + $0x74] sm:$0x1]  ;;  %v6338_v10 = vld [vmem:[%s6257_s9 + $0x18] sm:$0xf] }
  0x24   : > { %v254_v46 = vsel %vm6302_vm4, %v249_v37, %v253_v20  ;;  %v264_v47 = vsel %vm6302_vm4, %v259_v38, %v263_v22  ;;  %v268_v52 = vrot.slane %v266_v43, 4  ;;  %v271_v53 = vrot.slane %v269_v44, 5  ;;  %9140 = vst [vmem:[#allocation7_spill] sm:$0xff] %v6332_v0  ;;  %v6345_v23 = vld [vmem:[%s6257_s9 + $0x1c] sm:$0xf]  ;;  %s6088_s28 = scalar_lea.vmem %s6087_s27, 4096 }
  0x25   : > { %v4900_v50 = vcombine.low %v254_v46, %v264_v47  ;;  %v441_v51 = vrot.slane %v440_v41, 4  ;;  %v451_v55 = vrot.slane %v450_v48, 4  ;;  %v277_v56 = vrot.slane %v275_v45, 5  ;;  %v6351_v27 = vld [vmem:[%s6257_s9 + $0x20] sm:$0x1] }
  0x26   : > { %v281_v57 = vrot.slane %v279_v49, 4  ;;  %v285_v58 = vshll.u32 %v6309_v42, 16  ;;  %v272_v61 = vor.u32 %v271_v53, %v268_v52  ;;  %v458_v9 = vshrl.u32 %v6320_v54, 16  ;;  %v6358_v37 = vld [vmem:[%s6257_s9 + $0x78] sm:$0xf] }
  0x27   : > { %5660 = vmatprep.mubr.msk.bf16.mxu0 %vm675_vm3, %v4900_v50  ;;  %v446_v60 = vsel %vm6302_vm4, %v441_v51, %v445_v35  ;;  %v456_v1 = vsel %vm6302_vm4, %v451_v55, %v455_v40  ;;  %v461_v14 = vshll.u32 %v6320_v54, 16  ;;  %v467_v18 = vshll.u32 %v6324_v59, 16  ;;  %9141 = vst [vmem:[#allocation8_spill] sm:$0xff] %v6358_v37  ;;  %v6364_v43 = vld [vmem:[%s9063_s1 + $0x8] sm:$0x3] }
  0x28   : > { %v282_v2 = vor.u32 %v281_v57, %v277_v56  ;;  %v287_v3 = vrot.slane %v285_v58, 5  ;;  %v4908_v11 = vcombine.low %v446_v60, %v456_v1  ;;  %v273_v12 = vrot.slane %v272_v61, 4  ;;  %v6369_v48 = vld [vmem:[%s6257_s9 + $0x7c] sm:$0xf]  ;;  %v6376_v58 = vld [vmem:[%s6257_s9 + $0x80] sm:$0x1] }
  0x29   : > { %v460_v20 = vrot.slane %v458_v9, 4  ;;  %v471_v21 = vshrl.u32 %v6324_v59, 16  ;;  %v477_v22 = vshll.u32 %v6332_v0, 16  ;;  %v463_v25 = vrot.slane %v461_v14, 5  ;;  %9142 = vst [vmem:[#allocation9_spill] sm:$0xff] %v6369_v48  ;;  %9143 = vst [vmem:[#allocation10_spill] sm:$0xff] %v6376_v58 }
  0x2a   : > { %v283_v19 = vrot.slane %v282_v2, 4  ;;  %5676 = vmatprep.mubr.msk.bf16.mxu1 %vm675_vm3, %v4908_v11  ;;  %v278_v24 = vsel %vm6302_vm4, %v273_v12, %v277_v56  ;;  %v469_v26 = vrot.slane %v467_v18, 5  ;;  %v290_v28 = vshrl.u32 %v6338_v10, 16  ;;  %v6390_v14 = vld [vmem:[%s6257_s9 + $0x28] sm:$0xf] }
  0x2b   : > { %v473_v33 = vrot.slane %v471_v21, 4  ;;  %v479_v34 = vrot.slane %v477_v22, 5  ;;  %v293_v35 = vshll.u32 %v6338_v10, 16  ;;  %v464_v39 = vor.u32 %v463_v25, %v460_v20  ;;  %v6396_v22 = vld [vmem:[%s9063_s1 + $0x6] sm:$0x3] }
  0x2c   : > { %v288_v29 = vsel %vm6302_vm4, %v283_v19, %v287_v3  ;;  %v292_v40 = vrot.slane %v290_v28, 4  ;;  %v299_v41 = vshll.u32 %v6345_v23, 16  ;;  %v303_v46 = vshrl.u32 %v6345_v23, 16  ;;  %v6382_v3 = vld [vmem:[%s6257_s9 + $0x24] sm:$0xf] }
  0x2d   : > { %v4901_v38 = vcombine.low %v278_v24, %v288_v29  ;;  %v474_v44 = vor.u32 %v473_v33, %v469_v26  ;;  %v295_v45 = vrot.slane %v293_v35, 5  ;;  %v309_v47 = vshll.u32 %v6351_v27, 16  ;;  %v6401_v28 = vld [vmem:[%s6257_s9 + $0x2c] sm:$0x1] }
  0x2e   : > { %v465_v49 = vrot.slane %v464_v39, 4  ;;  %v301_v50 = vrot.slane %v299_v41, 5  ;;  %v482_v51 = vshrl.u32 %v6358_v37, 16  ;;  %v485_v52 = vshll.u32 %v6358_v37, 16  ;;  %v6408_v39 = vld [vmem:[%s6257_s9 + $0x84] sm:$0xf] }
  0x2f   : > { %5661 = vmatmul.mubr.msk.bf16.vlgmr.msra.gmra.mxu0 %vm675_vm3, %v4901_v38  ;;  %v475_v53 = vrot.slane %v474_v44, 4  ;;  %v296_v55 = vor.u32 %v295_v45, %v292_v40  ;;  %v305_v56 = vrot.slane %v303_v46, 4  ;;  %v311_v57 = vrot.slane %v309_v47, 5  ;;  %v6415_v46 = vld [vmem:[%s6257_s9 + $0x88] sm:$0xf] }
  0x30   : > { %5727 = vmatpush3.bf16.msra.mxu0 %v6263_v5  ;;  %v470_v60 = vsel %vm6302_vm4, %v465_v49, %v469_v26  ;;  %v484_v61 = vrot.slane %v482_v51, 4  ;;  %v487_v1 = vrot.slane %v485_v52, 5  ;;  %v491_v2 = vshll.u32 %v6369_v48, 16 }
  0x31   : > { %5971 = vmatprep.subr.msk.bf16.mxu0 %vm724_vm0, %v6364_v43  ;;  %v480_v5 = vsel %vm6302_vm4, %v475_v53, %v479_v34  ;;  %v297_v9 = vrot.slane %v296_v55, 4  ;;  %v306_v11 = vor.u32 %v305_v56, %v301_v50  ;;  %v495_v12 = vshrl.u32 %v6369_v48, 16  ;;  %v6423_v55 = vld [vmem:[%s6257_s9 + $0x8c] sm:$0x1]  ;;  %v6554_v48 = vld [vmem:[%s6257_s9 + $0x5c] sm:$0x1] }
  0x32   : > { %v4909_v18 = vcombine.low %v470_v60, %v480_v5  ;;  %v488_v19 = vor.u32 %v487_v1, %v484_v61  ;;  %v493_v20 = vrot.slane %v491_v2, 5  ;;  %v501_v21 = vshll.u32 %v6376_v58, 16  ;;  %v6431_v2 = vld [vmem:[%s6257_s9 + $0x30] sm:$0xf] }
  0x33   : > { %v302_v24 = vsel %vm6302_vm4, %v297_v9, %v301_v50  ;;  %v307_v25 = vrot.slane %v306_v11, 4  ;;  %v497_v26 = vrot.slane %v495_v12, 4  ;;  %v314_v29 = vshrl.u32 %v6382_v3, 16 }
  0x34   : > { %5677 = vmatmul.mubr.msk.bf16.vlgmr.msra.gmra.mxu1 %vm675_vm3, %v4909_v18  ;;  %v489_v33 = vrot.slane %v488_v19, 4  ;;  %v503_v34 = vrot.slane %v501_v21, 5  ;;  %v317_v35 = vshll.u32 %v6382_v3, 16  ;;  %v323_v38 = vshll.u32 %v6390_v14, 16  ;;  %v6436_v18 = vld [vmem:[%s6257_s9 + $0x34] sm:$0xf] }
  0x35   : > { %5693 = vmatpush3.bf16.msra.mxu1 %v6260_v4  ;;  %v312_v40 = vsel %vm6302_vm4, %v307_v25, %v311_v57  ;;  %v498_v41 = vor.u32 %v497_v26, %v493_v20  ;;  %v316_v44 = vrot.slane %v314_v29, 4  ;;  %v327_v45 = vshrl.u32 %v6390_v14, 16 }
  0x36   : > { %v4902_v47 = vcombine.low %v302_v24, %v312_v40  ;;  %v494_v49 = vsel %vm6302_vm4, %v489_v33, %v493_v20  ;;  %v319_v50 = vrot.slane %v317_v35, 5  ;;  %v325_v51 = vrot.slane %v323_v38, 5  ;;  %5970 = vmatprep.subr.msk.bf16.mxu1 %vm724_vm0, %v6396_v22  ;;  %v6444_v38 = vld [vmem:[%s6257_s9 + $0x38] sm:$0x1] }
  0x37   : > { %v499_v4 = vrot.slane %v498_v41, 4  ;;  %v329_v52 = vrot.slane %v327_v45, 4  ;;  %v333_v53 = vshll.u32 %v6401_v28, 16  ;;  %v506_v56 = vshrl.u32 %v6408_v39, 16 }
  0x38   : > { %5664 = vmatprep.mubr.msk.bf16.mxu0 %vm675_vm3, %v4902_v47  ;;  %v320_v57 = vor.u32 %v319_v50, %v316_v44  ;;  %v509_v60 = vshll.u32 %v6408_v39, 16  ;;  %v515_v61 = vshll.u32 %v6415_v46, 16  ;;  %v519_v1 = vshrl.u32 %v6415_v46, 16  ;;  %v6449_v44 = vld [vmem:[%s6257_s9 + $0x90] sm:$0xf] }
  0x39   : > { %v504_v5 = vsel %vm6302_vm4, %v499_v4, %v503_v34  ;;  %v330_v9 = vor.u32 %v329_v52, %v325_v51  ;;  %v335_v11 = vrot.slane %v333_v53, 5  ;;  %v508_v12 = vrot.slane %v506_v56, 4  ;;  %v6454_v4 = vld [vmem:[%s6257_s9 + $0x94] sm:$0xf] }
  0x3a   : > { %v4910_v19 = vcombine.low %v494_v49, %v504_v5  ;;  %v321_v20 = vrot.slane %v320_v57, 4  ;;  %v511_v21 = vrot.slane %v509_v60, 5  ;;  %v517_v24 = vrot.slane %v515_v61, 5 }
  0x3b   : > { %v331_v25 = vrot.slane %v330_v9, 4  ;;  %v521_v26 = vrot.slane %v519_v1, 4  ;;  %v525_v29 = vshll.u32 %v6423_v55, 16  ;;  %v338_v33 = vshrl.u32 %v6431_v2, 16 }
  0x3c   : > { %5680 = vmatprep.mubr.msk.bf16.mxu1 %vm675_vm3, %v4910_v19  ;;  %v326_v34 = vsel %vm6302_vm4, %v321_v20, %v325_v51  ;;  %v512_v35 = vor.u32 %v511_v21, %v508_v12  ;;  %v341_v40 = vshll.u32 %v6431_v2, 16  ;;  %v347_v41 = vshll.u32 %v6436_v18, 16  ;;  %v6468_v20 = vld [vmem:[%s6257_s9 + $0x3c] sm:$0xf] }
  0x3d   : > { %v336_v45 = vsel %vm6302_vm4, %v331_v25, %v335_v11  ;;  %v522_v47 = vor.u32 %v521_v26, %v517_v24  ;;  %v527_v49 = vrot.slane %v525_v29, 5  ;;  %v340_v50 = vrot.slane %v338_v33, 4  ;;  %v6463_v11 = vld [vmem:[%s6257_s9 + $0x98] sm:$0x1]  ;;  %v6473_v33 = vld [vmem:[%s6257_s9 + $0x40] sm:$0xf] }
  0x3e   : > { %v4903_v51 = vcombine.low %v326_v34, %v336_v45  ;;  %v513_v52 = vrot.slane %v512_v35, 4  ;;  %v343_v53 = vrot.slane %v341_v40, 5  ;;  %v349_v56 = vrot.slane %v347_v41, 5 }
  0x3f   : > { %v523_v57 = vrot.slane %v522_v47, 4  ;;  %v351_v60 = vshrl.u32 %v6436_v18, 16  ;;  %v357_v61 = vshll.u32 %v6444_v38, 16  ;;  %v530_v1 = vshrl.u32 %v6449_v44, 16 }
  0x40   : > { %5665 = vmatmul.mubr.msk.bf16.gmra.mxu0 %vm675_vm3, %v4903_v51  ;;  %v518_v5 = vsel %vm6302_vm4, %v513_v52, %v517_v24  ;;  %v344_v9 = vor.u32 %v343_v53, %v340_v50  ;;  %v533_v12 = vshll.u32 %v6449_v44, 16  ;;  %v539_v19 = vshll.u32 %v6454_v4, 16  ;;  %v6482_v52 = vld [vmem:[%s6257_s9 + $0x44] sm:$0x1] }
  0x41   : > { %v528_v21 = vsel %vm6302_vm4, %v523_v57, %v527_v49  ;;  %v353_v25 = vrot.slane %v351_v60, 4  ;;  %v359_v26 = vrot.slane %v357_v61, 5  ;;  %v532_v29 = vrot.slane %v530_v1, 4  ;;  %v6487_v60 = vld [vmem:[%s6257_s9 + $0x9c] sm:$0xf] }
  0x42   : > { %v4911_v24 = vcombine.low %v518_v5, %v528_v21  ;;  %v345_v34 = vrot.slane %v344_v9, 4  ;;  %v535_v35 = vrot.slane %v533_v12, 5  ;;  %v541_v40 = vrot.slane %v539_v19, 5  ;;  %9144 = vst [vmem:[#allocation11_spill] sm:$0xff] %v6487_v60 }
  0x43   : > { %v354_v41 = vor.u32 %v353_v25, %v349_v56  ;;  %v543_v45 = vshrl.u32 %v6454_v4, 16  ;;  %v549_v47 = vshll.u32 %v6463_v11, 16  ;;  %v362_v50 = vshrl.u32 %v6468_v20, 16 }
  0x44   : > { %5681 = vmatmul.mubr.msk.bf16.gmra.mxu1 %vm675_vm3, %v4911_v24  ;;  %v350_v49 = vsel %vm6302_vm4, %v345_v34, %v349_v56  ;;  %v536_v51 = vor.u32 %v535_v35, %v532_v29  ;;  %v365_v53 = vshll.u32 %v6468_v20, 16  ;;  %v371_v57 = vshll.u32 %v6473_v33, 16  ;;  %v6494_v34 = vld [vmem:[%s6257_s9 + $0xa0] sm:$0xf] }
  0x45   : > { %v355_v61 = vrot.slane %v354_v41, 4  ;;  %v545_v1 = vrot.slane %v543_v45, 4  ;;  %v551_v5 = vrot.slane %v549_v47, 5  ;;  %v364_v9 = vrot.slane %v362_v50, 4 }
  0x46   : > { %v537_v12 = vrot.slane %v536_v51, 4  ;;  %v367_v19 = vrot.slane %v365_v53, 5  ;;  %v373_v21 = vrot.slane %v371_v57, 5  ;;  %v375_v56 = vshrl.u32 %v6473_v33, 16  ;;  %v6500_v51 = vld [vmem:[%s6257_s9 + $0xa4] sm:$0x1] }
  0x47   : > { %v360_v25 = vsel %vm6302_vm4, %v355_v61, %v359_v26  ;;  %v546_v29 = vor.u32 %v545_v1, %v541_v40  ;;  %v381_v24 = vshll.u32 %v6482_v52, 16  ;;  %v554_v35 = vshrl.u32 %v6487_v60, 16  ;;  %9145 = vst [vmem:[#allocation12_spill] sm:$0xff] %v6500_v51  ;;  %v6503_v53 = vld [vmem:[%s6257_s9 + $0x48] sm:$0xf] }
  0x48   : > { %v4904_v41 = vcombine.low %v350_v49, %v360_v25  ;;  %v542_v45 = vsel %vm6302_vm4, %v537_v12, %v541_v40  ;;  %v368_v47 = vor.u32 %v367_v19, %v364_v9  ;;  %v377_v50 = vrot.slane %v375_v56, 4  ;;  %v6513_v56 = vld [vmem:[%s6257_s9 + $0x4c] sm:$0xf] }
  0x49   : > { %v547_v57 = vrot.slane %v546_v29, 4  ;;  %v383_v26 = vrot.slane %v381_v24, 5  ;;  %v556_v61 = vrot.slane %v554_v35, 4  ;;  %v557_v1 = vshll.u32 %v6487_v60, 16 }
  0x4a   : > { %5668 = vmatprep.mubr.msk.bf16.mxu0 %vm675_vm3, %v4904_v41  ;;  %v369_v36 = vrot.slane %v368_v47, 4  ;;  %v378_v49 = vor.u32 %v377_v50, %v373_v21  ;;  %v563_v25 = vshll.u32 %v6494_v34, 16  ;;  %v567_v40 = vshrl.u32 %v6494_v34, 16  ;;  %v6519_v50 = vld [vmem:[%s6257_s9 + $0x50] sm:$0x1] }
  0x4b   : > { %v552_v9 = vsel %vm6302_vm4, %v547_v57, %v551_v5  ;;  %v559_v12 = vrot.slane %v557_v1, 5  ;;  %v573_v19 = vshll.u32 %v6500_v51, 16  ;;  %v386_v29 = vshrl.u32 %v6503_v53, 16  ;;  %v6522_v57 = vld [vmem:[%s6257_s9 + $0xa8] sm:$0xf] }
  0x4c   : > { %v4912_v24 = vcombine.low %v542_v45, %v552_v9  ;;  %v374_v35 = vsel %vm6302_vm4, %v369_v36, %v373_v21  ;;  %v379_v41 = vrot.slane %v378_v49, 4  ;;  %v565_v47 = vrot.slane %v563_v25, 5  ;;  %9146 = vst [vmem:[#allocation13_spill] sm:$0xff] %v6522_v57  ;;  %v6532_v9 = vld [vmem:[%s6257_s9 + $0xac] sm:$0xf] }
  0x4d   : > { %v560_v63 = vor.u32 %v559_v12, %v556_v61  ;;  %v569_v15 = vrot.slane %v567_v40, 4  ;;  %v575_v62 = vrot.slane %v573_v19, 5  ;;  %v388_v5 = vrot.slane %v386_v29, 4  ;;  %9147 = vst [vmem:[#allocation14_spill] sm:$0xff] %v6532_v9 }
  0x4e   : > { %5684 = vmatprep.mubr.msk.bf16.mxu1 %vm675_vm3, %v4912_v24  ;;  %v384_v45 = vsel %vm6302_vm4, %v379_v41, %v383_v26  ;;  %v389_v1 = vshll.u32 %v6503_v53, 16  ;;  %v395_v36 = vshll.u32 %v6513_v56, 16  ;;  %v399_v21 = vshrl.u32 %v6513_v56, 16  ;;  %v6535_v24 = vld [vmem:[%s6257_s9 + $0xb0] sm:$0x1] }
  0x4f   : > { %v4905_v49 = vcombine.low %v374_v35, %v384_v45  ;;  %v561_v25 = vrot.slane %v560_v63, 4  ;;  %v570_v61 = vor.u32 %v569_v15, %v565_v47  ;;  %v405_v40 = vshll.u32 %v6519_v50, 16  ;;  %9148 = vst [vmem:[#allocation15_spill] sm:$0xff] %v6535_v24 }
  0x50   : > { %v391_v12 = vrot.slane %v389_v1, 5  ;;  %v397_v19 = vrot.slane %v395_v36, 5  ;;  %v401_v29 = vrot.slane %v399_v21, 4  ;;  %v578_v26 = vshrl.u32 %v6522_v57, 16  ;;  %v6544_v36 = vld [vmem:[%s6257_s9 + $0x54] sm:$0xf] }
  0x51   : > { %5669 = vmatmul.mubr.msk.bf16.gmra.mxu0 %vm675_vm3, %v4905_v49  ;;  %v566_v35 = vsel %vm6302_vm4, %v561_v25, %v565_v47  ;;  %v571_v63 = vrot.slane %v570_v61, 4  ;;  %v407_v15 = vrot.slane %v405_v40, 5  ;;  %v581_v41 = vshll.u32 %v6522_v57, 16  ;;  %v6551_v61 = vld [vmem:[%s6257_s9 + $0x58] sm:$0xf] }
  0x52   : > { %v392_v45 = vor.u32 %v391_v12, %v388_v5  ;;  %v402_v58 = vor.u32 %v401_v29, %v397_v19  ;;  %v580_v37 = vrot.slane %v578_v26, 4  ;;  %v587_v1 = vshll.u32 %v6532_v9, 16 }
  0x53   : > { %v576_v21 = vsel %vm6302_vm4, %v571_v63, %v575_v62  ;;  %v583_v49 = vrot.slane %v581_v41, 5  ;;  %v591_v47 = vshrl.u32 %v6532_v9, 16  ;;  %v597_v25 = vshll.u32 %v6535_v24, 16  ;;  %v6578_v24 = vld [vmem:[%s6257_s9 + $0xbc] sm:$0x1] }
  0x54   : > { %v4913_v5 = vcombine.low %v566_v35, %v576_v21  ;;  %v393_v40 = vrot.slane %v392_v45, 4  ;;  %v403_v12 = vrot.slane %v402_v58, 4  ;;  %v589_v29 = vrot.slane %v587_v1, 5  ;;  %v6565_v45 = vld [vmem:[%s6257_s9 + $0xb4] sm:$0xf] }
  0x55   : > { %v584_v26 = vor.u32 %v583_v49, %v580_v37  ;;  %v593_v0 = vrot.slane %v591_v47, 4  ;;  %v599_v54 = vrot.slane %v597_v25, 5  ;;  %v410_v62 = vshrl.u32 %v6544_v36, 16  ;;  %9149 = vst [vmem:[#allocation16_spill] sm:$0xff] %v6565_v45  ;;  %v6568_v47 = vld [vmem:[%s6257_s9 + $0xb8] sm:$0xf] }
  0x56   : > { %5685 = vmatmul.mubr.msk.bf16.gmra.mxu1 %vm675_vm3, %v4913_v5  ;;  %v398_v63 = vsel %vm6302_vm4, %v393_v40, %v397_v19  ;;  %v408_v41 = vsel %vm6302_vm4, %v403_v12, %v407_v15  ;;  %v413_v35 = vshll.u32 %v6544_v36, 16  ;;  %v419_v58 = vshll.u32 %v6551_v61, 16 }
  0x57   : > { %v4906_v37 = vcombine.low %v398_v63, %v408_v41  ;;  %v585_v1 = vrot.slane %v584_v26, 4  ;;  %v594_v21 = vor.u32 %v593_v0, %v589_v29  ;;  %v412_v49 = vrot.slane %v410_v62, 4 }
  0x58   : > { %v415_v25 = vrot.slane %v413_v35, 5  ;;  %v421_v5 = vrot.slane %v419_v58, 5  ;;  %v423_v19 = vshrl.u32 %v6551_v61, 16  ;;  %v429_v40 = vshll.u32 %v6554_v48, 16 }
  0x59   : > { %5672 = vmatprep.mubr.msk.bf16.mxu0 %vm675_vm3, %v4906_v37  ;;  %v590_v15 = vsel %vm6302_vm4, %v585_v1, %v589_v29  ;;  %v595_v12 = vrot.slane %v594_v21, 4  ;;  %v602_v63 = vshrl.u32 %v6565_v45, 16  ;;  %v605_v26 = vshll.u32 %v6565_v45, 16 }
  0x5a   : > { %v416_v0 = vor.u32 %v415_v25, %v412_v49  ;;  %v425_v62 = vrot.slane %v423_v19, 4  ;;  %v431_v41 = vrot.slane %v429_v40, 5  ;;  %v611_v35 = vshll.u32 %v6568_v47, 16 }
  0x5b   : > { %v600_v58 = vsel %vm6302_vm4, %v595_v12, %v599_v54  ;;  %v604_v57 = vrot.slane %v602_v63, 4  ;;  %v607_v37 = vrot.slane %v605_v26, 5  ;;  %v615_v9 = vshrl.u32 %v6568_v47, 16 }
  0x5c   : > { %v4914_v29 = vcombine.low %v590_v15, %v600_v58  ;;  %v417_v1 = vrot.slane %v416_v0, 4  ;;  %v426_v21 = vor.u32 %v425_v62, %v421_v5  ;;  %v613_v51 = vrot.slane %v611_v35, 5 }
  0x5d   : > { %v608_v60 = vor.u32 %v607_v37, %v604_v57  ;;  %v617_v45 = vrot.slane %v615_v9, 4  ;;  %v621_v49 = vshll.u32 %v6578_v24, 16  ;;  %v9150_v25 = vmov 0 }
  0x5e   : > { %v9151_v25 = vsel %vm6587_vm7, 4294967295, %v9150_v25  ;;  %v4964_v54 = vrot.slane %v6266_v6, 9  ;;  %5688 = vmatprep.mubr.msk.bf16.mxu1 %vm675_vm3, %v4914_v29  ;;  %v422_v19 = vsel %vm6302_vm4, %v417_v1, %v421_v5  ;;  %v427_v40 = vrot.slane %v426_v21, 4 }
  0x5f   : > { %9152 = vst [vmem:[#allocation17_spill] sm:$0xff] %v9151_v25  ;;  %v1202_v15 = vrot.slane %v6269_v7, 5  ;;  %v4933_v57 = vcombine.low %v6295_v30, %v6298_v31  ;;  %v609_v9 = vrot.slane %v608_v60, 4  ;;  %v618_v12 = vor.u32 %v617_v45, %v613_v51 }
  0x60   : > { %v623_v63 = vrot.slane %v621_v49, 5  ;;  %v4965_v26 = vrot.slane %v6295_v30, 9  ;;  %v432_v0 = vsel %vm6302_vm4, %v427_v40, %v431_v41  ;;  %v9153_v5 = vrot.slane %v6298_v31, 5 }
  0x61   : > { %v1203_v62 = vsel %vm6587_vm7, %v4964_v54, %v1202_v15  ;;  %v1204_v35 = vrot.slane %v1202_v15, 4  ;;  %v4907_v37 = vcombine.low %v422_v19, %v432_v0  ;;  %v614_v29 = vsel %vm6302_vm4, %v609_v9, %v613_v51 }
  0x62   : > { %v1211_v58 = vrot.slane %v9153_v5, 4  ;;  %v619_v1 = vrot.slane %v618_v12, 4  ;;  %v9154_v60 = vmov %v9153_v5  ;;  %v9155_v45 = vrot.slane %v6272_v8, 5 }
  0x63   : > { %v1210_v30 = vsel %vm6587_vm7, %v4965_v26, %v9154_v60  ;;  %v9156_v21 = vrot.slane %v6309_v42, 5  ;;  %v4934_v54 = vcombine.low %v6338_v10, %v6345_v23  ;;  %v4966_v51 = vrot.slane %v6338_v10, 9  ;;  %5673 = vmatmul.mubr.msk.bf16.gmra.mxu0 %vm675_vm3, %v4907_v37 }
  0x64   : > { %v1206_v41 = vsel %vm6587_vm7, %v1204_v35, %v9155_v45  ;;  %v624_v31 = vsel %vm6302_vm4, %v619_v1, %v623_v63  ;;  %v1216_v40 = vrot.slane %v6345_v23, 5  ;;  %v1219_v42 = vrot.slane %v6351_v27, 5 }
  0x65   : > { %v1213_v49 = vsel %vm6587_vm7, %v1211_v58, %v9156_v21  ;;  %v4981_v19 = vcombine.low %v1203_v62, %v1206_v41  ;;  %v4915_v15 = vcombine.low %v614_v29, %v624_v31  ;;  %v1223_v10 = vrot.slane %v6390_v14, 5  ;;  %v6671_v31 = vld [vmem:[%s9063_s1 + $0xa] sm:$0x3] }
  0x66   : > { %v4982_v8 = vcombine.low %v1210_v30, %v1213_v49  ;;  %v1217_v9 = vsel %vm6587_vm7, %v4966_v51, %v1216_v40  ;;  %v1218_v12 = vrot.slane %v1216_v40, 4  ;;  %v4967_v26 = vrot.slane %v6382_v3, 9 }
  0x67   : > { %5728 = vmatprep.mubr.msk.bf16.mxu0 %vm675_vm3, %v4981_v19  ;;  %5689 = vmatmul.mubr.msk.bf16.gmra.mxu1 %vm675_vm3, %v4915_v15  ;;  %v4968_v63 = vrot.slane %v6431_v2, 9  ;;  %v1230_v0 = vrot.slane %v6436_v18, 5  ;;  %v9157_v23 = vcombine.low %v6266_v6, %v6269_v7  ;;  %v1225_v62 = vrot.slane %v1223_v10, 4 }
  0x68   : > { %v1220_v27 = vsel %vm6587_vm7, %v1218_v12, %v1219_v42  ;;  %v1226_v35 = vrot.slane %v6401_v28, 5  ;;  %v1233_v5 = vrot.slane %v6444_v38, 5  ;;  %v2467_v29 = vsel %vm724_vm0, %v6364_v43, 0  ;;  %v6656_v38 = vld [vmem:[%s9063_s1 + $0xc] sm:$0x3] }
  0x69   : > { %5694 = vmatprep.mubr.msk.bf16.mxu1 %vm675_vm3, %v9157_v23  ;;  %v4983_v58 = vcombine.low %v1217_v9, %v1220_v27  ;;  %v1232_v37 = vrot.slane %v1230_v0, 4  ;;  %v1237_v1 = vrot.slane %v6473_v33, 5  ;;  %v1789_v6 = vsel %vm724_vm0, %v6396_v22, 0 }
  0x6a   : > { %v1224_v7 = vsel %vm6587_vm7, %v4967_v26, %v1223_v10  ;;  %v1231_v60 = vsel %vm6587_vm7, %v4968_v63, %v1230_v0  ;;  %v1244_v28 = vrot.slane %v6513_v56, 5  ;;  %v1227_v43 = vsel %vm6587_vm7, %v1225_v62, %v1226_v35 }
  0x6b   : > { %5729 = vmatmul.mubr.msk.bf16.vlgmr.msra.gmra.mxu0 %vm675_vm3, %v4982_v8  ;;  %v1234_v22 = vsel %vm6587_vm7, %v1232_v37, %v1233_v5  ;;  %v4969_v30 = vrot.slane %v6468_v20, 9  ;;  %v1240_v45 = vrot.slane %v6482_v52, 5  ;;  %v1239_v41 = vrot.slane %v1237_v1, 4 }
  0x6c   : > { %5795 = vmatpush3.bf16.msra.mxu0 %v2467_v29  ;;  %5732 = vmatprep.mubr.msk.bf16.mxu0 %vm675_vm3, %v4983_v58  ;;  %v4970_v21 = vrot.slane %v6503_v53, 9  ;;  %v1246_v49 = vrot.slane %v1244_v28, 4  ;;  %v1247_v51 = vrot.slane %v6519_v50, 5  ;;  %v4984_v52 = vcombine.low %v1224_v7, %v1227_v43  ;;  %v9158_v29 = vld [vmem:[#allocation11_spill] sm:$0xff] }
  0x6d   : > { %5973 = vmatprep.subr.msk.bf16.mxu0 %vm724_vm0, %v6656_v38  ;;  %v4985_v19 = vcombine.low %v1231_v60, %v1234_v22  ;;  %v1238_v8 = vsel %vm6587_vm7, %v4969_v30, %v1237_v1  ;;  %v1241_v50 = vsel %vm6587_vm7, %v1239_v41, %v1240_v45  ;;  %v1251_v42 = vrot.slane %v6551_v61, 5  ;;  %v9159_v30 = vld [vmem:[#allocation12_spill] sm:$0xff]  ;;  %v9160_v41 = vld [vmem:[#allocation14_spill] sm:$0xff] }
  0x6e   : > { %v1245_v40 = vsel %vm6587_vm7, %v4970_v21, %v1244_v28  ;;  %v1248_v15 = vsel %vm6587_vm7, %v1246_v49, %v1247_v51  ;;  %v4972_v9 = vrot.slane %v6279_v13, 9  ;;  %v1258_v12 = vrot.slane %v6284_v16, 5  ;;  %v9161_v21 = vld [vmem:[#allocation13_spill] sm:$0xff]  ;;  %v6884_v49 = vld [vmem:[%s6257_s9 + $0x2c] sm:$0x1] }
  0x6f   : > { %5695 = vmatmul.mubr.msk.bf16.vlgmr.msra.gmra.mxu1 %vm675_vm3, %v4933_v57  ;;  %v1261_v57 = vrot.slane %v6287_v17, 5  ;;  %v4935_v10 = vcombine.low %v6382_v3, %v6390_v14  ;;  %v4936_v26 = vcombine.low %v6431_v2, %v6436_v18  ;;  %v4937_v63 = vcombine.low %v6468_v20, %v6473_v33 }
  0x70   : > { %5761 = vmatpush3.bf16.msra.mxu1 %v1789_v6  ;;  %5698 = vmatprep.mubr.msk.bf16.mxu1 %vm675_vm3, %v4934_v54  ;;  %v4971_v54 = vrot.slane %v6544_v36, 9  ;;  %v4938_v0 = vcombine.low %v6503_v53, %v6513_v56  ;;  %v4986_v17 = vcombine.low %v1238_v8, %v1241_v50  ;;  %v4987_v23 = vcombine.low %v1245_v40, %v1248_v15  ;;  %v9162_v8 = vld [vmem:[#allocation15_spill] sm:$0xff] }
  0x71   : > { %5972 = vmatprep.subr.msk.bf16.mxu1 %vm724_vm0, %v6671_v31  ;;  %v1254_v27 = vrot.slane %v6554_v48, 5  ;;  %v1253_v3 = vrot.slane %v1251_v42, 4  ;;  %v4975_v14 = vrot.slane %v6408_v39, 9  ;;  %v1279_v2 = vrot.slane %v6415_v46, 5 }
  0x72   : > { %v1282_v18 = vrot.slane %v6423_v55, 5  ;;  %v1252_v20 = vsel %vm6587_vm7, %v4971_v54, %v1251_v42  ;;  %v1259_v33 = vsel %vm6587_vm7, %v4972_v9, %v1258_v12  ;;  %v1260_v53 = vrot.slane %v1258_v12, 4  ;;  %v9163_v54 = vld [vmem:[#allocation16_spill] sm:$0xff] }
  0x73   : > { %5733 = vmatmul.mubr.msk.bf16.gmra.mxu0 %vm675_vm3, %v4984_v52  ;;  %v6717_v56 = vsel %vm6587_vm7, %v4975_v14, %v1279_v2  ;;  %v1281_v35 = vrot.slane %v1279_v2, 4  ;;  %v4976_v5 = vrot.slane %v6449_v44, 9  ;;  %v1286_v55 = vrot.slane %v6454_v4, 5 }
  0x74   : > { %5736 = vmatprep.mubr.msk.bf16.mxu0 %vm675_vm3, %v4985_v19  ;;  %v1265_v58 = vrot.slane %v6324_v59, 5  ;;  %v1289_v37 = vrot.slane %v6463_v11, 5  ;;  %v4977_v6 = vrot.slane %v9158_v29, 9  ;;  %v1255_v7 = vsel %vm6587_vm7, %v1253_v3, %v1254_v27  ;;  %v9164_v3 = vld [vmem:[#allocation9_spill] sm:$0xff] }
  0x75   : > { %v6731_v60 = vsel %vm6587_vm7, %v1281_v35, %v1282_v18  ;;  %v6735_v28 = vsel %vm6587_vm7, %v4976_v5, %v1286_v55  ;;  %v1288_v43 = vrot.slane %v1286_v55, 4  ;;  %v1293_v22 = vrot.slane %v6494_v34, 5  ;;  %v6890_v11 = vld [vmem:[%s6257_s9 + $0x40] sm:$0xf] }
  0x76   : > { %v1296_v45 = vrot.slane %v9159_v30, 5  ;;  %v4978_v52 = vrot.slane %v9161_v21, 9  ;;  %v1300_v19 = vrot.slane %v9160_v41, 5  ;;  %v1303_v50 = vrot.slane %v9162_v8, 5  ;;  %v9168_v8 = vld [vmem:[#allocation10_spill] sm:$0xff]  ;;  %9172 = vst [vmem:[#allocation13_spill] sm:$0xff] %v6890_v11 }
  0x77   : > { %5699 = vmatmul.mubr.msk.bf16.gmra.mxu1 %vm675_vm3, %v4935_v10  ;;  %v6745_v51 = vsel %vm6587_vm7, %v1288_v43, %v1289_v37  ;;  %v6755_v15 = vsel %vm6587_vm7, %v4977_v6, %v1293_v22  ;;  %v1295_v42 = vrot.slane %v1293_v22, 4  ;;  %v1262_v27 = vsel %vm6587_vm7, %v1260_v53, %v1261_v57  ;;  %v9166_v43 = vld [vmem:[#allocation7_spill] sm:$0xff] }
  0x78   : > { %5702 = vmatprep.mubr.msk.bf16.mxu1 %vm675_vm3, %v4936_v26  ;;  %v6762_v12 = vsel %vm6587_vm7, %v4978_v52, %v1300_v19  ;;  %v1302_v10 = vrot.slane %v1300_v19, 4  ;;  %v4979_v26 = vrot.slane %v9163_v54, 9  ;;  %v1272_v14 = vrot.slane %v9164_v3, 5 }
  0x79   : > { %v6771_v2 = vsel %vm6587_vm7, %v1295_v42, %v1296_v45  ;;  %v4988_v5 = vcombine.low %v1252_v20, %v1255_v7  ;;  %v4989_v37 = vcombine.low %v1259_v33, %v1262_v27  ;;  %v1267_v6 = vrot.slane %v1265_v58, 4  ;;  %v9167_v45 = vld [vmem:[#allocation8_spill] sm:$0xff]  ;;  %v6801_v7 = vld [vmem:[%s6257_s9 + $0xc] sm:$0xf]  ;;  %v6807_v42 = vld [vmem:[%s6257_s9 + $0x10] sm:$0xf] }
  0x7a   : > { %v6779_v35 = vsel %vm6587_vm7, %v1302_v10, %v1303_v50  ;;  %v1268_v22 = vrot.slane %v9166_v43, 5  ;;  %v4974_v52 = vrot.slane %v9167_v45, 9  ;;  %v1274_v19 = vrot.slane %v1272_v14, 4  ;;  %v6823_v27 = vld [vmem:[%s6257_s9 + $0x14] sm:$0x1] }
  0x7b   : > { %5737 = vmatmul.mubr.msk.bf16.gmra.mxu0 %vm675_vm3, %v4986_v17  ;;  %v1307_v17 = vrot.slane %v6568_v47, 5  ;;  %v4939_v33 = vcombine.low %v6544_v36, %v6551_v61  ;;  %v4940_v50 = vcombine.low %v6279_v13, %v6284_v16  ;;  %v1985_v13 = vshrl.u32 %v6801_v7, 16  ;;  %9169 = vst [vmem:[#allocation11_spill] sm:$0xff] %v6823_v27 }
  0x7c   : > { %5740 = vmatprep.mubr.msk.bf16.mxu0 %vm675_vm3, %v4987_v23  ;;  %v1310_v23 = vrot.slane %v6578_v24, 5  ;;  %v9165_v24 = vld [vmem:[#allocation6_spill] sm:$0xff]  ;;  %v1273_v36 = vsel %vm6587_vm7, %v4974_v52, %v1272_v14  ;;  %v1988_v16 = vshll.u32 %v6801_v7, 16  ;;  %v2004_v43 = vshll.u32 %v6823_v27, 16 }
  0x7d   : > { %v6783_v57 = vsel %vm6587_vm7, %v4979_v26, %v1307_v17  ;;  %v1309_v53 = vrot.slane %v1307_v17, 4  ;;  %v4973_v55 = vrot.slane %v9165_v24, 9  ;;  %v1269_v26 = vsel %vm6587_vm7, %v1267_v6, %v1268_v22  ;;  %v6839_v52 = vld [vmem:[%s6257_s9 + $0x28] sm:$0xf] }
  0x7e   : > { %v1998_v17 = vshrl.u32 %v6807_v42, 16  ;;  %v1990_v6 = vrot.slane %v1988_v16, 5  ;;  %v9175_v27 = vcombine.low %v6735_v28, %v6745_v51  ;;  %v9176_v28 = vcombine.low %v6408_v39, %v6415_v46 }
  0x7f   : > { %5703 = vmatmul.mubr.msk.bf16.gmra.mxu1 %vm675_vm3, %v4937_v63  ;;  %v6792_v30 = vsel %vm6587_vm7, %v1309_v53, %v1310_v23  ;;  %v1266_v10 = vsel %vm6587_vm7, %v4973_v55, %v1265_v58  ;;  %v6826_v58 = vld [vmem:[%s6257_s9 + $0x18] sm:$0xf]  ;;  %v1994_v23 = vshll.u32 %v6807_v42, 16  ;;  %v6834_v55 = vld [vmem:[%s6257_s9 + $0x24] sm:$0xf] }
  0x80   : > { %5706 = vmatprep.mubr.msk.bf16.mxu1 %vm675_vm3, %v4938_v0  ;;  %v1275_v0 = vrot.slane %v9168_v8, 5  ;;  %v4990_v14 = vcombine.low %v1266_v10, %v1269_v26  ;;  %v2009_v22 = vshrl.u32 %v6826_v58, 16  ;;  %v4942_v8 = vcombine.low %v9167_v45, %v9164_v3 }
  0x81   : > { %v6851_v10 = vrot.slane %v1994_v23, 5  ;;  %v2012_v26 = vshll.u32 %v6826_v58, 16  ;;  %v2033_v3 = vshrl.u32 %v6834_v55, 16  ;;  %v2036_v45 = vshll.u32 %v6834_v55, 16  ;;  %v6869_v23 = vld [vmem:[%s6257_s9 + $0x20] sm:$0x1] }
  0x82   : > { %v1276_v61 = vsel %vm6587_vm7, %v1274_v19, %v1275_v0  ;;  %v4941_v19 = vcombine.low %v9165_v24, %v6324_v59  ;;  %v6857_v24 = vld [vmem:[%s6257_s9 + $0x34] sm:$0xf]  ;;  %9170 = vst [vmem:[#allocation12_spill] sm:$0xff] %v6869_v23  ;;  %v2011_v0 = vrot.slane %v2009_v22, 4  ;;  %v2028_v40 = vshll.u32 %v6869_v23, 16 }
  0x83   : > { %5741 = vmatmul.mubr.msk.bf16.gmra.mxu0 %vm675_vm3, %v4988_v5  ;;  %v4991_v53 = vcombine.low %v1273_v36, %v1276_v61  ;;  %v6831_v5 = vld [vmem:[%s6257_s9 + $0x1c] sm:$0xf]  ;;  %v2046_v61 = vshrl.u32 %v6839_v52, 16  ;;  %v2070_v20 = vshrl.u32 %v6857_v24, 16  ;;  %v2035_v1 = vrot.slane %v2033_v3, 4 }
  0x84   : > { %5744 = vmatprep.mubr.msk.bf16.mxu0 %vm675_vm3, %v4989_v37  ;;  %v1987_v37 = vrot.slane %v1985_v13, 4  ;;  %v2022_v36 = vshrl.u32 %v6831_v5, 16  ;;  %v2018_v59 = vshll.u32 %v6831_v5, 16  ;;  %v2042_v13 = vshll.u32 %v6839_v52, 16 }
  0x85   : > { %v2038_v63 = vrot.slane %v2036_v45, 5  ;;  %v2048_v48 = vrot.slane %v2046_v61, 4  ;;  %v2072_v3 = vrot.slane %v2070_v20, 4  ;;  %v9174_v45 = vcombine.low %v6717_v56, %v6731_v60 }
  0x86   : > { %v1991_v16 = vor.u32 %v1990_v6, %v1987_v37  ;;  %v2066_v37 = vshll.u32 %v6857_v24, 16  ;;  %v6877_v6 = vld [vmem:[%s6257_s9 + $0x3c] sm:$0xf]  ;;  %v6881_v22 = vrot.slane %v2018_v59, 5  ;;  %v6886_v18 = vrot.slane %v2042_v13, 5 }
  0x87   : > { %5707 = vmatmul.mubr.msk.bf16.gmra.mxu1 %vm675_vm3, %v4939_v33  ;;  %v2000_v33 = vrot.slane %v1998_v17, 4  ;;  %v6864_v17 = vrot.slane %v2004_v43, 5  ;;  %9171 = vst [vmem:[#allocation14_spill] sm:$0xff] %v6877_v6  ;;  %v2052_v23 = vshll.u32 %v6884_v49, 16  ;;  %v2090_v56 = vshll.u32 %v6890_v11, 16 }
  0x88   : > { %5710 = vmatprep.mubr.msk.bf16.mxu1 %vm675_vm3, %v4940_v50  ;;  %v6848_v50 = vld [vmem:[%s6257_s9 + $0x30] sm:$0xf]  ;;  %v1992_v62 = vrot.slane %v1991_v16, 4  ;;  %v6897_v25 = vrot.slane %v2066_v37, 5  ;;  %v2049_v20 = vor.u32 %v2048_v48, %v6886_v18  ;;  %v6914_v60 = vsel %vm724_vm0, %v6671_v31, 0 }
  0x89   : > { %v2060_v9 = vshll.u32 %v6848_v50, 16  ;;  %v2001_v43 = vor.u32 %v2000_v33, %v6851_v10  ;;  %v2084_v33 = vshll.u32 %v6877_v6, 16  ;;  %v6926_v31 = vld [vmem:[%s6257_s9 + $0x48] sm:$0xf] }
  0x8a   : > { %v1997_v48 = vsel %vm6302_vm4, %v1992_v62, %v6851_v10  ;;  %9177 = vst [vmem:[#allocation16_spill] sm:$0xff] %v6926_v31  ;;  %v6936_v62 = vld [vmem:[%s6257_s9 + $0x4c] sm:$0xf]  ;;  %v2050_v10 = vrot.slane %v2049_v20, 4  ;;  %v6958_v20 = vsel %vm724_vm0, %v6656_v38, 0 }
  0x8b   : > { %5745 = vmatmul.mubr.msk.bf16.gmra.mxu0 %vm675_vm3, %v4990_v14  ;;  %v2014_v14 = vrot.slane %v2012_v26, 5  ;;  %v6895_v26 = vld [vmem:[%s6257_s9 + $0x38] sm:$0x1]  ;;  %v2002_v61 = vrot.slane %v2001_v43, 4  ;;  %v2086_v37 = vrot.slane %v2084_v33, 5  ;;  %9179 = vst [vmem:[#allocation9_spill] sm:$0xff] %v6936_v62 }
  0x8c   : > { %5748 = vmatprep.mubr.msk.bf16.mxu0 %vm675_vm3, %v4991_v53  ;;  %v2057_v53 = vshrl.u32 %v6848_v50, 16  ;;  %9173 = vst [vmem:[#allocation15_spill] sm:$0xff] %v6895_v26 }
  0x8d   : > { %v2015_v13 = vor.u32 %v2014_v14, %v2011_v0  ;;  %v2076_v0 = vshll.u32 %v6895_v26, 16  ;;  %v2007_v39 = vsel %vm6302_vm4, %v2002_v61, %v6864_v17  ;;  %v2114_v61 = vshll.u32 %v6936_v62, 16  ;;  %v7270_v26 = vld [vmem:[%s6257_s9 + $0xc0] sm:$0xf] }
  0x8e   : > { %v2059_v59 = vrot.slane %v2057_v53, 4  ;;  %v2094_v53 = vshrl.u32 %v6890_v11, 16 }
  0x8f   : > { %5711 = vmatmul.mubr.msk.bf16.gmra.mxu1 %vm675_vm3, %v4941_v19  ;;  %v2024_v19 = vrot.slane %v2022_v36, 4  ;;  %v2062_v36 = vrot.slane %v2060_v9, 5  ;;  %v2039_v9 = vor.u32 %v2038_v63, %v2035_v1  ;;  %v2030_v1 = vrot.slane %v2028_v40, 5 }
  0x90   : > { %5714 = vmatprep.mubr.msk.bf16.mxu1 %vm675_vm3, %v4942_v8  ;;  %v2081_v8 = vshrl.u32 %v6877_v6, 16  ;;  %v2073_v63 = vor.u32 %v2072_v3, %v6897_v25  ;;  %v2016_v46 = vrot.slane %v2015_v13, 4  ;;  %v2096_v33 = vrot.slane %v2094_v53, 4 }
  0x91   : > { %v2025_v16 = vor.u32 %v2024_v19, %v6881_v22  ;;  %v2063_v51 = vor.u32 %v2062_v36, %v2059_v59  ;;  %v2054_v19 = vrot.slane %v2052_v23, 5  ;;  %v2040_v40 = vrot.slane %v2039_v9, 4  ;;  %v6941_v36 = vld [vmem:[%s6257_s9 + $0x44] sm:$0x1] }
  0x92   : > { %v2083_v14 = vrot.slane %v2081_v8, 4  ;;  %v6938_v8 = vrot.slane %v2090_v56, 5  ;;  %v2078_v59 = vrot.slane %v2076_v0, 5  ;;  %9180 = vst [vmem:[#allocation6_spill] sm:$0xff] %v6941_v36  ;;  %v2108_v3 = vshll.u32 %v6926_v31, 16 }
  0x93   : > { %5749 = vmatmul.mubr.msk.bf16.gmra.mxu0 %vm675_vm3, %v9174_v45  ;;  %v2026_v43 = vrot.slane %v2025_v16, 4  ;;  %v2064_v45 = vrot.slane %v2063_v51, 4  ;;  %v2074_v17 = vrot.slane %v2073_v63, 4  ;;  %v2118_v23 = vshrl.u32 %v6936_v62, 16  ;;  %v6990_v63 = vld [vmem:[%s6257_s9 + $0x54] sm:$0xf] }
  0x94   : > { %5752 = vmatprep.mubr.msk.bf16.mxu0 %vm675_vm3, %v9175_v27  ;;  %v9178_v27 = vcombine.low %v6449_v44, %v6454_v4  ;;  %v2087_v44 = vor.u32 %v2086_v37, %v2083_v14  ;;  %v2105_v4 = vshrl.u32 %v6926_v31, 16  ;;  %v9181_v13 = vcombine.low %v6755_v15, %v6771_v2  ;;  %9185 = vst [vmem:[#allocation8_spill] sm:$0xff] %v6990_v63 }
  0x95   : > { %v2021_v16 = vsel %vm6302_vm4, %v2016_v46, %v6881_v22  ;;  %v2031_v9 = vsel %vm6302_vm4, %v2026_v43, %v2030_v1  ;;  %v5064_v53 = vcombine.low %v6834_v55, %v6839_v52  ;;  %v9182_v56 = vcombine.low %v6762_v12, %v6779_v35  ;;  %v6976_v12 = vld [vmem:[%s6257_s9 + $0x50] sm:$0x1]  ;;  %v7005_v46 = vld [vmem:[%s6257_s9 + $0x58] sm:$0xf]  ;;  %v7008_v43 = vld [vmem:[%s6257_s9 + $0x60] sm:$0xf] }
  0x96   : > { %v2045_v15 = vsel %vm6302_vm4, %v2040_v40, %v6886_v18  ;;  %v2055_v2 = vsel %vm6302_vm4, %v2050_v10, %v2054_v19  ;;  %v2097_v22 = vor.u32 %v2096_v33, %v6938_v8  ;;  %v2100_v38 = vshll.u32 %v6941_v36, 16  ;;  %9183 = vst [vmem:[#allocation7_spill] sm:$0xff] %v6976_v12  ;;  %9187 = vst [vmem:[#allocation10_spill] sm:$0xff] %v7005_v46  ;;  %v7014_v10 = vld [vmem:[%s6257_s9 + $0x64] sm:$0xf] }
  0x97   : > { %5715 = vmatmul.mubr.msk.bf16.gmra.mxu1 %vm675_vm3, %v9176_v28  ;;  %v5095_v0 = vcombine.low %v1997_v48, %v2007_v39  ;;  %v6973_v14 = vrot.slane %v2087_v44, 4  ;;  %v2107_v35 = vrot.slane %v2105_v4, 4  ;;  %v2110_v37 = vrot.slane %v2108_v3, 5  ;;  %9188 = vst [vmem:[#allocation18_spill] sm:$0xff] %v7008_v43  ;;  %9189 = vst [vmem:[#allocation19_spill] sm:$0xff] %v7014_v10 }
  0x98   : > { %5718 = vmatprep.mubr.msk.bf16.mxu1 %vm675_vm3, %v9178_v27  ;;  %v9184_v28 = vcombine.low %v9158_v29, %v6494_v34  ;;  %v2069_v18 = vsel %vm6302_vm4, %v2064_v45, %v6897_v25  ;;  %v2079_v48 = vsel %vm6302_vm4, %v2074_v17, %v2078_v59  ;;  %v6987_v1 = vrot.slane %v2114_v61, 5  ;;  %v7024_v3 = vld [vmem:[%s6257_s9 + $0x6c] sm:$0xf]  ;;  %v7236_v36 = vld [vmem:[%s6257_s9 + $0xb8] sm:$0xf] }
  0x99   : > { %v2120_v51 = vrot.slane %v2118_v23, 4  ;;  %v9186_v27 = vcombine.low %v9161_v21, %v9160_v41  ;;  %v6996_v34 = vcombine.low %v2021_v16, %v2031_v9  ;;  %v6998_v29 = vcombine.low %v2045_v15, %v2055_v2 }
  0x9a   : > { %v2098_v19 = vrot.slane %v2097_v22, 4  ;;  %v2102_v41 = vrot.slane %v2100_v38, 5  ;;  %v2124_v40 = vshll.u32 %v6976_v12, 16  ;;  %v7016_v33 = vcombine.low %v2069_v18, %v2079_v48 }
  0x9b   : > { %5753 = vmatmul.mubr.msk.bf16.gmra.mxu0 %vm675_vm3, %v9181_v13  ;;  %v2093_v59 = vsel %vm6302_vm4, %v6973_v14, %v6938_v8  ;;  %v2111_v44 = vor.u32 %v2110_v37, %v2107_v35  ;;  %v2129_v4 = vshrl.u32 %v6990_v63, 16  ;;  %v2121_v45 = vor.u32 %v2120_v51, %v6987_v1  ;;  %v7031_v13 = vld [vmem:[%s6257_s9 + $0x70] sm:$0xf]  ;;  %v7051_v14 = vld [vmem:[%s6257_s9 + $0x5c] sm:$0x1] }
  0x9c   : > { %5756 = vmatprep.mubr.msk.bf16.mxu0 %vm675_vm3, %v9182_v56  ;;  %v2132_v17 = vshll.u32 %v6990_v63, 16  ;;  %v2142_v23 = vshrl.u32 %v7005_v46, 16  ;;  %v2138_v61 = vshll.u32 %v7005_v46, 16  ;;  %v9190_v16 = vcombine.low %v6783_v57, %v6792_v30  ;;  %9191 = vst [vmem:[#allocation20_spill] sm:$0xff] %v7051_v14 }
  0x9d   : > { %v2153_v8 = vshrl.u32 %v7008_v43, 16  ;;  %v2156_v9 = vshll.u32 %v7008_v43, 16  ;;  %v2166_v56 = vshrl.u32 %v7014_v10, 16  ;;  %v2162_v15 = vshll.u32 %v7014_v10, 16 }
  0x9e   : > { %v2103_v2 = vsel %vm6302_vm4, %v2098_v19, %v2102_v41  ;;  %v7044_v22 = vrot.slane %v2124_v40, 5  ;;  %v2177_v57 = vshrl.u32 %v7024_v3, 16  ;;  %v2180_v30 = vshll.u32 %v7024_v3, 16  ;;  %v7067_v41 = vld [vmem:[%s6257_s9 + $0x7c] sm:$0xf] }
  0x9f   : > { %5719 = vmatmul.mubr.msk.bf16.gmra.mxu1 %vm675_vm3, %v9184_v28  ;;  %v7048_v38 = vrot.slane %v2111_v44, 4  ;;  %v2131_v35 = vrot.slane %v2129_v4, 4  ;;  %v2190_v37 = vshrl.u32 %v7031_v13, 16  ;;  %v7056_v28 = vld [vmem:[%s6257_s9 + $0x78] sm:$0xf]  ;;  %v9192_v18 = vcombine.low %v9163_v54, %v6568_v47 }
  0xa0   : > { %5722 = vmatprep.mubr.msk.bf16.mxu1 %vm675_vm3, %v9186_v27  ;;  %v7062_v48 = vrot.slane %v2121_v45, 4  ;;  %v2134_v51 = vrot.slane %v2132_v17, 5  ;;  %v7064_v27 = vrot.slane %v2138_v61, 5  ;;  %v2144_v19 = vrot.slane %v2142_v23, 4  ;;  %v7074_v44 = vld [vmem:[%s6257_s9 + $0x68] sm:$0x1] }
  0xa1   : > { %v9193_v40 = vcombine.low %v6801_v7, %v6807_v42  ;;  %9194 = vst [vmem:[#allocation21_spill] sm:$0xff] %v7074_v44  ;;  %v2155_v4 = vrot.slane %v2153_v8, 4  ;;  %v2158_v47 = vrot.slane %v2156_v9, 5  ;;  %v7076_v54 = vrot.slane %v2162_v15, 5  ;;  %v7081_v61 = vld [vmem:[%s6257_s9 + $0x74] sm:$0x1] }
  0xa2   : > { %v2179_v45 = vrot.slane %v2177_v57, 4  ;;  %v2201_v17 = vshrl.u32 %v7056_v28, 16  ;;  %v2204_v23 = vshll.u32 %v7056_v28, 16  ;;  %9195 = vst [vmem:[#allocation22_spill] sm:$0xff] %v7081_v61  ;;  %v2192_v39 = vrot.slane %v2190_v37, 4 }
  0xa3   : > { %5757 = vmatmul.mubr.msk.bf16.gmra.mxu0 %vm675_vm3, %v9190_v16  ;;  %v2168_v16 = vrot.slane %v2166_v56, 4  ;;  %v2210_v25 = vshll.u32 %v7067_v41, 16  ;;  %v2135_v8 = vor.u32 %v2134_v51, %v2131_v35  ;;  %v2145_v9 = vor.u32 %v2144_v19, %v7064_v27  ;;  %v7093_v57 = vld [vmem:[%s9063_s1 + $0x10] sm:$0x3]  ;;  %v7111_v19 = vld [vmem:[%s6257_s9 + $0x84] sm:$0xf] }
  0xa4   : > { %5796 = vmatprep.mubr.msk.bf16.mxu0 %vm675_vm3, %v5095_v0  ;;  %v2186_v0 = vshll.u32 %v7031_v13, 16  ;;  %v2148_v56 = vshll.u32 %v7051_v14, 16  ;;  %v2172_v15 = vshll.u32 %v7074_v44, 16  ;;  %v2117_v35 = vsel %vm6302_vm4, %v7048_v38, %v6987_v1 }
  0xa5   : > { %v2159_v37 = vor.u32 %v2158_v47, %v2155_v4  ;;  %v2206_v51 = vrot.slane %v2204_v23, 5  ;;  %v7114_v4 = vrot.slane %v2210_v25, 5  ;;  %v7117_v47 = vld [vmem:[%s6257_s9 + $0x88] sm:$0xf]  ;;  %v2225_v23 = vshrl.u32 %v7111_v19, 16 }
  0xa6   : > { %v7083_v21 = vrot.slane %v2186_v0, 5  ;;  %v2169_v0 = vor.u32 %v2168_v16, %v7076_v54  ;;  %v2150_v25 = vrot.slane %v2148_v56, 5  ;;  %v2174_v16 = vrot.slane %v2172_v15, 5 }
  0xa7   : > { %5723 = vmatmul.mubr.msk.bf16.gmra.mxu1 %vm675_vm3, %v9192_v18  ;;  %v2182_v18 = vrot.slane %v2180_v30, 5  ;;  %v5099_v30 = vcombine.low %v2093_v59, %v2103_v2  ;;  %v2196_v59 = vshll.u32 %v7081_v61, 16  ;;  %v2203_v2 = vrot.slane %v2201_v17, 4 }
  0xa8   : > { %5762 = vmatprep.mubr.msk.bf16.mxu1 %vm675_vm3, %v9193_v40  ;;  %v2214_v40 = vshrl.u32 %v7067_v41, 16  ;;  %v2193_v38 = vor.u32 %v2192_v39, %v7083_v21  ;;  %v2146_v39 = vrot.slane %v2145_v9, 4  ;;  %v2170_v17 = vrot.slane %v2169_v0, 4  ;;  %v7171_v0 = vld [vmem:[%s6257_s9 + $0x90] sm:$0xf] }
  0xa9   : > { %v2183_v1 = vor.u32 %v2182_v18, %v2179_v45  ;;  %v7131_v45 = vld [vmem:[%s6257_s9 + $0x80] sm:$0x1]  ;;  %v2160_v18 = vrot.slane %v2159_v37, 4  ;;  %v2238_v9 = vshrl.u32 %v7117_v47, 16  ;;  %v2234_v56 = vshll.u32 %v7117_v47, 16 }
  0xaa   : > { %9197 = vst [vmem:[#allocation23_spill] sm:$0xff] %v7131_v45  ;;  %v2194_v15 = vrot.slane %v2193_v38, 4  ;;  %v2220_v37 = vshll.u32 %v7131_v45, 16  ;;  %v2175_v38 = vsel %vm6302_vm4, %v2170_v17, %v2174_v16  ;;  %v7179_v17 = vld [vmem:[%s6257_s9 + $0x94] sm:$0xf] }
  0xab   : > { %5797 = vmatmul.mubr.msk.bf16.vlgmr.msra.gmra.mxu0 %vm675_vm3, %v6996_v34  ;;  %v2127_v34 = vsel %vm6302_vm4, %v7062_v48, %v7044_v22  ;;  %v9196_v22 = vcombine.low %v6826_v58, %v6831_v5  ;;  %v2136_v48 = vrot.slane %v2135_v8, 4  ;;  %v2207_v8 = vor.u32 %v2206_v51, %v2203_v2  ;;  %v7230_v45 = vld [vmem:[%s6257_s9 + $0xb4] sm:$0xf] }
  0xac   : > { %5863 = vmatpush3.bf16.msra.mxu0 %v6958_v20  ;;  %5800 = vmatprep.mubr.msk.bf16.mxu0 %vm675_vm3, %v6998_v29  ;;  %v2216_v20 = vrot.slane %v2214_v40, 4  ;;  %v7122_v29 = vld [vmem:[%s9063_s1 + $0xe] sm:$0x3]  ;;  %v2228_v40 = vshll.u32 %v7111_v19, 16  ;;  %v2151_v2 = vsel %vm6302_vm4, %v2146_v39, %v2150_v25  ;;  %v5100_v39 = vcombine.low %v2117_v35, %v2127_v34 }
  0xad   : > { %5975 = vmatprep.subr.msk.bf16.mxu0 %vm724_vm0, %v7093_v57  ;;  %v7166_v25 = vrot.slane %v2207_v8, 4  ;;  %v2240_v51 = vrot.slane %v2238_v9, 4  ;;  %v9199_v35 = vcombine.low %v6848_v50, %v6857_v24  ;;  %v7195_v8 = vld [vmem:[%s6257_s9 + $0xa0] sm:$0xf]  ;;  %v9200_v9 = vcombine.low %v6877_v6, %v6890_v11 }
  0xae   : > { %v9203_v11 = vcombine.low %v6990_v63, %v7005_v46 }
  0xaf   : > { %5763 = vmatmul.mubr.msk.bf16.vlgmr.msra.gmra.mxu1 %vm675_vm3, %v9196_v22  ;;  %v2198_v22 = vrot.slane %v2196_v59, 5  ;;  %v2141_v59 = vsel %vm6302_vm4, %v2136_v48, %v7064_v27  ;;  %v2227_v27 = vrot.slane %v2225_v23, 4  ;;  %v2230_v48 = vrot.slane %v2228_v40, 5 }
  0xb0   : > { %5829 = vmatpush3.bf16.msra.mxu1 %v6914_v60  ;;  %5766 = vmatprep.mubr.msk.bf16.mxu1 %vm675_vm3, %v5064_v53  ;;  %v2184_v60 = vrot.slane %v2183_v1, 4  ;;  %v2217_v53 = vor.u32 %v2216_v20, %v7114_v4  ;;  %v2165_v1 = vsel %vm6302_vm4, %v2160_v18, %v7076_v54  ;;  %v7163_v20 = vld [vmem:[%s6257_s9 + $0x8c] sm:$0x1]  ;;  %v5101_v34 = vcombine.low %v2141_v59, %v2151_v2 }
  0xb1   : > { %5974 = vmatprep.subr.msk.bf16.mxu1 %vm724_vm0, %v7122_v29  ;;  %9198 = vst [vmem:[#allocation24_spill] sm:$0xff] %v7163_v20  ;;  %v2199_v16 = vsel %vm6302_vm4, %v2194_v15, %v2198_v22  ;;  %v7185_v23 = vcombine.low %v2165_v1, %v2175_v38  ;;  %v7192_v22 = vld [vmem:[%s6257_s9 + $0x9c] sm:$0xf]  ;;  %v2249_v15 = vshrl.u32 %v7171_v0, 16  ;;  %v2213_v2 = vsel %vm6302_vm4, %v7166_v25, %v7114_v4 }
  0xb2   : > { %v2189_v54 = vsel %vm6302_vm4, %v2184_v60, %v7083_v21  ;;  %v2218_v18 = vrot.slane %v2217_v53, 4  ;;  %v2244_v60 = vshll.u32 %v7163_v20, 16  ;;  %v2252_v53 = vshll.u32 %v7171_v0, 16 }
  0xb3   : > { %5801 = vmatmul.mubr.msk.bf16.gmra.mxu0 %vm675_vm3, %v7016_v33  ;;  %v7168_v33 = vrot.slane %v2234_v56, 5  ;;  %v2231_v56 = vor.u32 %v2230_v48, %v2227_v27  ;;  %v5103_v59 = vcombine.low %v2189_v54, %v2199_v16  ;;  %v2262_v38 = vshrl.u32 %v7179_v17, 16  ;;  %v7219_v54 = vld [vmem:[%s6257_s9 + $0xac] sm:$0xf]  ;;  %v7222_v16 = vld [vmem:[%s6257_s9 + $0x98] sm:$0x1] }
  0xb4   : > { %5804 = vmatprep.mubr.msk.bf16.mxu0 %vm675_vm3, %v5099_v30  ;;  %v2222_v30 = vrot.slane %v2220_v37, 5  ;;  %v7205_v37 = vld [vmem:[%s6257_s9 + $0xa8] sm:$0xf]  ;;  %v2258_v48 = vshll.u32 %v7179_v17, 16  ;;  %9201 = vst [vmem:[#allocation25_spill] sm:$0xff] %v7222_v16  ;;  %v2286_v4 = vshrl.u32 %v7195_v8, 16 }
  0xb5   : > { %v2241_v1 = vor.u32 %v2240_v51, %v7168_v33  ;;  %v2282_v51 = vshll.u32 %v7195_v8, 16  ;;  %v2297_v25 = vshrl.u32 %v7205_v37, 16  ;;  %v2300_v21 = vshll.u32 %v7205_v37, 16 }
  0xb6   : > { %v2223_v27 = vsel %vm6302_vm4, %v2218_v18, %v2222_v30  ;;  %v2232_v18 = vrot.slane %v2231_v56, 4  ;;  %v2246_v30 = vrot.slane %v2244_v60, 5  ;;  %v2251_v40 = vrot.slane %v2249_v15, 4 }
  0xb7   : > { %5767 = vmatmul.mubr.msk.bf16.gmra.mxu1 %vm675_vm3, %v9199_v35  ;;  %v2273_v35 = vshrl.u32 %v7192_v22, 16  ;;  %v2254_v20 = vrot.slane %v2252_v53, 5  ;;  %v2242_v61 = vrot.slane %v2241_v1, 4  ;;  %v2264_v44 = vrot.slane %v2262_v38, 4 }
  0xb8   : > { %5770 = vmatprep.mubr.msk.bf16.mxu1 %vm675_vm3, %v9200_v9  ;;  %v2276_v9 = vshll.u32 %v7192_v22, 16  ;;  %v2310_v14 = vshrl.u32 %v7219_v54, 16  ;;  %v2306_v12 = vshll.u32 %v7219_v54, 16  ;;  %v7238_v6 = vrot.slane %v2258_v48, 5  ;;  %v7252_v48 = vld [vmem:[%s6257_s9 + $0xa4] sm:$0x1] }
  0xb9   : > { %v2275_v56 = vrot.slane %v2273_v35, 4  ;;  %v9202_v15 = vcombine.low %v6926_v31, %v6936_v62  ;;  %v2288_v53 = vrot.slane %v2286_v4, 4  ;;  %v2299_v1 = vrot.slane %v2297_v25, 4  ;;  %9204 = vst [vmem:[#allocation26_spill] sm:$0xff] %v7252_v48  ;;  %v7267_v62 = vld [vmem:[%s6257_s9 + $0xb0] sm:$0x1] }
  0xba   : > { %v2278_v60 = vrot.slane %v2276_v9, 5  ;;  %v2302_v38 = vrot.slane %v2300_v21, 5  ;;  %v2321_v35 = vshrl.u32 %v7230_v45, 16  ;;  %v2324_v9 = vshll.u32 %v7230_v45, 16  ;;  %9205 = vst [vmem:[#allocation27_spill] sm:$0xff] %v7267_v62 }
  0xbb   : > { %5805 = vmatmul.mubr.msk.bf16.gmra.mxu0 %vm675_vm3, %v5100_v39  ;;  %v2268_v39 = vshll.u32 %v7222_v16, 16  ;;  %v2330_v4 = vshll.u32 %v7236_v36, 16  ;;  %v2237_v21 = vsel %vm6302_vm4, %v2232_v18, %v7168_v33  ;;  %v7261_v25 = vrot.slane %v2306_v12, 5  ;;  %v7275_v18 = vld [vmem:[%s6257_s9 + $0xc4] sm:$0xf] }
  0xbc   : > { %5808 = vmatprep.mubr.msk.bf16.mxu0 %vm675_vm3, %v5101_v34  ;;  %v7245_v34 = vrot.slane %v2282_v51, 5  ;;  %v5104_v51 = vcombine.low %v2213_v2, %v2223_v27  ;;  %v2312_v16 = vrot.slane %v2310_v14, 4  ;;  %v2255_v63 = vor.u32 %v2254_v20, %v2251_v40 }
  0xbd   : > { %v2265_v46 = vor.u32 %v2264_v44, %v7238_v6  ;;  %v2270_v31 = vrot.slane %v2268_v39, 5  ;;  %v2279_v2 = vor.u32 %v2278_v60, %v2275_v56  ;;  %v2292_v33 = vshll.u32 %v7252_v48, 16  ;;  %v7285_v39 = vld [vmem:[%s6257_s9 + $0xbc] sm:$0x1] }
  0xbe   : > { %v2289_v27 = vor.u32 %v2288_v53, %v7245_v34  ;;  %v2303_v12 = vor.u32 %v2302_v38, %v2299_v1  ;;  %v2323_v14 = vrot.slane %v2321_v35, 4  ;;  %v7279_v44 = vrot.slane %v2330_v4, 5 }
  0xbf   : > { %5771 = vmatmul.mubr.msk.bf16.gmra.mxu1 %vm675_vm3, %v9202_v15  ;;  %v2334_v15 = vshrl.u32 %v7236_v36, 16  ;;  %v2313_v40 = vor.u32 %v2312_v16, %v7261_v25  ;;  %v2345_v56 = vshrl.u32 %v7270_v26, 16  ;;  %v2348_v60 = vshll.u32 %v7270_v26, 16 }
  0xc0   : > { %5774 = vmatprep.mubr.msk.bf16.mxu1 %vm675_vm3, %v9203_v11  ;;  %v2247_v11 = vsel %vm6302_vm4, %v2242_v61, %v2246_v30  ;;  %v2326_v61 = vrot.slane %v2324_v9, 5  ;;  %v2316_v30 = vshll.u32 %v7267_v62, 16  ;;  %v2256_v1 = vrot.slane %v2255_v63, 4 }
  0xc1   : > { %v2336_v20 = vrot.slane %v2334_v15, 4  ;;  %v5105_v53 = vcombine.low %v2237_v21, %v2247_v11  ;;  %v2354_v38 = vshll.u32 %v7275_v18, 16  ;;  %v9206_v35 = vcombine.low %v7008_v43, %v7014_v10 }
  0xc2   : > { %v2280_v16 = vrot.slane %v2279_v2, 4  ;;  %v2290_v9 = vrot.slane %v2289_v27, 4  ;;  %v2294_v15 = vrot.slane %v2292_v33, 5  ;;  %v9207_v4 = vcombine.low %v7024_v3, %v7031_v13  ;;  %v7306_v27 = vld [vmem:[%s6257_s9 + $0xc8] sm:$0x1] }
  0xc3   : > { %5809 = vmatmul.mubr.msk.bf16.gmra.mxu0 %vm675_vm3, %v7185_v23  ;;  %v2358_v23 = vshrl.u32 %v7275_v18, 16  ;;  %v2304_v63 = vrot.slane %v2303_v12, 4  ;;  %v2327_v21 = vor.u32 %v2326_v61, %v2323_v14  ;;  %v2337_v11 = vor.u32 %v2336_v20, %v7279_v44 }
  0xc4   : > { %5812 = vmatprep.mubr.msk.bf16.mxu0 %vm675_vm3, %v5103_v59  ;;  %v2266_v59 = vrot.slane %v2265_v46, 4  ;;  %v2340_v48 = vshll.u32 %v7285_v39, 16  ;;  %v2314_v62 = vrot.slane %v2313_v40, 4  ;;  %v2318_v43 = vrot.slane %v2316_v30, 5 }
  0xc5   : > { %v2347_v10 = vrot.slane %v2345_v56, 4  ;;  %v5072_v46 = vcombine.low %v7111_v19, %v7117_v47  ;;  %v5073_v2 = vcombine.low %v7171_v0, %v7179_v17  ;;  %v7308_v33 = vrot.slane %v2354_v38, 5 }
  0xc6   : > { %v2360_v12 = vrot.slane %v2358_v23, 4  ;;  %v2261_v14 = vsel %vm6302_vm4, %v2256_v1, %v7238_v6  ;;  %v2271_v61 = vsel %vm6302_vm4, %v2266_v59, %v2270_v31  ;;  %v2285_v20 = vsel %vm6302_vm4, %v2280_v16, %v7245_v34 }
  0xc7   : > { %5775 = vmatmul.mubr.msk.bf16.gmra.mxu1 %vm675_vm3, %v9206_v35  ;;  %v2350_v35 = vrot.slane %v2348_v60, 5  ;;  %v2295_v40 = vsel %vm6302_vm4, %v2290_v9, %v2294_v15  ;;  %v2309_v30 = vsel %vm6302_vm4, %v2304_v63, %v7261_v25  ;;  %v2328_v56 = vrot.slane %v2327_v21, 4  ;;  %v7354_v63 = vld [vmem:[%s6257_s9 + $0x1c] sm:$0xf] }
  0xc8   : > { %5778 = vmatprep.mubr.msk.bf16.mxu1 %vm675_vm3, %v9207_v4  ;;  %v2338_v60 = vrot.slane %v2337_v11, 4  ;;  %v2342_v23 = vrot.slane %v2340_v48, 5  ;;  %v2319_v6 = vsel %vm6302_vm4, %v2314_v62, %v2318_v43  ;;  %v2364_v34 = vshll.u32 %v7306_v27, 16  ;;  %v7351_v4 = vld [vmem:[%s6257_s9 + $0x18] sm:$0xf] }
  0xc9   : > { %v2351_v31 = vor.u32 %v2350_v35, %v2347_v10  ;;  %v2680_v1 = vrot.slane %v6807_v42, 5  ;;  %v5074_v38 = vcombine.low %v7192_v22, %v7195_v8  ;;  %v5075_v25 = vcombine.low %v7205_v37, %v7219_v54  ;;  %v9209_v35 = vld [vmem:[#allocation11_spill] sm:$0xff] }
  0xca   : > { %v2361_v48 = vor.u32 %v2360_v12, %v7308_v33  ;;  %v5107_v62 = vcombine.low %v2285_v20, %v2295_v40  ;;  %v5076_v42 = vcombine.low %v7230_v45, %v7236_v36  ;;  %v2687_v10 = vrot.slane %v6831_v5, 5  ;;  %v7363_v40 = vld [vmem:[%s6257_s9 + $0x28] sm:$0xf] }
  0xcb   : > { %5813 = vmatmul.mubr.msk.bf16.gmra.mxu0 %vm675_vm3, %v5104_v51  ;;  %v5106_v51 = vcombine.low %v2261_v14, %v2271_v61  ;;  %v5108_v59 = vcombine.low %v2309_v30, %v2319_v6  ;;  %v2333_v16 = vsel %vm6302_vm4, %v2328_v56, %v7279_v44  ;;  %v2343_v9 = vsel %vm6302_vm4, %v2338_v60, %v2342_v23  ;;  %v9211_v44 = vld [vmem:[#allocation12_spill] sm:$0xff] }
  0xcc   : > { %5816 = vmatprep.mubr.msk.bf16.mxu0 %vm675_vm3, %v5105_v53  ;;  %v9208_v53 = vcombine.low %v7056_v28, %v7067_v41  ;;  %v5127_v15 = vrot.slane %v6801_v7, 9  ;;  %v2352_v21 = vrot.slane %v2351_v31, 4  ;;  %v2366_v11 = vrot.slane %v2364_v34, 5 }
  0xcd   : > { %v2682_v5 = vrot.slane %v2680_v1, 4  ;;  %v2683_v12 = vrot.slane %v9209_v35, 5  ;;  %v2362_v14 = vrot.slane %v2361_v48, 4  ;;  %v5128_v61 = vrot.slane %v6826_v58, 9  ;;  %v9227_v58 = vld [vmem:[#allocation7_spill] sm:$0xff] }
  0xce   : > { %v2690_v20 = vrot.slane %v9211_v44, 5  ;;  %v2689_v30 = vrot.slane %v2687_v10, 4  ;;  %v3496_v60 = vshll.u32 %v7363_v40, 16  ;;  %v3500_v23 = vshrl.u32 %v7363_v40, 16 }
  0xcf   : > { %5779 = vmatmul.mubr.msk.bf16.gmra.mxu1 %vm675_vm3, %v9208_v53  ;;  %v5109_v6 = vcombine.low %v2333_v16, %v2343_v9  ;;  %v7372_v34 = vsel %vm6587_vm7, %v5127_v15, %v2680_v1  ;;  %v2357_v53 = vsel %vm6302_vm4, %v2352_v21, %v7308_v33  ;;  %v7383_v35 = vsel %vm6587_vm7, %v2682_v5, %v2683_v12  ;;  %v7490_v12 = vld [vmem:[%s6257_s9 + $0x48] sm:$0xf] }
  0xd0   : > { %5782 = vmatprep.mubr.msk.bf16.mxu1 %vm675_vm3, %v5072_v46  ;;  %v7358_v46 = vld [vmem:[%s6257_s9 + $0x24] sm:$0xf]  ;;  %v2694_v1 = vrot.slane %v6839_v52, 5  ;;  %v2367_v16 = vsel %vm6302_vm4, %v2362_v14, %v2366_v11  ;;  %v9107_v33 = vrot.slane %v7363_v40, 5  ;;  %v7397_v15 = vsel %vm6587_vm7, %v2689_v30, %v2690_v20  ;;  %v7409_v14 = vld [vmem:[%s6257_s9 + $0x30] sm:$0xf] }
  0xd1   : > { %9210 = vst [vmem:[#allocation11_spill] sm:$0xff] %v7358_v46  ;;  %v3487_v7 = vshrl.u32 %v7358_v46, 16  ;;  %v3490_v56 = vshll.u32 %v7358_v46, 16  ;;  %v7399_v5 = vrot.slane %v3496_v60, 5  ;;  %v3502_v52 = vrot.slane %v3500_v23, 4 }
  0xd2   : > { %v5110_v44 = vcombine.low %v2357_v53, %v2367_v16  ;;  %v2696_v20 = vrot.slane %v2694_v1, 4  ;;  %v7425_v60 = vsel %vm724_vm0, %v7122_v29, 0  ;;  %v5130_v29 = vrot.slane %v6848_v50, 9  ;;  %v7500_v11 = vld [vmem:[%s6257_s9 + $0x4c] sm:$0xf] }
  0xd3   : > { %5817 = vmatmul.mubr.msk.bf16.gmra.mxu0 %vm675_vm3, %v5106_v51  ;;  %v3489_v9 = vrot.slane %v3487_v7, 4  ;;  %v3492_v21 = vrot.slane %v3490_v56, 5  ;;  %9213 = vst [vmem:[#allocation12_spill] sm:$0xff] %v7399_v5  ;;  %v2697_v7 = vrot.slane %v6884_v49, 5  ;;  %v3503_v53 = vor.u32 %v3502_v52, %v7399_v5  ;;  %v7443_v52 = vld [vmem:[%s6257_s9 + $0x3c] sm:$0xf] }
  0xd4   : > { %5820 = vmatprep.mubr.msk.bf16.mxu0 %vm675_vm3, %v5107_v62  ;;  %v7391_v62 = vsel %vm6587_vm7, %v5128_v61, %v2687_v10  ;;  %v7412_v61 = vld [vmem:[%s6257_s9 + $0x34] sm:$0xf]  ;;  %v7430_v49 = vsel %vm724_vm0, %v7093_v57, 0  ;;  %v3538_v50 = vshll.u32 %v7443_v52, 16  ;;  %v9219_v51 = vld [vmem:[#allocation9_spill] sm:$0xff]  ;;  %v9231_v5 = vld [vmem:[#allocation8_spill] sm:$0xff] }
  0xd5   : > { %v3493_v23 = vor.u32 %v3492_v21, %v3489_v9  ;;  %v9215_v9 = vld [vmem:[#allocation15_spill] sm:$0xff]  ;;  %v7448_v57 = vsel %vm6587_vm7, %v2696_v20, %v2697_v7  ;;  %v7465_v7 = vrot.slane %v3503_v53, 4  ;;  %v2715_v56 = vrot.slane %v9219_v51, 5  ;;  %v9220_v53 = vld [vmem:[#allocation14_spill] sm:$0xff] }
  0xd6   : > { %v2704_v21 = vrot.slane %v9215_v9, 5 }
  0xd7   : > { %5783 = vmatmul.mubr.msk.bf16.gmra.mxu1 %vm675_vm3, %v5073_v2  ;;  %v5129_v2 = vrot.slane %v6834_v55, 9  ;;  %v7421_v55 = vrot.slane %v9107_v33, 4  ;;  %v7463_v20 = vrot.slane %v3493_v23, 4  ;;  %v2717_v43 = vrot.slane %v2715_v56, 4 }
  0xd8   : > { %5786 = vmatprep.mubr.msk.bf16.mxu1 %vm675_vm3, %v5074_v38  ;;  %v2701_v38 = vrot.slane %v6857_v24, 5  ;;  %v9222_v24 = vld [vmem:[#allocation6_spill] sm:$0xff] }
  0xd9   : > { %9214 = vst [vmem:[#allocation17_spill] sm:$0xff] %v7421_v55  ;;  %v7437_v16 = vsel %vm6587_vm7, %v5129_v2, %v2694_v1  ;;  %v3535_v1 = vshrl.u32 %v7443_v52, 16  ;;  %v9216_v2 = vld [vmem:[#allocation13_spill] sm:$0xff]  ;;  %9217 = vst [vmem:[#allocation15_spill] sm:$0xff] %v7463_v20  ;;  %v2711_v48 = vrot.slane %v9222_v24, 5  ;;  %v9232_v20 = vcombine.low %v7372_v34, %v7383_v35  ;;  %v9244_v55 = vld [vmem:[#allocation22_spill] sm:$0xff] }
  0xda   : > { %v2703_v33 = vrot.slane %v2701_v38, 4  ;;  %v2708_v10 = vrot.slane %v9216_v2, 5  ;;  %9218 = vst [vmem:[#allocation13_spill] sm:$0xff] %v7465_v7  ;;  %v5131_v2 = vrot.slane %v9220_v53, 9  ;;  %v2718_v7 = vrot.slane %v9227_v58, 5 }
  0xdb   : > { %5821 = vmatmul.mubr.msk.bf16.gmra.mxu0 %vm675_vm3, %v5108_v59  ;;  %v7451_v59 = vld [vmem:[%s6257_s9 + $0x40] sm:$0xf]  ;;  %v7486_v30 = vrot.slane %v3535_v1, 4  ;;  %v7506_v24 = vld [vmem:[%s6257_s9 + $0x54] sm:$0xf]  ;;  %v9229_v58 = vcombine.low %v7351_v4, %v7354_v63 }
  0xdc   : > { %5824 = vmatprep.mubr.msk.bf16.mxu0 %vm675_vm3, %v5109_v6  ;;  %v3544_v9 = vshll.u32 %v7451_v59, 16  ;;  %v3548_v6 = vshrl.u32 %v7451_v59, 16  ;;  %v7484_v51 = vsel %vm6587_vm7, %v2703_v33, %v2704_v21  ;;  %v9226_v21 = vld [vmem:[#allocation16_spill] sm:$0xff]  ;;  %v3583_v53 = vshrl.u32 %v7506_v24, 16  ;;  %v9228_v33 = vld [vmem:[#allocation10_spill] sm:$0xff] }
  0xdd   : > { %9221 = vst [vmem:[#allocation9_spill] sm:$0xff] %v7486_v30  ;;  %v5132_v1 = vrot.slane %v9226_v21, 9  ;;  %v2722_v21 = vrot.slane %v9228_v33, 5  ;;  %v7546_v32 = vsel %vm6587_vm7, %v2717_v43, %v2718_v7  ;;  %v7559_v43 = vld [vmem:[%s6257_s9 + $0x60] sm:$0xf]  ;;  %v9234_v7 = vld [vmem:[#allocation19_spill] sm:$0xff] }
  0xde   : > { %v7496_v23 = vrot.slane %v3548_v6, 4  ;;  %v7516_v6 = vld [vmem:[%s6257_s9 + $0x58] sm:$0xf]  ;;  %v7562_v33 = vrot.slane %v3583_v53, 4  ;;  %v7571_v35 = vld [vmem:[%s6257_s9 + $0x64] sm:$0xf] }
  0xdf   : > { %5787 = vmatmul.mubr.msk.bf16.gmra.mxu1 %vm675_vm3, %v5075_v25  ;;  %v7477_v25 = vsel %vm6587_vm7, %v5130_v29, %v2701_v38  ;;  %v7492_v38 = vrot.slane %v3538_v50, 5  ;;  %v7494_v29 = vrot.slane %v3544_v9, 5  ;;  %v7513_v9 = vsel %vm6587_vm7, %v5131_v2, %v2708_v10  ;;  %v7578_v30 = vld [vmem:[%s6257_s9 + $0x6c] sm:$0xf] }
  0xe0   : > { %5790 = vmatprep.mubr.msk.bf16.mxu1 %vm675_vm3, %v5076_v42  ;;  %v2710_v42 = vrot.slane %v2708_v10, 4  ;;  %9225 = vst [vmem:[#allocation28_spill] sm:$0xff] %v7496_v23  ;;  %v3586_v50 = vshll.u32 %v7506_v24, 16  ;;  %v3592_v10 = vshll.u32 %v7516_v6, 16  ;;  %v3596_v2 = vshrl.u32 %v7516_v6, 16  ;;  %9235 = vst [vmem:[#allocation16_spill] sm:$0xff] %v7562_v33 }
  0xe1   : > { %9223 = vst [vmem:[#allocation14_spill] sm:$0xff] %v7492_v38  ;;  %9224 = vst [vmem:[#allocation6_spill] sm:$0xff] %v7494_v29  ;;  %v2729_v29 = vrot.slane %v9234_v7, 5  ;;  %v2736_v53 = vrot.slane %v7031_v13, 5  ;;  %v9241_v7 = vld [vmem:[#allocation21_spill] sm:$0xff] }
  0xe2   : > { %v7564_v38 = vrot.slane %v3586_v50, 5  ;;  %v7568_v34 = vrot.slane %v3596_v2, 4 }
  0xe3   : > { %5825 = vmatmul.mubr.msk.bf16.gmra.mxu0 %vm675_vm3, %v5110_v44  ;;  %v7526_v44 = vsel %vm6587_vm7, %v2710_v42, %v2711_v48  ;;  %v9230_v48 = vcombine.low %v7270_v26, %v7275_v18  ;;  %v7542_v42 = vsel %vm6587_vm7, %v5132_v1, %v2715_v56  ;;  %v2724_v56 = vrot.slane %v2722_v21, 4  ;;  %v9233_v1 = vld [vmem:[#allocation20_spill] sm:$0xff] }
  0xe4   : > { %5864 = vmatprep.mubr.msk.bf16.mxu0 %vm675_vm3, %v9229_v58  ;;  %v5133_v58 = vrot.slane %v9231_v5, 9  ;;  %v2725_v23 = vrot.slane %v9233_v1, 5  ;;  %9236 = vst [vmem:[#allocation7_spill] sm:$0xff] %v7564_v38  ;;  %v7566_v5 = vrot.slane %v3592_v10, 5  ;;  %9238 = vst [vmem:[#allocation8_spill] sm:$0xff] %v7568_v34  ;;  %v9240_v10 = vld [vmem:[#allocation18_spill] sm:$0xff]  ;;  %v9242_v1 = vcombine.low %v7358_v46, %v7363_v40 }
  0xe5   : > { %9239 = vst [vmem:[#allocation20_spill] sm:$0xff] %v7578_v30  ;;  %v5134_v2 = vrot.slane %v9240_v10, 9  ;;  %v2732_v34 = vrot.slane %v9241_v7, 5  ;;  %v9243_v10 = vcombine.low %v7409_v14, %v7412_v61  ;;  %v2738_v33 = vrot.slane %v2736_v53, 4 }
  0xe6   : > { %9237 = vst [vmem:[#allocation10_spill] sm:$0xff] %v7566_v5  ;;  %v7583_v50 = vsel %vm6587_vm7, %v5133_v58, %v2722_v21  ;;  %v7588_v5 = vld [vmem:[%s6257_s9 + $0x70] sm:$0xf]  ;;  %v7597_v13 = vsel %vm6587_vm7, %v2724_v56, %v2725_v23  ;;  %v3634_v21 = vshll.u32 %v7578_v30, 16  ;;  %v5135_v56 = vrot.slane %v7024_v3, 9 }
  0xe7   : > { %5791 = vmatmul.mubr.msk.bf16.gmra.mxu1 %vm675_vm3, %v9230_v48  ;;  %v2731_v48 = vrot.slane %v2729_v29, 4  ;;  %v3640_v58 = vshll.u32 %v7588_v5, 16  ;;  %v2743_v46 = vrot.slane %v7067_v41, 5  ;;  %v7622_v3 = vsel %vm6587_vm7, %v5134_v2, %v2729_v29  ;;  %v7628_v41 = vld [vmem:[%s6257_s9 + $0x78] sm:$0xf] }
  0xe8   : > { %5830 = vmatprep.mubr.msk.bf16.mxu1 %vm675_vm3, %v9232_v20  ;;  %v3631_v20 = vshrl.u32 %v7578_v30, 16  ;;  %9246 = vst [vmem:[#allocation19_spill] sm:$0xff] %v7628_v41  ;;  %v7641_v2 = vrot.slane %v3634_v21, 5  ;;  %v7646_v23 = vld [vmem:[%s6257_s9 + $0x7c] sm:$0xf]  ;;  %v9264_v7 = vcombine.low %v7513_v9, %v7526_v44  ;;  %v9272_v9 = vcombine.low %v7506_v24, %v7516_v6 }
  0xe9   : > { %9249 = vst [vmem:[#allocation21_spill] sm:$0xff] %v7646_v23  ;;  %v7663_v21 = vld [vmem:[%s6257_s9 + $0x88] sm:$0xf]  ;;  %v7740_v44 = vld [vmem:[%s6257_s9 + $0x9c] sm:$0xf] }
  0xea   : > { %v7639_v29 = vrot.slane %v3631_v20, 4  ;;  %v2745_v20 = vrot.slane %v2743_v46, 4 }
  0xeb   : > { %5865 = vmatmul.mubr.msk.bf16.vlgmr.msra.gmra.mxu0 %vm675_vm3, %v9242_v1 }
  0xec   : > { %5931 = vmatpush3.bf16.msra.mxu0 %v7430_v49  ;;  %5868 = vmatprep.mubr.msk.bf16.mxu0 %vm675_vm3, %v9243_v10  ;;  %v2739_v49 = vrot.slane %v9244_v55, 5  ;;  %v9245_v10 = vcombine.low %v7391_v62, %v7397_v15  ;;  %v3644_v55 = vshrl.u32 %v7588_v5, 16  ;;  %v9247_v62 = vcombine.low %v7437_v16, %v7448_v57  ;;  %v9250_v57 = vld [vmem:[#allocation23_spill] sm:$0xff] }
  0xed   : > { %v7637_v15 = vsel %vm6587_vm7, %v2731_v48, %v2732_v34  ;;  %v5136_v16 = vrot.slane %v7056_v28, 9  ;;  %v7656_v48 = vld [vmem:[%s6257_s9 + $0x84] sm:$0xf]  ;;  %9252 = vst [vmem:[#allocation23_spill] sm:$0xff] %v7663_v21  ;;  %v3692_v28 = vshrl.u32 %v7663_v21, 16 }
  0xee   : > { %9251 = vst [vmem:[#allocation22_spill] sm:$0xff] %v7656_v48  ;;  %v7660_v34 = vsel %vm6587_vm7, %v2738_v33, %v2739_v49  ;;  %v3682_v38 = vshll.u32 %v7656_v48, 16  ;;  %v9254_v33 = vcombine.low %v7443_v52, %v7451_v59  ;;  %v9261_v49 = vcombine.low %v7477_v25, %v7484_v51 }
  0xef   : > { %5831 = vmatmul.mubr.msk.bf16.vlgmr.msra.gmra.mxu1 %vm675_vm3, %v9245_v10  ;;  %v7643_v10 = vrot.slane %v3640_v58, 5  ;;  %v3679_v58 = vshrl.u32 %v7656_v48, 16  ;;  %v7680_v1 = vpop.f32.mrf.mxu0  ;;  %v7727_v25 = vrot.slane %v3692_v28, 4  ;;  %v2757_v28 = vrot.slane %v7179_v17, 5 }
  0xf0   : > { %5897 = vmatpush3.bf16.msra.mxu1 %v7425_v60  ;;  %5834 = vmatprep.mubr.msk.bf16.mxu1 %vm675_vm3, %v9247_v62  ;;  %v7651_v60 = vsel %vm6587_vm7, %v5135_v56, %v2736_v53  ;;  %v2746_v62 = vrot.slane %v9250_v57, 5  ;;  %v7669_v56 = vrot.slane %v3644_v55, 4  ;;  %v2750_v57 = vrot.slane %v7117_v47, 5  ;;  %9255 = vst [vmem:[#allocation30_spill] sm:$0xff] %v7680_v1  ;;  %v7710_v53 = vld [vmem:[%s6257_s9 + $0x94] sm:$0xf] }
  0xf1   : > { %9248 = vst [vmem:[#allocation18_spill] sm:$0xff] %v7643_v10  ;;  %v3688_v55 = vshll.u32 %v7663_v21, 16  ;;  %v9256_v47 = vcombine.low %v7490_v12, %v7500_v11  ;;  %v7696_v1 = vsel %vm6587_vm7, %v5136_v16, %v2743_v46  ;;  %v7702_v10 = vrot.slane %v3679_v58, 4  ;;  %9260 = vst [vmem:[#allocation34_spill] sm:$0xff] %v7710_v53  ;;  %v7729_v51 = vpop.f32.mrf.mxu0 }
  0xf2   : > { %9253 = vst [vmem:[#allocation29_spill] sm:$0xff] %v7669_v56  ;;  %v7700_v56 = vsel %vm6587_vm7, %v2745_v20, %v2746_v62  ;;  %v5137_v16 = vrot.slane %v7111_v19, 9  ;;  %v2752_v62 = vrot.slane %v2750_v57, 4  ;;  %v9263_v20 = vld [vmem:[#allocation24_spill] sm:$0xff]  ;;  %9266 = vst [vmem:[#allocation36_spill] sm:$0xff] %v7727_v25  ;;  %v9268_v19 = vld [vmem:[#allocation27_spill] sm:$0xff] }
  0xf3   : > { %5869 = vmatmul.mubr.msk.bf16.gmra.mxu0 %vm675_vm3, %v9254_v33  ;;  %9257 = vst [vmem:[#allocation31_spill] sm:$0xff] %v7702_v10  ;;  %v7707_v33 = vld [vmem:[%s6257_s9 + $0x90] sm:$0xf]  ;;  %v2753_v58 = vrot.slane %v9263_v20, 5  ;;  %9267 = vst [vmem:[#allocation37_spill] sm:$0xff] %v7729_v51  ;;  %v5138_v17 = vrot.slane %v7171_v0, 9  ;;  %v9274_v0 = vcombine.low %v7559_v43, %v7571_v35 }
  0xf4   : > { %5872 = vmatprep.mubr.msk.bf16.mxu0 %vm675_vm3, %v9256_v47  ;;  %v7704_v47 = vrot.slane %v3682_v38, 5  ;;  %9259 = vst [vmem:[#allocation33_spill] sm:$0xff] %v7707_v33  ;;  %v7716_v46 = vpop.f32.mrf.mxu1  ;;  %v5140_v38 = vrot.slane %v7205_v37, 9  ;;  %9269 = vst [vmem:[#allocation27_spill] sm:$0xff] %v7740_v44  ;;  %v7755_v37 = vsel %vm6587_vm7, %v5137_v16, %v2750_v57  ;;  %v3727_v57 = vshrl.u32 %v7740_v44, 16 }
  0xf5   : > { %9262 = vst [vmem:[#allocation35_spill] sm:$0xff] %v7716_v46  ;;  %v2774_v46 = vrot.slane %v9268_v19, 5  ;;  %v7759_v10 = vsel %vm6587_vm7, %v2752_v62, %v2753_v58  ;;  %v2764_v16 = vrot.slane %v7195_v8, 5  ;;  %v9275_v58 = vld [vmem:[#allocation25_spill] sm:$0xff]  ;;  %v5142_v8 = vrot.slane %v7270_v26, 9 }
  0xf6   : > { %9258 = vst [vmem:[#allocation32_spill] sm:$0xff] %v7704_v47  ;;  %v7725_v47 = vrot.slane %v3688_v55, 5  ;;  %v7745_v55 = vld [vmem:[%s6257_s9 + $0xa0] sm:$0xf]  ;;  %v7751_v20 = vpop.f32.mrf.mxu1  ;;  %v2785_v25 = vrot.slane %v7275_v18, 5 }
  0xf7   : > { %5835 = vmatmul.mubr.msk.bf16.gmra.mxu1 %vm675_vm3, %v9261_v49  ;;  %v2771_v49 = vrot.slane %v7219_v54, 5  ;;  %9270 = vst [vmem:[#allocation38_spill] sm:$0xff] %v7745_v55  ;;  %9271 = vst [vmem:[#allocation39_spill] sm:$0xff] %v7751_v20  ;;  %v5139_v20 = vrot.slane %v7192_v22, 9  ;;  %v2788_v22 = vrot.slane %v7306_v27, 5 }
  0xf8   : > { %5838 = vmatprep.mubr.msk.bf16.mxu1 %vm675_vm3, %v9264_v7  ;;  %9265 = vst [vmem:[#allocation24_spill] sm:$0xff] %v7725_v47  ;;  %v2760_v7 = vrot.slane %v9275_v58, 5  ;;  %v7794_v58 = vpop.f32.mrf.mxu1  ;;  %v9278_v47 = vcombine.low %v7583_v50, %v7597_v13  ;;  %v7816_v18 = vld [vmem:[%s6257_s9 + $0xa8] sm:$0xf]  ;;  %v2778_v50 = vrot.slane %v7236_v36, 5  ;;  %v7821_v13 = vsel %vm6587_vm7, %v5142_v8, %v2785_v25 }
  0xf9   : > { %v7749_v54 = vsel %vm6587_vm7, %v5140_v38, %v2771_v49  ;;  %v2773_v19 = vrot.slane %v2771_v49, 4  ;;  %v7767_v38 = vpop.f32.mrf.mxu0  ;;  %v3730_v49 = vshll.u32 %v7740_v44, 16  ;;  %9277 = vst [vmem:[#allocation25_spill] sm:$0xff] %v7794_v58  ;;  %v7839_v36 = vsel %vm6587_vm7, %v5139_v20, %v2764_v16  ;;  %v7842_v8 = vld [vmem:[%s6257_s9 + $0xac] sm:$0xf] }
  0xfa   : > { %9273 = vst [vmem:[#allocation40_spill] sm:$0xff] %v7767_v38  ;;  %v3740_v38 = vshrl.u32 %v7745_v55, 16 }
  0xfb   : > { %5873 = vmatmul.mubr.msk.bf16.gmra.mxu0 %vm675_vm3, %v9272_v9  ;;  %v7774_v62 = vsel %vm6587_vm7, %v2773_v19, %v2774_v46  ;;  %v2759_v46 = vrot.slane %v2757_v28, 4  ;;  %v3736_v19 = vshll.u32 %v7745_v55, 16  ;;  %v7798_v9 = vsel %vm6587_vm7, %v5138_v17, %v2757_v28  ;;  %v9281_v28 = vld [vmem:[#allocation26_spill] sm:$0xff] }
  0xfc   : > { %5876 = vmatprep.mubr.msk.bf16.mxu0 %vm675_vm3, %v9274_v0  ;;  %v9276_v0 = vcombine.low %v7542_v42, %v7546_v32  ;;  %v7807_v32 = vpop.f32.mrf.mxu0  ;;  %v7809_v42 = vrot.slane %v3727_v57, 4  ;;  %v2767_v17 = vrot.slane %v9281_v28, 5  ;;  %v7813_v26 = vrot.slane %v3730_v49, 5  ;;  %v7833_v49 = vld [vmem:[%s6257_s9 + $0xb4] sm:$0xf] }
  0xfd   : > { %9279 = vst [vmem:[#allocation41_spill] sm:$0xff] %v7807_v32  ;;  %v7825_v57 = vsel %vm6587_vm7, %v2759_v46, %v2760_v7  ;;  %v7827_v58 = vrot.slane %v3736_v19, 5  ;;  %v7829_v28 = vrot.slane %v3740_v38, 4  ;;  %v3775_v7 = vshrl.u32 %v7833_v49, 16  ;;  %v7896_v32 = vld [vmem:[%s6257_s9 + $0xc4] sm:$0xf] }
  0xfe   : > { %9280 = vst [vmem:[#allocation42_spill] sm:$0xff] %v7809_v42  ;;  %9282 = vst [vmem:[#allocation26_spill] sm:$0xff] %v7813_v26  ;;  %v7835_v26 = vpop.f32.mrf.mxu1  ;;  %v3778_v46 = vshll.u32 %v7833_v49, 16  ;;  %v9286_v19 = vcombine.low %v7578_v30, %v7588_v5  ;;  %v7913_v42 = vld [vmem:[%s6257_s9 + $0xcc] sm:$0xf] }
  0xff   : > { %5839 = vmatmul.mubr.msk.bf16.gmra.mxu1 %vm675_vm3, %v9276_v0  ;;  %v2766_v0 = vrot.slane %v2764_v16, 4  ;;  %9283 = vst [vmem:[#allocation43_spill] sm:$0xff] %v7827_v58  ;;  %9284 = vst [vmem:[#allocation44_spill] sm:$0xff] %v7829_v28  ;;  %v7893_v28 = vld [vmem:[%s6257_s9 + $0xc0] sm:$0xf] }
 0x100   : > { %5842 = vmatprep.mubr.msk.bf16.mxu1 %vm675_vm3, %v9278_v47  ;;  %v2787_v47 = vrot.slane %v2785_v25, 4  ;;  %9285 = vst [vmem:[#allocation45_spill] sm:$0xff] %v7835_v26  ;;  %v7845_v25 = vld [vmem:[%s6257_s9 + $0xb8] sm:$0xf]  ;;  %v7857_v27 = vpop.f32.mrf.mxu0 }
 0x101   : > { %9287 = vst [vmem:[#allocation46_spill] sm:$0xff] %v7857_v27  ;;  %v7861_v20 = vsel %vm6587_vm7, %v2766_v0, %v2767_v17  ;;  %v3784_v16 = vshll.u32 %v7845_v25, 16  ;;  %v3788_v26 = vshrl.u32 %v7845_v25, 16  ;;  %v2780_v0 = vrot.slane %v2778_v50, 4 }
 0x102   : > { %v7851_v38 = vsel %vm6587_vm7, %v2787_v47, %v2788_v22  ;;  %v9288_v22 = vcombine.low %v7628_v41, %v7646_v23  ;;  %v2781_v17 = vrot.slane %v7285_v39, 5  ;;  %v3472_v27 = vshll.u32 %v7354_v63, 16  ;;  %v7996_v41 = vld [vmem:[%s6257_s9 + $0x44] sm:$0x1] }
 0x103   : > { %5877 = vmatmul.mubr.msk.bf16.gmra.mxu0 %vm675_vm3, %v9286_v19  ;;  %v5141_v19 = vrot.slane %v7230_v45, 9  ;;  %v7906_v47 = vrot.slane %v3778_v46, 5  ;;  %v7908_v58 = vrot.slane %v3784_v16, 5  ;;  %v7910_v39 = vrot.slane %v3788_v26, 4  ;;  %v5178_v16 = vld [vmem:[%s6257_s9 + $0x20] sm:$0x1] }
 0x104   : > { %5880 = vmatprep.mubr.msk.bf16.mxu0 %vm675_vm3, %v9288_v22  ;;  %v9289_v22 = vcombine.low %v7622_v3, %v7637_v15  ;;  %v7884_v45 = vpop.f32.mrf.mxu1  ;;  %v9291_v3 = vcombine.low %v7651_v60, %v7660_v34  ;;  %v7902_v15 = vpop.f32.mrf.mxu0  ;;  %v7922_v34 = vsel %vm6587_vm7, %v2780_v0, %v2781_v17  ;;  %v3823_v46 = vshrl.u32 %v7913_v42, 16 }
 0x105   : > { %9290 = vst [vmem:[#allocation47_spill] sm:$0xff] %v7884_v45  ;;  %9292 = vst [vmem:[#allocation48_spill] sm:$0xff] %v7902_v15  ;;  %v7918_v60 = vsel %vm6587_vm7, %v5141_v19, %v2778_v50  ;;  %v9297_v26 = vshrl.u32 %v7351_v4, 16  ;;  %v7933_v45 = vrot.slane %v3472_v27, 5  ;;  %v9299_v50 = vshrl.u32 %v7354_v63, 16 }
 0x106   : > { %9294 = vst [vmem:[#allocation50_spill] sm:$0xff] %v7906_v47  ;;  %9295 = vst [vmem:[#allocation51_spill] sm:$0xff] %v7908_v58  ;;  %v7937_v47 = vpop.f32.mrf.mxu1  ;;  %v3826_v15 = vshll.u32 %v7913_v42, 16  ;;  %v7949_v27 = vpop.f32.mrf.mxu0  ;;  %v4158_v17 = vrot.slane %v7354_v63, 5  ;;  %v3482_v0 = vshll.u32 %v5178_v16, 16 }
 0x107   : > { %5843 = vmatmul.mubr.msk.bf16.gmra.mxu1 %vm675_vm3, %v9289_v22  ;;  %v7904_v22 = vrot.slane %v3775_v7, 4  ;;  %9296 = vst [vmem:[#allocation52_spill] sm:$0xff] %v7910_v39  ;;  %v7925_v7 = vld [vmem:[%s6257_s9 + $0xd0] sm:$0xf]  ;;  %v9298_v39 = vshll.u32 %v7351_v4, 16  ;;  %v3478_v19 = vrot.slane %v9299_v50, 4 }
 0x108   : > { %5846 = vmatprep.mubr.msk.bf16.mxu1 %vm675_vm3, %v9291_v3  ;;  %v3465_v3 = vrot.slane %v9297_v26, 4  ;;  %9300 = vst [vmem:[#allocation53_spill] sm:$0xff] %v7937_v47  ;;  %v5181_v26 = vld [vmem:[%s6257_s9 + $0x2c] sm:$0x1]  ;;  %9302 = vst [vmem:[#allocation54_spill] sm:$0xff] %v7949_v27  ;;  %v3832_v27 = vshll.u32 %v7925_v7, 16 }
 0x109   : > { %9293 = vst [vmem:[#allocation49_spill] sm:$0xff] %v7904_v22  ;;  %v3468_v58 = vrot.slane %v9298_v39, 5  ;;  %v9301_v39 = vcombine.low %v7656_v48, %v7663_v21  ;;  %v9303_v22 = vcombine.low %v7707_v33, %v7710_v53  ;;  %v3520_v50 = vshll.u32 %v7412_v61, 16 }
 0x10a   : > { %v3479_v21 = vor.u32 %v3478_v19, %v7933_v45  ;;  %v3506_v63 = vshll.u32 %v5181_v26, 16  ;;  %v9305_v33 = vcombine.low %v7696_v1, %v7700_v56  ;;  %v7973_v48 = vrot.slane %v3826_v15, 5 }
 0x10b   : > { %5881 = vmatmul.mubr.msk.bf16.gmra.mxu0 %vm675_vm3, %v9301_v39  ;;  %v7962_v39 = vrot.slane %v3823_v46, 4  ;;  %v3469_v47 = vor.u32 %v3468_v58, %v3465_v3  ;;  %v3836_v46 = vshrl.u32 %v7925_v7, 16  ;;  %v4161_v53 = vrot.slane %v5178_v16, 5  ;;  %v7981_v3 = vpop.f32.mrf.mxu0  ;;  %v5184_v16 = vld [vmem:[%s6257_s9 + $0x38] sm:$0x1] }
 0x10c   : > { %5884 = vmatprep.mubr.msk.bf16.mxu0 %vm675_vm3, %v9303_v22  ;;  %v7971_v22 = vpop.f32.mrf.mxu1  ;;  %9307 = vst [vmem:[#allocation57_spill] sm:$0xff] %v7973_v48  ;;  %v9308_v58 = vcombine.low %v7755_v37, %v7759_v10  ;;  %9309 = vst [vmem:[#allocation58_spill] sm:$0xff] %v7981_v3  ;;  %v4160_v1 = vrot.slane %v4158_v17, 4  ;;  %v4168_v56 = vrot.slane %v5181_v26, 5  ;;  %v9311_v15 = vshll.u32 %v7409_v14, 16 }
 0x10d   : > { %9304 = vst [vmem:[#allocation55_spill] sm:$0xff] %v7962_v39  ;;  %9306 = vst [vmem:[#allocation56_spill] sm:$0xff] %v7971_v22  ;;  %v5290_v39 = vrot.slane %v7351_v4, 9  ;;  %v7987_v48 = vrot.slane %v3832_v27, 5  ;;  %v7991_v51 = vrot.slane %v3520_v50, 5  ;;  %v9313_v10 = vshrl.u32 %v7412_v61, 16 }
 0x10e   : > { %v3516_v22 = vrot.slane %v9311_v15, 5  ;;  %v3480_v3 = vrot.slane %v3479_v21, 4  ;;  %v3484_v30 = vrot.slane %v3482_v0, 5  ;;  %v3508_v26 = vrot.slane %v3506_v63, 5  ;;  %v9317_v15 = vld [vmem:[#allocation11_spill] sm:$0xff] }
 0x10f   : > { %5847 = vmatmul.mubr.msk.bf16.gmra.mxu1 %vm675_vm3, %v9305_v33  ;;  %v9310_v33 = vshrl.u32 %v7409_v14, 16  ;;  %9312 = vst [vmem:[#allocation59_spill] sm:$0xff] %v7987_v48  ;;  %v3526_v37 = vrot.slane %v9313_v10, 4  ;;  %v8000_v23 = vrot.slane %v3836_v46, 4  ;;  %v8004_v27 = vsel %vm6587_vm7, %v5290_v39, %v4158_v17  ;;  %v9328_v48 = vld [vmem:[#allocation15_spill] sm:$0xff] }
 0x110   : > { %5850 = vmatprep.mubr.msk.bf16.mxu1 %vm675_vm3, %v9308_v58  ;;  %v3470_v58 = vrot.slane %v3469_v47, 4  ;;  %v9316_v50 = vrot.slane %v7363_v40, 5  ;;  %v9318_v4 = vrot.slane %v9317_v15, 9  ;;  %v4172_v21 = vrot.slane %v7412_v61, 5  ;;  %v9320_v40 = vld [vmem:[#allocation17_spill] sm:$0xff]  ;;  %v9323_v15 = vld [vmem:[#allocation14_spill] sm:$0xff] }
 0x111   : > { %v3513_v19 = vrot.slane %v9310_v33, 4  ;;  %v7998_v33 = vpop.f32.mrf.mxu1  ;;  %9315 = vst [vmem:[#allocation61_spill] sm:$0xff] %v8000_v23  ;;  %v9319_v0 = vcombine.low %v7740_v44, %v7745_v55  ;;  %v8019_v63 = vpop.f32.mrf.mxu0  ;;  %v8023_v17 = vsel %vm6587_vm7, %v4160_v1, %v4161_v53  ;;  %v8028_v39 = vsel %vm6587_vm7, %v9320_v40, %v4168_v56  ;;  %v9325_v53 = vld [vmem:[#allocation28_spill] sm:$0xff] }
 0x112   : > { %9314 = vst [vmem:[#allocation60_spill] sm:$0xff] %v7998_v33  ;;  %v8012_v47 = vsel %vm6587_vm7, %v9318_v4, %v9316_v50  ;;  %v3530_v4 = vshll.u32 %v5184_v16, 16  ;;  %v9321_v61 = vcombine.low %v7816_v18, %v7842_v8  ;;  %v3527_v10 = vor.u32 %v3526_v37, %v7991_v51  ;;  %v9322_v50 = vld [vmem:[#allocation9_spill] sm:$0xff]  ;;  %v9324_v33 = vld [vmem:[#allocation6_spill] sm:$0xff]  ;;  %v9327_v40 = vld [vmem:[#allocation12_spill] sm:$0xff] }
 0x113   : > { %5885 = vmatmul.mubr.msk.bf16.gmra.mxu0 %vm675_vm3, %v9319_v0  ;;  %v3517_v46 = vor.u32 %v3516_v22, %v3513_v19  ;;  %v3541_v0 = vor.u32 %v9323_v15, %v9322_v50  ;;  %v3551_v1 = vor.u32 %v9325_v53, %v9324_v33  ;;  %v3554_v23 = vshll.u32 %v7996_v41, 16 }
 0x114   : > { %5888 = vmatprep.mubr.msk.bf16.mxu0 %vm675_vm3, %v9321_v61  ;;  %v3475_v22 = vsel %vm6302_vm4, %v3470_v58, %v7933_v45  ;;  %v3485_v19 = vsel %vm6302_vm4, %v3480_v3, %v3484_v30  ;;  %v3499_v37 = vsel %vm6302_vm4, %v9328_v48, %v9327_v40  ;;  %v9329_v61 = vld [vmem:[#allocation13_spill] sm:$0xff]  ;;  %v9330_v15 = vcombine.low %v7798_v9, %v7825_v57  ;;  %v8064_v40 = vpop.f32.mrf.mxu0 }
 0x115   : > { %v3509_v50 = vsel %vm6302_vm4, %v9329_v61, %v3508_v26  ;;  %v5292_v45 = vrot.slane %v7409_v14, 9  ;;  %v4174_v58 = vrot.slane %v4172_v21, 4  ;;  %v4175_v30 = vrot.slane %v5184_v16, 5  ;;  %9333 = vst [vmem:[#allocation17_spill] sm:$0xff] %v8064_v40 }
 0x116   : > { %v8056_v53 = vpop.f32.mrf.mxu1  ;;  %v3568_v3 = vshll.u32 %v7500_v11, 16  ;;  %v9332_v48 = vcombine.low %v7839_v36, %v7861_v20  ;;  %v3518_v26 = vrot.slane %v3517_v46, 4  ;;  %v3532_v14 = vrot.slane %v3530_v4, 5  ;;  %v8089_v4 = vld [vmem:[%s6257_s9 + $0x50] sm:$0x1] }
 0x117   : > { %5851 = vmatmul.mubr.msk.bf16.gmra.mxu1 %vm675_vm3, %v9330_v15  ;;  %9331 = vst [vmem:[#allocation11_spill] sm:$0xff] %v8056_v53  ;;  %v3528_v61 = vrot.slane %v3527_v10, 4  ;;  %v3542_v16 = vrot.slane %v3541_v0, 4  ;;  %v3552_v15 = vrot.slane %v3551_v1, 4  ;;  %v3556_v53 = vrot.slane %v3554_v23, 5 }
 0x118   : > { %5854 = vmatprep.mubr.msk.bf16.mxu1 %vm675_vm3, %v9332_v48  ;;  %v8070_v44 = vcombine.low %v3475_v22, %v3485_v19  ;;  %v8072_v36 = vcombine.low %v3499_v37, %v3509_v50  ;;  %v9334_v20 = vshrl.u32 %v7490_v12, 16  ;;  %v9335_v55 = vshll.u32 %v7490_v12, 16  ;;  %v8078_v40 = vpop.f32.mrf.mxu1  ;;  %v8099_v22 = vpop.f32.mrf.mxu0 }
 0x119   : > { %9336 = vst [vmem:[#allocation9_spill] sm:$0xff] %v8078_v40  ;;  %v8082_v46 = vsel %vm6587_vm7, %v5292_v45, %v4172_v21  ;;  %v8086_v23 = vsel %vm6587_vm7, %v4174_v58, %v4175_v30  ;;  %v8091_v10 = vrot.slane %v3568_v3, 5  ;;  %v9337_v0 = vshrl.u32 %v7500_v11, 16  ;;  %v8116_v3 = vld [vmem:[%s6257_s9 + $0x5c] sm:$0x1] }
 0x11a   : > { %v3561_v48 = vrot.slane %v9334_v20, 4  ;;  %v3564_v9 = vrot.slane %v9335_v55, 5  ;;  %v9338_v55 = vcombine.low %v7833_v49, %v7845_v25  ;;  %v3523_v21 = vsel %vm6302_vm4, %v3518_v26, %v7991_v51  ;;  %v8174_v40 = vld [vmem:[%s6257_s9 + $0x74] sm:$0x1] }
 0x11b   : > { %v3574_v1 = vrot.slane %v9337_v0, 4  ;;  %v9339_v19 = vrot.slane %v7451_v59, 5  ;;  %v9340_v37 = vrot.slane %v7443_v52, 9  ;;  %v4182_v30 = vrot.slane %v7996_v41, 5 }
 0x11c   : > { %5889 = vmatmul.mubr.msk.bf16.gmra.mxu0 %vm675_vm3, %v9338_v55  ;;  %v9342_v20 = vcombine.low %v7893_v28, %v7896_v32  ;;  %v3533_v51 = vsel %vm6302_vm4, %v3528_v61, %v3532_v14  ;;  %v3547_v52 = vsel %vm6302_vm4, %v3542_v16, %v9324_v33  ;;  %v3557_v59 = vsel %vm6302_vm4, %v3552_v15, %v3556_v53  ;;  %v8138_v61 = vpop.f32.mrf.mxu1  ;;  %v9345_v53 = vld [vmem:[#allocation16_spill] sm:$0xff]  ;;  %v9346_v16 = vld [vmem:[#allocation7_spill] sm:$0xff] }
 0x11d   : > { %v8110_v50 = vsel %vm6587_vm7, %v9340_v37, %v9339_v19  ;;  %v9341_v45 = vmov %v9339_v19  ;;  %v3616_v26 = vshll.u32 %v7571_v35, 16  ;;  %v3565_v0 = vor.u32 %v3564_v9, %v3561_v48  ;;  %9344 = vst [vmem:[#allocation14_spill] sm:$0xff] %v8138_v61  ;;  %v9347_v37 = vld [vmem:[#allocation10_spill] sm:$0xff]  ;;  %v8146_v48 = vpop.f32.mrf.mxu0 }
 0x11e   : > { %v4181_v58 = vrot.slane %v9341_v45, 4  ;;  %5892 = vmatprep.mubr.msk.bf16.mxu0 %vm675_vm3, %v9342_v20  ;;  %v3578_v55 = vshll.u32 %v8089_v4, 16  ;;  %v4186_v19 = vrot.slane %v7500_v11, 5  ;;  %v9343_v14 = vcombine.low %v7749_v54, %v7774_v62  ;;  %v9348_v45 = vld [vmem:[#allocation8_spill] sm:$0xff] }
 0x11f   : > { %v3575_v33 = vor.u32 %v3574_v1, %v8091_v10  ;;  %v3589_v15 = vor.u32 %v9346_v16, %v9345_v53  ;;  %v3599_v20 = vor.u32 %v9348_v45, %v9347_v37  ;;  %v3602_v9 = vshll.u32 %v8116_v3, 16 }
 0x120   : > { %5855 = vmatmul.mubr.msk.bf16.gmra.mxu1 %vm675_vm3, %v9343_v14  ;;  %v9349_v11 = vcombine.low %v7918_v60, %v7922_v34  ;;  %v8152_v54 = vcombine.low %v3523_v21, %v3533_v51  ;;  %v8154_v62 = vcombine.low %v3547_v52, %v3557_v59  ;;  %v8158_v1 = vsel %vm6587_vm7, %v4181_v58, %v4182_v30  ;;  %v5196_v30 = vld [vmem:[%s6257_s9 + $0x68] sm:$0x1] }
 0x121   : > { %v5294_v14 = vrot.slane %v7490_v12, 9  ;;  %v9350_v53 = vshrl.u32 %v7559_v43, 16  ;;  %v9351_v45 = vshll.u32 %v7559_v43, 16  ;;  %v8165_v60 = vrot.slane %v3616_v26, 5 }
 0x122   : > { %5858 = vmatprep.mubr.msk.bf16.mxu1 %vm675_vm3, %v9349_v11  ;;  %v9352_v34 = vshrl.u32 %v7571_v35, 16  ;;  %v3566_v51 = vrot.slane %v3565_v0, 4  ;;  %v3580_v52 = vrot.slane %v3578_v55, 5  ;;  %v4188_v59 = vrot.slane %v4186_v19, 4  ;;  %v8171_v11 = vpop.f32.mrf.mxu1 }
 0x123   : > { %v3609_v16 = vrot.slane %v9350_v53, 4  ;;  %v3612_v41 = vrot.slane %v9351_v45, 5  ;;  %v4189_v58 = vrot.slane %v8089_v4, 5  ;;  %9353 = vst [vmem:[#allocation6_spill] sm:$0xff] %v8171_v11  ;;  %v3576_v12 = vrot.slane %v3575_v33, 4  ;;  %v8176_v45 = vpop.f32.mrf.mxu0 }
 0x124   : > { %v3622_v21 = vrot.slane %v9352_v34, 4  ;;  %v3590_v57 = vrot.slane %v3589_v15, 4  ;;  %v3600_v61 = vrot.slane %v3599_v20, 4  ;;  %v3604_v53 = vrot.slane %v3602_v9, 5 }
 0x125   : > { %v9354_v26 = vcombine.low %v7913_v42, %v7925_v7  ;;  %v8184_v0 = vsel %vm6587_vm7, %v5294_v14, %v4186_v19  ;;  %v9355_v4 = vrot.slane %v7516_v6, 5  ;;  %v4196_v33 = vrot.slane %v8116_v3, 5  ;;  %v8197_v14 = vpop.f32.mrf.mxu0 }
 0x126   : > { %v4200_v15 = vrot.slane %v7571_v35, 5  ;;  %v9356_v20 = vcombine.low %v8004_v27, %v8023_v17  ;;  %v3613_v9 = vor.u32 %v3612_v41, %v3609_v16  ;;  %v3623_v34 = vor.u32 %v3622_v21, %v8165_v60  ;;  %v9359_v17 = vld [vmem:[#allocation18_spill] sm:$0xff]  ;;  %v9360_v41 = vld [vmem:[#allocation29_spill] sm:$0xff] }
 0x127   : > { %5893 = vmatmul.mubr.msk.bf16.gmra.mxu0 %vm675_vm3, %v9354_v26  ;;  %v4195_v55 = vrot.slane %v9355_v4, 4  ;;  %v3626_v26 = vshll.u32 %v5196_v30, 16  ;;  %v3637_v19 = vor.u32 %v7641_v2, %v7639_v29  ;;  %v3571_v3 = vsel %vm6302_vm4, %v3566_v51, %v8091_v10  ;;  %v8213_v29 = vpop.f32.mrf.mxu1 }
 0x128   : > { %5932 = vmatprep.mubr.msk.bf16.mxu0 %vm675_vm3, %v9356_v20  ;;  %v9357_v35 = vmov %v9355_v4  ;;  %v9358_v4 = vrot.slane %v7506_v24, 9  ;;  %v3647_v16 = vor.u32 %v9360_v41, %v9359_v17  ;;  %v3650_v21 = vshll.u32 %v8174_v40, 16  ;;  %9361 = vst [vmem:[#allocation28_spill] sm:$0xff] %v8213_v29  ;;  %v8230_v20 = vpop.f32.mrf.mxu0 }
 0x129   : > { %v9362_v2 = vcombine.low %v7821_v13, %v7851_v38  ;;  %v3581_v6 = vsel %vm6302_vm4, %v3576_v12, %v3580_v52  ;;  %v8223_v24 = vsel %vm6587_vm7, %v4188_v59, %v4189_v58  ;;  %v3595_v10 = vsel %vm6302_vm4, %v3590_v57, %v9347_v37  ;;  %v8239_v58 = vpop.f32.mrf.mxu1 }
 0x12a   : > { %v8208_v27 = vsel %vm6587_vm7, %v9358_v4, %v9357_v35  ;;  %v3605_v51 = vsel %vm6302_vm4, %v3600_v61, %v3604_v53  ;;  %v8236_v13 = vsel %vm6587_vm7, %v4195_v55, %v4196_v33  ;;  %v5296_v38 = vrot.slane %v7559_v43, 9  ;;  %9363 = vst [vmem:[#allocation5_spill] sm:$0xff] %v8239_v58  ;;  %v8241_v61 = vpop.f32.mrf.mxu0  ;;  %v9446_v56 = vld [vmem:[#allocation6_spill] sm:$0xff] }
 0x12b   : > { %5859 = vmatmul.mubr.msk.bf16.gmra.mxu1 %vm675_vm3, %v9362_v2  ;;  %v4202_v52 = vrot.slane %v4200_v15, 4  ;;  %v4203_v59 = vrot.slane %v5196_v30, 5  ;;  %v3614_v12 = vrot.slane %v3613_v9, 4  ;;  %v3624_v57 = vrot.slane %v3623_v34, 4  ;;  %v8246_v33 = vpop.f32.mrf.mxu1  ;;  %v9366_v34 = vld [vmem:[#allocation21_spill] sm:$0xff] }
 0x12c   : > { %5898 = vmatprep.mubr.msk.bf16.mxu1 %vm675_vm3, %v8070_v44  ;;  %v3628_v37 = vrot.slane %v3626_v26, 5  ;;  %v3638_v35 = vrot.slane %v3637_v19, 4  ;;  %v3648_v53 = vrot.slane %v3647_v16, 4  ;;  %v3652_v4 = vrot.slane %v3650_v21, 5  ;;  %9365 = vst [vmem:[#allocation12_spill] sm:$0xff] %v8246_v33  ;;  %v5730_v19 = vpop.f32.mrf.mxu0 }
 0x12d   : > { %v9364_v44 = vrot.slane %v7588_v5, 5  ;;  %v4210_v55 = vrot.slane %v8174_v40, 5  ;;  %v5310_v43 = vcombine.low %v8110_v50, %v8158_v1  ;;  %v8250_v30 = vcombine.low %v3571_v3, %v3581_v6  ;;  %v9368_v1 = vld [vmem:[#allocation19_spill] sm:$0xff]  ;;  %v8271_v6 = vpop.f32.mrf.mxu1 }
 0x12e   : > { %v5311_v9 = vcombine.low %v8184_v0, %v8223_v24  ;;  %v3664_v26 = vshll.u32 %v9366_v34, 16  ;;  %v9367_v16 = vcombine.low %v8012_v47, %v8028_v39  ;;  %v8261_v40 = vsel %vm6587_vm7, %v5296_v38, %v4200_v15  ;;  %9371 = vst [vmem:[#allocation15_spill] sm:$0xff] %v8271_v6 }
 0x12f   : > { %v4209_v41 = vrot.slane %v9364_v44, 4  ;;  %v8265_v50 = vsel %vm6587_vm7, %v4202_v52, %v4203_v59  ;;  %v9369_v3 = vshrl.u32 %v9368_v1, 16  ;;  %v9370_v0 = vshll.u32 %v9368_v1, 16  ;;  %v5202_v52 = vld [vmem:[%s6257_s9 + $0x80] sm:$0x1]  ;;  %v1447_v59 = vpop.f32.mrf.mxu0 }
 0x130   : > { %5933 = vmatmul.mubr.msk.bf16.vlgmr.msra.gmra.mxu0 %vm675_vm3, %v9367_v16  ;;  %v9372_v47 = vcombine.low %v8082_v46, %v8086_v23  ;;  %v8277_v39 = vcombine.low %v3595_v10, %v3605_v51  ;;  %v3619_v24 = vsel %vm6302_vm4, %v3614_v12, %v8165_v60  ;;  %v3629_v38 = vsel %vm6302_vm4, %v3624_v57, %v3628_v37  ;;  %v9374_v51 = vld [vmem:[#allocation20_spill] sm:$0xff]  ;;  %v5696_v12 = vpop.f32.mrf.mxu1 }
 0x131   : > { %v3657_v21 = vrot.slane %v9369_v3, 4  ;;  %v3660_v2 = vrot.slane %v9370_v0, 5  ;;  %v3643_v46 = vsel %vm6302_vm4, %v3638_v35, %v9359_v17  ;;  %v3653_v23 = vsel %vm6302_vm4, %v3648_v53, %v3652_v4  ;;  %v8314_v53 = vld [vmem:[%s6257_s9 + $0x8c] sm:$0x1] }
 0x132   : > { %5936 = vmatprep.mubr.msk.bf16.mxu0 %vm675_vm3, %v9372_v47  ;;  %v9373_v10 = vmov %v9364_v44  ;;  %v9375_v44 = vrot.slane %v9374_v51, 9  ;;  %v8302_v60 = vsel %vm6587_vm7, %v4209_v41, %v4210_v55  ;;  %v8308_v57 = vrot.slane %v3664_v26, 5  ;;  %v9377_v4 = vld [vmem:[#allocation30_spill] sm:$0xff]  ;;  %v5731_v41 = vpop.f32.mrf.mxu0  ;;  %v1054_v47 = vpop.f32.mrf.mxu1  ;;  %v9378_v51 = vld [vmem:[#allocation31_spill] sm:$0xff] }
 0x133   : > { %5899 = vmatmul.mubr.msk.bf16.vlgmr.msra.gmra.mxu1 %vm675_vm3, %v8072_v36  ;;  %v9376_v5 = vshrl.u32 %v9366_v34, 16  ;;  %v4214_v35 = vrot.slane %v9366_v34, 5  ;;  %v1063_v3 = vadd.f32 %v5696_v12, %v9377_v4  ;;  %v8319_v55 = vcombine.low %v3619_v24, %v3629_v38  ;;  %v9381_v4 = vld [vmem:[#allocation37_spill] sm:$0xff]  ;;  %v9382_v24 = vld [vmem:[#allocation24_spill] sm:$0xff] }
 0x134   : > { %v8298_v16 = vsel %vm6587_vm7, %v9375_v44, %v9373_v10  ;;  %5902 = vmatprep.mubr.msk.bf16.mxu1 %vm675_vm3, %v8152_v54  ;;  %v3661_v36 = vor.u32 %v3660_v2, %v3657_v21  ;;  %v3674_v0 = vshll.u32 %v5202_v52, 16  ;;  %v8321_v26 = vcombine.low %v3643_v46, %v3653_v23  ;;  %v9379_v44 = vld [vmem:[#allocation32_spill] sm:$0xff]  ;;  %v1450_v54 = vpop.f32.mrf.mxu0  ;;  %v5697_v46 = vpop.f32.mrf.mxu1 }
 0x135   : > { %v3670_v37 = vrot.slane %v9376_v5, 4  ;;  %v5298_v34 = vrot.slane %v9368_v1, 9  ;;  %v3685_v5 = vor.u32 %v9379_v44, %v9378_v51  ;;  %v8328_v12 = vadd.f32 %v5730_v19, %v1063_v3  ;;  %v9383_v38 = vld [vmem:[#allocation36_spill] sm:$0xff]  ;;  %v9384_v1 = vld [vmem:[#allocation34_spill] sm:$0xff] }
 0x136   : > { %v1055_v17 = vadd.f32 %v1054_v47, %v9381_v4  ;;  %v3695_v21 = vor.u32 %v9383_v38, %v9382_v24  ;;  %v3698_v2 = vshll.u32 %v8314_v53, 16  ;;  %v4216_v10 = vrot.slane %v4214_v35, 4  ;;  %v9386_v19 = vld [vmem:[#allocation40_spill] sm:$0xff]  ;;  %v5734_v51 = vpop.f32.mrf.mxu0  ;;  %v1057_v4 = vpop.f32.mrf.mxu1 }
 0x137   : > { %9380 = vst [vmem:[#allocation13_spill] sm:$0xff] %v8328_v12  ;;  %v3671_v23 = vor.u32 %v3670_v37, %v8308_v57  ;;  %v4217_v15 = vrot.slane %v5202_v52, 5  ;;  %v3712_v6 = vshll.u32 %v9384_v1, 16  ;;  %v1066_v3 = vadd.f32 %v5697_v46, %v9386_v19 }
 0x138   : > { %v8336_v33 = vadd.f32 %v1447_v59, %v1055_v17  ;;  %5937 = vmatmul.mubr.msk.bf16.gmra.mxu0 %vm675_vm3, %v5310_v43  ;;  %v8340_v47 = vrot.slane %v3661_v36, 4  ;;  %v8342_v44 = vrot.slane %v3674_v0, 5  ;;  %v8347_v37 = vsel %vm6587_vm7, %v5298_v34, %v4214_v35  ;;  %v8352_v59 = vld [vmem:[%s6257_s9 + $0x98] sm:$0x1]  ;;  %v9387_v17 = vld [vmem:[#allocation33_spill] sm:$0xff]  ;;  %v1463_v12 = vpop.f32.mrf.mxu0  ;;  %v5700_v35 = vpop.f32.mrf.mxu1 }
 0x139   : > { %5940 = vmatprep.mubr.msk.bf16.mxu0 %vm675_vm3, %v5311_v9  ;;  %v8349_v52 = vrot.slane %v3685_v5, 4  ;;  %v9388_v38 = vshrl.u32 %v9387_v17, 16  ;;  %v9389_v43 = vshll.u32 %v9387_v17, 16  ;;  %v8358_v19 = vadd.f32 %v5731_v41, %v1066_v3  ;;  %v9391_v0 = vld [vmem:[#allocation41_spill] sm:$0xff] }
 0x13a   : > { %9385 = vst [vmem:[#allocation16_spill] sm:$0xff] %v8336_v33  ;;  %v1058_v33 = vadd.f32 %v1057_v4, %v9391_v0  ;;  %v8361_v9 = vrot.slane %v3695_v21, 4  ;;  %v8363_v58 = vrot.slane %v3698_v2, 5  ;;  %v3672_v34 = vrot.slane %v3671_v23, 4  ;;  %v9394_v21 = vld [vmem:[#allocation46_spill] sm:$0xff]  ;;  %v5735_v2 = vpop.f32.mrf.mxu0 }
 0x13b   : > { %v3705_v46 = vrot.slane %v9388_v38, 4  ;;  %v3708_v36 = vrot.slane %v9389_v43, 5  ;;  %9390 = vst [vmem:[#allocation7_spill] sm:$0xff] %v8358_v19  ;;  %5903 = vmatmul.mubr.msk.bf16.gmra.mxu1 %vm675_vm3, %v8154_v62  ;;  %v8369_v5 = vsel %vm6587_vm7, %v4216_v10, %v4217_v15  ;;  %v8371_v38 = vrot.slane %v3712_v6, 5  ;;  %v1070_v6 = vpop.f32.mrf.mxu1  ;;  %v9395_v10 = vld [vmem:[#allocation23_spill] sm:$0xff]  ;;  %v9397_v23 = vld [vmem:[#allocation22_spill] sm:$0xff] }
 0x13c   : > { %v9392_v41 = vshrl.u32 %v9384_v1, 16  ;;  %v8375_v4 = vadd.f32 %v1450_v54, %v1058_v33  ;;  %v1079_v43 = vadd.f32 %v5700_v35, %v9394_v21  ;;  %5906 = vmatprep.mubr.msk.bf16.mxu1 %vm675_vm3, %v8250_v30  ;;  %v3667_v62 = vsel %vm6302_vm4, %v8340_v47, %v8308_v57 }
 0x13d   : > { %v3722_v15 = vshll.u32 %v8352_v59, 16  ;;  %v9396_v54 = vrot.slane %v9395_v10, 5  ;;  %v9398_v0 = vrot.slane %v9397_v23, 9  ;;  %v3709_v35 = vor.u32 %v3708_v36, %v3705_v46  ;;  %v5701_v11 = vpop.f32.mrf.mxu1  ;;  %v8415_v36 = vld [vmem:[%s6257_s9 + $0xa4] sm:$0x1]  ;;  %v9405_v10 = vld [vmem:[#allocation26_spill] sm:$0xff] }
 0x13e   : > { %v3718_v3 = vrot.slane %v9392_v41, 4  ;;  %9393 = vst [vmem:[#allocation10_spill] sm:$0xff] %v8375_v4  ;;  %v4228_v57 = vrot.slane %v9384_v1, 5  ;;  %v8398_v47 = vadd.f32 %v5734_v51, %v1079_v43  ;;  %v9399_v41 = vld [vmem:[#allocation48_spill] sm:$0xff]  ;;  %v1466_v4 = vpop.f32.mrf.mxu0  ;;  %v5315_v19 = vcombine.low %v8347_v37, %v8369_v5  ;;  %v9401_v5 = vld [vmem:[#allocation54_spill] sm:$0xff] }
 0x13f   : > { %v8395_v30 = vsel %vm6587_vm7, %v9398_v0, %v9396_v54  ;;  %v1071_v21 = vadd.f32 %v1070_v6, %v9399_v41  ;;  %v9400_v33 = vmov %v9396_v54  ;;  %v3677_v54 = vsel %vm6302_vm4, %v3672_v34, %v8342_v44  ;;  %v9407_v41 = vld [vmem:[#allocation43_spill] sm:$0xff] }
 0x140   : > { %v4223_v29 = vrot.slane %v9400_v33, 4  ;;  %v3701_v1 = vsel %vm6302_vm4, %v8361_v9, %v8363_v58  ;;  %v4224_v51 = vrot.slane %v8314_v53, 5  ;;  %v3719_v46 = vor.u32 %v3718_v3, %v8371_v38  ;;  %v5738_v6 = vpop.f32.mrf.mxu0  ;;  %v1073_v58 = vpop.f32.mrf.mxu1 }
 0x141   : > { %v8417_v37 = vadd.f32 %v1463_v12, %v1071_v21  ;;  %v1082_v43 = vadd.f32 %v5701_v11, %v9401_v5  ;;  %v9402_v33 = vcombine.low %v8208_v27, %v8236_v13  ;;  %v3724_v44 = vrot.slane %v3722_v15, 5  ;;  %v9404_v11 = vld [vmem:[#allocation42_spill] sm:$0xff] }
 0x142   : > { %v5300_v34 = vrot.slane %v9387_v17, 9  ;;  %v9403_v53 = vcombine.low %v8261_v40, %v8265_v50  ;;  %v3710_v9 = vrot.slane %v3709_v35, 4  ;;  %v4230_v12 = vrot.slane %v4228_v57, 4  ;;  %v9406_v27 = vld [vmem:[#allocation58_spill] sm:$0xff]  ;;  %v1479_v15 = vpop.f32.mrf.mxu0  ;;  %v9408_v17 = vld [vmem:[#allocation44_spill] sm:$0xff]  ;;  %v5704_v40 = vpop.f32.mrf.mxu1 }
 0x143   : > { %5941 = vmatmul.mubr.msk.bf16.gmra.mxu0 %vm675_vm3, %v9402_v33  ;;  %v4231_v3 = vrot.slane %v8352_v59, 5  ;;  %v3733_v23 = vor.u32 %v9405_v10, %v9404_v11  ;;  %v8432_v0 = vadd.f32 %v5735_v2, %v1082_v43  ;;  %v1074_v13 = vadd.f32 %v1073_v58, %v9406_v27  ;;  %5907 = vmatmul.mubr.msk.bf16.gmra.mxu1 %vm675_vm3, %v8277_v39 }
 0x144   : > { %5944 = vmatprep.mubr.msk.bf16.mxu0 %vm675_vm3, %v9403_v53  ;;  %v3743_v21 = vor.u32 %v9408_v17, %v9407_v41  ;;  %v3746_v5 = vshll.u32 %v8415_v36, 16  ;;  %v3720_v50 = vrot.slane %v3719_v46, 4  ;;  %v9409_v59 = vshrl.u32 %v7816_v18, 16  ;;  %v5739_v11 = vpop.f32.mrf.mxu0  ;;  %5910 = vmatprep.mubr.msk.bf16.mxu1 %vm675_vm3, %v8319_v55  ;;  %v1086_v46 = vpop.f32.mrf.mxu1 }
 0x145   : > { %v9410_v33 = vshll.u32 %v7816_v18, 16  ;;  %v3760_v43 = vshll.u32 %v7842_v8, 16  ;;  %v8445_v58 = vadd.f32 %v1466_v4, %v1074_v13  ;;  %v1095_v53 = vadd.f32 %v5704_v40, %v8019_v63 }
 0x146   : > { %v3753_v35 = vrot.slane %v9409_v59, 4  ;;  %v5266_v10 = vcombine.low %v3667_v62, %v3677_v54  ;;  %v8452_v39 = vsel %vm6587_vm7, %v4223_v29, %v4224_v51  ;;  %v3715_v27 = vsel %vm6302_vm4, %v3710_v9, %v8371_v38  ;;  %v9411_v62 = vld [vmem:[#allocation17_spill] sm:$0xff]  ;;  %v1482_v54 = vpop.f32.mrf.mxu0  ;;  %v5705_v40 = vpop.f32.mrf.mxu1 }
 0x147   : > { %v3756_v2 = vrot.slane %v9410_v33, 5  ;;  %v8459_v4 = vsel %vm6587_vm7, %v5300_v34, %v4228_v57  ;;  %v8463_v63 = vsel %vm6587_vm7, %v4230_v12, %v4231_v3  ;;  %v3734_v13 = vrot.slane %v3733_v23, 4 }
 0x148   : > { %v8465_v55 = vadd.f32 %v5738_v6, %v1095_v53  ;;  %v1087_v29 = vadd.f32 %v1086_v46, %v9411_v62  ;;  %v3744_v51 = vrot.slane %v3743_v21, 4  ;;  %v3748_v17 = vrot.slane %v3746_v5, 5  ;;  %v5742_v23 = vpop.f32.mrf.mxu0  ;;  %v9414_v21 = vld [vmem:[#allocation38_spill] sm:$0xff] }
 0x149   : > { %v3725_v38 = vsel %vm6302_vm4, %v3720_v50, %v3724_v44  ;;  %v3757_v9 = vor.u32 %v3756_v2, %v3753_v35  ;;  %v8470_v57 = vrot.slane %v3760_v43, 5  ;;  %v9412_v34 = vshrl.u32 %v7842_v8, 16  ;;  %v5214_v50 = vld [vmem:[%s6257_s9 + $0xb0] sm:$0x1]  ;;  %v1089_v35 = vpop.f32.mrf.mxu1 }
 0x14a   : > { %v8474_v3 = vadd.f32 %v1479_v15, %v1087_v29  ;;  %v1098_v6 = vadd.f32 %v5705_v40, %v8099_v22  ;;  %v9413_v59 = vcombine.low %v8298_v16, %v8302_v60  ;;  %v9415_v5 = vrot.slane %v9414_v21, 5  ;;  %v1495_v43 = vpop.f32.mrf.mxu0  ;;  %v9420_v29 = vld [vmem:[#allocation49_spill] sm:$0xff] }
 0x14b   : > { %v3766_v12 = vrot.slane %v9412_v34, 4  ;;  %v4238_v44 = vrot.slane %v8415_v36, 5  ;;  %v9416_v22 = vsel %vm6302_vm4, %v8349_v52, %v9382_v24  ;;  %v5316_v16 = vcombine.low %v8395_v30, %v8452_v39  ;;  %v5708_v52 = vpop.f32.mrf.mxu1  ;;  %5911 = vmatmul.mubr.msk.bf16.gmra.mxu1 %vm675_vm3, %v8321_v26 }
 0x14c   : > { %5945 = vmatmul.mubr.msk.bf16.gmra.mxu0 %vm675_vm3, %v9413_v59  ;;  %v4237_v33 = vrot.slane %v9415_v5, 4  ;;  %v5267_v15 = vcombine.low %v9416_v22, %v3701_v1  ;;  %v5317_v60 = vcombine.low %v8459_v4, %v8463_v63  ;;  %v3739_v36 = vsel %vm6302_vm4, %v3734_v13, %v9407_v41  ;;  %v5743_v46 = vpop.f32.mrf.mxu0  ;;  %5914 = vmatprep.mubr.msk.bf16.mxu1 %vm675_vm3, %v5266_v10 }
 0x14d   : > { %5948 = vmatprep.mubr.msk.bf16.mxu0 %vm675_vm3, %v5315_v19  ;;  %v8498_v2 = vadd.f32 %v5739_v11, %v1098_v6  ;;  %v1090_v19 = vadd.f32 %v1089_v35, %v8146_v48  ;;  %v3749_v53 = vsel %vm6302_vm4, %v3744_v51, %v3748_v17  ;;  %v4242_v24 = vrot.slane %v7842_v8, 5  ;;  %v9418_v8 = vld [vmem:[#allocation27_spill] sm:$0xff]  ;;  %v1102_v13 = vpop.f32.mrf.mxu1 }
 0x14e   : > { %v5268_v30 = vcombine.low %v3715_v27, %v3725_v38  ;;  %v8506_v1 = vrot.slane %v3757_v9, 4  ;;  %v3767_v39 = vor.u32 %v3766_v12, %v8470_v57  ;;  %v3770_v41 = vshll.u32 %v5214_v50, 16  ;;  %v1498_v38 = vpop.f32.mrf.mxu0 }
 0x14f   : > { %v8509_v11 = vadd.f32 %v1482_v54, %v1090_v19  ;;  %v1111_v48 = vadd.f32 %v5708_v52, %v8176_v45  ;;  %v9417_v4 = vmov %v9415_v5  ;;  %v9419_v63 = vrot.slane %v9418_v8, 9  ;;  %v9421_v54 = vld [vmem:[#allocation50_spill] sm:$0xff]  ;;  %v5709_v12 = vpop.f32.mrf.mxu1  ;;  %v9426_v8 = vld [vmem:[#allocation52_spill] sm:$0xff] }
 0x150   : > { %v8523_v27 = vsel %vm6587_vm7, %v4237_v33, %v4238_v44  ;;  %v8525_v62 = vcombine.low %v3739_v36, %v3749_v53  ;;  %v5302_v45 = vrot.slane %v7816_v18, 9  ;;  %v3781_v10 = vor.u32 %v9421_v54, %v9420_v29  ;;  %v5217_v33 = vld [vmem:[%s6257_s9 + $0xbc] sm:$0x1] }
 0x151   : > { %v8519_v26 = vsel %vm6587_vm7, %v9419_v63, %v9417_v4  ;;  %v3808_v51 = vshll.u32 %v7896_v32, 16  ;;  %v8531_v17 = vadd.f32 %v5742_v23, %v1111_v48  ;;  %v1103_v40 = vadd.f32 %v1102_v13, %v8197_v14  ;;  %v5746_v14 = vpop.f32.mrf.mxu0  ;;  %v1105_v36 = vpop.f32.mrf.mxu1  ;;  %v9425_v4 = vld [vmem:[#allocation51_spill] sm:$0xff] }
 0x152   : > { %v4244_v9 = vrot.slane %v4242_v24, 4  ;;  %v4245_v34 = vrot.slane %v5214_v50, 5  ;;  %v5318_v6 = vcombine.low %v8519_v26, %v8523_v27  ;;  %v3763_v18 = vsel %vm6302_vm4, %v8506_v1, %v8470_v57  ;;  %v9428_v13 = vld [vmem:[#allocation35_spill] sm:$0xff] }
 0x153   : > { %v3768_v59 = vrot.slane %v3767_v39, 4  ;;  %v3772_v21 = vrot.slane %v3770_v41, 5  ;;  %v8540_v5 = vadd.f32 %v1495_v43, %v1103_v40  ;;  %v1114_v23 = vadd.f32 %v5709_v12, %v8230_v20  ;;  %v1511_v1 = vpop.f32.mrf.mxu0  ;;  %v5220_v41 = vld [vmem:[%s6257_s9 + $0xc8] sm:$0x1]  ;;  %v5712_v48 = vpop.f32.mrf.mxu1  ;;  %5915 = vmatmul.mubr.msk.bf16.gmra.mxu1 %vm675_vm3, %v5267_v15  ;;  %v9429_v12 = vld [vmem:[#allocation39_spill] sm:$0xff] }
 0x154   : > { %5949 = vmatmul.mubr.msk.bf16.gmra.mxu0 %vm675_vm3, %v5316_v16  ;;  %v9422_v44 = vshrl.u32 %v7893_v28, 16  ;;  %v9423_v35 = vshll.u32 %v7893_v28, 16  ;;  %v4243_v57 = vsel %vm6587_vm7, %v5302_v45, %v4242_v24  ;;  %v8552_v19 = vrot.slane %v3781_v10, 4  ;;  %5918 = vmatprep.mubr.msk.bf16.mxu1 %vm675_vm3, %v5268_v30 }
 0x155   : > { %5952 = vmatprep.mubr.msk.bf16.mxu0 %vm675_vm3, %v5317_v60  ;;  %v8554_v20 = vrot.slane %v3808_v51, 5  ;;  %v9424_v43 = vshrl.u32 %v7896_v32, 16  ;;  %v8558_v53 = vadd.f32 %v5743_v46, %v1114_v23  ;;  %v1106_v52 = vadd.f32 %v1105_v36, %v8241_v61  ;;  %v5747_v29 = vpop.f32.mrf.mxu0  ;;  %v1118_v15 = vpop.f32.mrf.mxu1 }
 0x156   : > { %v3801_v50 = vrot.slane %v9422_v44, 4  ;;  %v3804_v22 = vrot.slane %v9423_v35, 5  ;;  %v4246_v39 = vsel %vm6587_vm7, %v4244_v9, %v4245_v34  ;;  %v4256_v60 = vrot.slane %v7896_v32, 5 }
 0x157   : > { %v3814_v16 = vrot.slane %v9424_v43, 4  ;;  %v3773_v24 = vsel %vm6302_vm4, %v3768_v59, %v3772_v21  ;;  %v3791_v63 = vor.u32 %v9426_v8, %v9425_v4  ;;  %v3794_v46 = vshll.u32 %v5217_v33, 16  ;;  %v5713_v44 = vpop.f32.mrf.mxu1 }
 0x158   : > { %v9427_v26 = vrot.slane %v7845_v25, 5  ;;  %v8572_v27 = vadd.f32 %v1498_v38, %v1106_v52  ;;  %v1127_v45 = vadd.f32 %v5712_v48, %v9428_v13  ;;  %v4252_v32 = vrot.slane %v5217_v33, 5  ;;  %v1514_v38 = vpop.f32.mrf.mxu0 }
 0x159   : > { %v3805_v54 = vor.u32 %v3804_v22, %v3801_v50  ;;  %v5319_v10 = vcombine.low %v4243_v57, %v4246_v39  ;;  %v3815_v51 = vor.u32 %v3814_v16, %v8554_v20  ;;  %v3818_v40 = vshll.u32 %v5220_v41, 16  ;;  %v1121_v39 = vpop.f32.mrf.mxu1 }
 0x15a   : > { %v4251_v61 = vrot.slane %v9427_v26, 4  ;;  %v5304_v9 = vrot.slane %v7893_v28, 9  ;;  %v8578_v34 = vadd.f32 %v5746_v14, %v1127_v45  ;;  %v1119_v59 = vadd.f32 %v1118_v15, %v9429_v12  ;;  %v9432_v14 = vld [vmem:[#allocation25_spill] sm:$0xff]  ;;  %v5750_v43 = vpop.f32.mrf.mxu0  ;;  %v9436_v45 = vld [vmem:[#allocation59_spill] sm:$0xff] }
 0x15b   : > { %v4258_v21 = vrot.slane %v4256_v60, 4  ;;  %v4259_v23 = vrot.slane %v5220_v41, 5  ;;  %v5270_v35 = vcombine.low %v3763_v18, %v3773_v24  ;;  %v3792_v30 = vrot.slane %v3791_v63, 4  ;;  %v5223_v41 = vld [vmem:[%s6257_s9 + $0xd4] sm:$0x1]  ;;  %5919 = vmatmul.mubr.msk.bf16.gmra.mxu1 %vm675_vm3, %v8525_v62  ;;  %s8914_s9 = scalar_lea.vmem [#allocation2], %s4897_s8 }
 0x15c   : > { %v3796_v33 = vrot.slane %v3794_v46, 5  ;;  %v9430_v50 = vmov %v9427_v26  ;;  %v9431_v22 = vrot.slane %v7833_v49, 9  ;;  %v8587_v28 = vadd.f32 %v1511_v1, %v1119_v59  ;;  %5953 = vmatmul.mubr.msk.bf16.gmra.mxu0 %vm675_vm3, %v5318_v6  ;;  %v9433_v6 = vld [vmem:[#allocation45_spill] sm:$0xff]  ;;  %v1527_v8 = vpop.f32.mrf.mxu0  ;;  %v5716_v46 = vpop.f32.mrf.mxu1  ;;  %v9434_v26 = vld [vmem:[#allocation55_spill] sm:$0xff]  ;;  %s4809_s11 = sshll.u32 %s8914_s9, 4  ;;  %s9011_s11 = int_to_ptr.vmem [resolvable:$true] %s4809_s11 }
 0x15d   : > { %v1130_v57 = vadd.f32 %v5713_v44, %v9432_v14  ;;  %v4253_v18 = vsel %vm6587_vm7, %v4251_v61, %v4252_v32  ;;  %v3806_v16 = vrot.slane %v3805_v54, 4  ;;  %v4263_v52 = vrot.slane %v7925_v7, 5  ;;  %5956 = vmatprep.mubr.msk.bf16.mxu0 %vm675_vm3, %v5319_v10  ;;  %v9435_v61 = vld [vmem:[#allocation57_spill] sm:$0xff]  ;;  %5922 = vmatprep.mubr.msk.bf16.mxu1 %vm675_vm3, %v5270_v35  ;;  %s6082_s23 = scalar_lea.vmem %s9011_s11, 2048  ;;  %p6089_p1 = scmp.lt.s32.totalorder %s9011_s11, %s6087_s27 }
 0x15e   : > { %v4250_v36 = vsel %vm6587_vm7, %v9431_v22, %v9430_v50  ;;  %v3787_v49 = vsel %vm6302_vm4, %v8552_v19, %v9425_v4  ;;  %v3816_v25 = vrot.slane %v3815_v51, 4  ;;  %v3820_v1 = vrot.slane %v3818_v40, 5  ;;  %v5751_v10 = vpop.f32.mrf.mxu0  ;;  %v1134_v40 = vpop.f32.mrf.mxu1  ;;  %p6083_p12 = scmp.ne.s32.totalorder %s9011_s11, %s6082_s23  ;;  %p6090_p2 = scmp.lt.s32.totalorder %s6088_s28, %s6082_s23 }
 0x15f   : > { %v8600_v48 = vadd.f32 %v5747_v29, %v1130_v57  ;;  %v1122_v24 = vadd.f32 %v1121_v39, %v9433_v6  ;;  %v4257_v63 = vsel %vm6587_vm7, %v5304_v9, %v4256_v60  ;;  %v4260_v7 = vsel %vm6587_vm7, %v4258_v21, %v4259_v23  ;;  %v9437_v29 = vld [vmem:[#allocation61_spill] sm:$0xff]  ;;  %v9438_v60 = vld [vmem:[#allocation47_spill] sm:$0xff] }
 0x160   : > { %v3797_v19 = vsel %vm6302_vm4, %v3792_v30, %v3796_v33  ;;  %v5320_v4 = vcombine.low %v4250_v36, %v4253_v18  ;;  %v3829_v13 = vor.u32 %v9435_v61, %v9434_v26  ;;  %v3839_v32 = vor.u32 %v9437_v29, %v9436_v45  ;;  %v1530_v30 = vpop.f32.mrf.mxu0  ;;  %v5717_v33 = vpop.f32.mrf.mxu1  ;;  %v9444_v61 = vld [vmem:[#allocation9_spill] sm:$0xff]  ;;  %p6084_p13 = pnand %p6083_p12, %p6223_p4  ;;  %p6091_p3 = por %p6090_p2, %p6089_p1 }
 0x161   : > { %v8615_v54 = vadd.f32 %v1514_v38, %v1122_v24  ;;  %v1143_v15 = vadd.f32 %v5716_v46, %v9438_v60  ;;  %v3811_v62 = vsel %vm6302_vm4, %v3806_v16, %v8554_v20  ;;  %v3842_v51 = vshll.u32 %v5223_v41, 16  ;;  %v9439_v38 = vld [vmem:[#allocation53_spill] sm:$0xff]  ;;  %v9440_v20 = vld [vmem:[#allocation56_spill] sm:$0xff] }
 0x162   : > { %v3821_v9 = vsel %vm6302_vm4, %v3816_v25, %v3820_v1  ;;  %v5321_v12 = vcombine.low %v4257_v63, %v4260_v7  ;;  %v4265_v59 = vrot.slane %v4263_v52, 4  ;;  %v4266_v21 = vrot.slane %v5223_v41, 5  ;;  %v5754_v57 = vpop.f32.mrf.mxu0  ;;  %v1137_v39 = vpop.f32.mrf.mxu1  ;;  %v9442_v41 = vld [vmem:[#allocation60_spill] sm:$0xff]  ;;  %p6085_p0 = pneg %p6084_p13 }
 0x163   : > { %v8624_v23 = vadd.f32 %v5750_v43, %v1143_v15  ;;  %v1135_v44 = vadd.f32 %v1134_v40, %v9439_v38  ;;  %v5271_v50 = vcombine.low %v3787_v49, %v3797_v19  ;;  %v3830_v35 = vrot.slane %v3829_v13, 4  ;;  %v9445_v15 = vld [vmem:[#allocation14_spill] sm:$0xff]  ;;  %v9447_v38 = vld [vmem:[#allocation28_spill] sm:$0xff] }
 0x164   : > { %v3840_v22 = vrot.slane %v3839_v32, 4  ;;  %v1146_v14 = vadd.f32 %v5717_v33, %v9440_v20  ;;  %5957 = vmatmul.mubr.msk.bf16.gmra.mxu0 %vm675_vm3, %v5320_v4  ;;  %v5272_v18 = vcombine.low %v3811_v62, %v3821_v9  ;;  %v3844_v16 = vrot.slane %v3842_v51, 5  ;;  %v1543_v24 = vpop.f32.mrf.mxu0  ;;  %p6092_p5 = pnand %p6091_p3, %p6085_p0 }
 0x165   : > { %v8627_v36 = vadd.f32 %v1527_v8, %v1135_v44  ;;  %5960 = vmatprep.mubr.msk.bf16.mxu0 %vm675_vm3, %v5321_v12  ;;  %v9441_v43 = vrot.slane %v7913_v42, 9  ;;  %v4267_v49 = vsel %vm6587_vm7, %v4265_v59, %v4266_v21  ;;  %v1138_v6 = vadd.f32 %v1137_v39, %v9442_v41  ;;  %v5720_v8 = vpop.f32.mrf.mxu1  ;;  %5923 = vmatmul.mubr.msk.bf16.gmra.mxu1 %vm675_vm3, %v5271_v50  ;;  %v9443_v42 = vld [vmem:[#allocation11_spill] sm:$0xff] }
 0x166   : > { %v8638_v1 = vadd.f32 %v5751_v10, %v1146_v14  ;;  %v3835_v63 = vsel %vm6302_vm4, %v3830_v35, %v9436_v45  ;;  %v1159_v46 = vadd.f32 %v5720_v8, %v9443_v42  ;;  %5926 = vmatprep.mubr.msk.bf16.mxu1 %vm675_vm3, %v5272_v18  ;;  %v3845_v31 = vsel %vm6302_vm4, %v3840_v22, %v3844_v16  ;;  %v9448_v35 = vld [vmem:[#allocation5_spill] sm:$0xff]  ;;  %v9449_v18 = vld [vmem:[#allocation12_spill] sm:$0xff] }
 0x167   : > { %v4264_v25 = vsel %vm6587_vm7, %v9441_v43, %v4263_v52  ;;  %v8645_v7 = vadd.f32 %v1530_v30, %v1138_v6  ;;  %v5755_v52 = vpop.f32.mrf.mxu0  ;;  %v1150_v4 = vpop.f32.mrf.mxu1  ;;  %v5273_v60 = vcombine.low %v3835_v63, %v3845_v31  ;;  %v9451_v63 = vld [vmem:[#allocation13_spill] sm:$0xff] }
 0x168   : > { %v5322_v19 = vcombine.low %v4264_v25, %v4267_v49  ;;  %v8651_v26 = vadd.f32 %v5754_v57, %v1159_v46  ;;  %v1151_v13 = vadd.f32 %v1150_v4, %v9444_v61  ;;  %v9450_v49 = vld [vmem:[#allocation15_spill] sm:$0xff] }
 0x169   : > { %v1546_v29 = vpop.f32.mrf.mxu0  ;;  %v5721_v32 = vpop.f32.mrf.mxu1 }
 0x16a   : > { %v8654_v45 = vadd.f32 %v1543_v24, %v1151_v13  ;;  %v1162_v10 = vadd.f32 %v5721_v32, %v9445_v15  ;;  %v9453_v32 = vld [vmem:[#allocation7_spill] sm:$0xff] }
 0x16b   : > { %v5758_v62 = vpop.f32.mrf.mxu0  ;;  %v1153_v51 = vpop.f32.mrf.mxu1 }
 0x16c   : > { %5961 = vmatmul.mubr.msk.bf16.gmra.mxu0 %vm675_vm3, %v5322_v19  ;;  %v8658_v40 = vadd.f32 %v5755_v52, %v1162_v10  ;;  %v1154_v9 = vadd.f32 %v1153_v51, %v9446_v56  ;;  %v9452_v19 = vld [vmem:[#allocation16_spill] sm:$0xff]  ;;  %v9454_v51 = vld [vmem:[#allocation10_spill] sm:$0xff] }
 0x16d   : > { %v1559_v12 = vpop.f32.mrf.mxu0  ;;  %v5724_v59 = vpop.f32.mrf.mxu1  ;;  %5927 = vmatmul.mubr.msk.bf16.gmra.mxu1 %vm675_vm3, %v5273_v60 }
 0x16e   : > { %v8662_v21 = vadd.f32 %v1546_v29, %v1154_v9  ;;  %v1175_v44 = vadd.f32 %v5724_v59, %v9447_v38 }
 0x16f   : > { %v5759_v30 = vpop.f32.mrf.mxu0  ;;  %v1166_v33 = vpop.f32.mrf.mxu1 }
 0x170   : > { %v8665_v50 = vadd.f32 %v5758_v62, %v1175_v44  ;;  %v1167_v22 = vadd.f32 %v1166_v33, %v9448_v35 }
 0x171   : > { %v1562_v20 = vpop.f32.mrf.mxu0  ;;  %v5725_v14 = vpop.f32.mrf.mxu1 }
 0x172   : > { %v8668_v57 = vadd.f32 %v1559_v12, %v1167_v22  ;;  %v1178_v16 = vadd.f32 %v5725_v14, %v9449_v18 }
 0x173   : > { %v5798_v39 = vpop.f32.mrf.mxu0  ;;  %v1169_v43 = vpop.f32.mrf.mxu1 }
 0x174   : > { %v8671_v25 = vadd.f32 %v5759_v30, %v1178_v16  ;;  %v1170_v41 = vadd.f32 %v1169_v43, %v9450_v49 }
 0x175   : > { %v2503_v6 = vpop.f32.mrf.mxu0  ;;  %v5764_v24 = vpop.f32.mrf.mxu1 }
 0x176   : > { %v8674_v8 = vadd.f32 %v1562_v20, %v1170_v41  ;;  %v1954_v42 = vadd.f32 %v5764_v24, %v9451_v63 }
 0x177   : > { %v5799_v46 = vpop.f32.mrf.mxu0  ;;  %v1825_v52 = vpop.f32.mrf.mxu1 }
 0x178   : > { %v8677_v31 = vadd.f32 %v5798_v39, %v1954_v42  ;;  %v1952_v4 = vadd.f32 %v1825_v52, %v9452_v19 }
 0x179   : > { %v2506_v61 = vpop.f32.mrf.mxu0  ;;  %v5765_v13 = vpop.f32.mrf.mxu1 }
 0x17a   : > { %v8680_v29 = vadd.f32 %v2503_v6, %v1952_v4  ;;  %v1955_v60 = vadd.f32 %v5765_v13, %v9453_v32 }
 0x17b   : > { %v5802_v15 = vpop.f32.mrf.mxu0  ;;  %v1828_v10 = vpop.f32.mrf.mxu1 }
 0x17c   : > { %v8683_v62 = vadd.f32 %v5799_v46, %v1955_v60  ;;  %v1953_v56 = vadd.f32 %v1828_v10, %v9454_v51 }
 0x17d   : > { %v2519_v9 = vpop.f32.mrf.mxu0  ;;  %v5768_v12 = vpop.f32.mrf.mxu1 }
 0x17e   : > { %v8686_v59 = vadd.f32 %v2506_v61, %v1953_v56  ;;  %v1958_v38 = vadd.f32 %v5768_v12, %v8398_v47 }
 0x17f   : > { %v5803_v44 = vpop.f32.mrf.mxu0  ;;  %v1841_v30 = vpop.f32.mrf.mxu1 }
 0x180   : > { %v8689_v33 = vadd.f32 %v5802_v15, %v1958_v38  ;;  %v1956_v35 = vadd.f32 %v1841_v30, %v8417_v37 }
 0x181   : > { %v2522_v22 = vpop.f32.mrf.mxu0  ;;  %v5769_v20 = vpop.f32.mrf.mxu1 }
 0x182   : > { %v8692_v14 = vadd.f32 %v2519_v9, %v1956_v35  ;;  %v1959_v18 = vadd.f32 %v5769_v20, %v8432_v0 }
 0x183   : > { %v5806_v16 = vpop.f32.mrf.mxu0  ;;  %v1844_v39 = vpop.f32.mrf.mxu1 }
 0x184   : > { %v8695_v43 = vadd.f32 %v5803_v44, %v1959_v18  ;;  %v1957_v49 = vadd.f32 %v1844_v39, %v8445_v58 }
 0x185   : > { %v2535_v41 = vpop.f32.mrf.mxu0  ;;  %v5772_v47 = vpop.f32.mrf.mxu1 }
 0x186   : > { %v8698_v6 = vadd.f32 %v2522_v22, %v1957_v49  ;;  %v1962_v24 = vadd.f32 %v5772_v47, %v8465_v55 }
 0x187   : > { %v5807_v63 = vpop.f32.mrf.mxu0  ;;  %v1857_v37 = vpop.f32.mrf.mxu1 }
 0x188   : > { %v8701_v42 = vadd.f32 %v5806_v16, %v1962_v24  ;;  %v1960_v46 = vadd.f32 %v1857_v37, %v8474_v3 }
 0x189   : > { %v2538_v52 = vpop.f32.mrf.mxu0  ;;  %v5773_v0 = vpop.f32.mrf.mxu1 }
 0x18a   : > { %v8704_v19 = vadd.f32 %v2535_v41, %v1960_v46  ;;  %v1963_v4 = vadd.f32 %v5773_v0, %v8498_v2 }
 0x18b   : > { %v5810_v61 = vpop.f32.mrf.mxu0  ;;  %v1860_v58 = vpop.f32.mrf.mxu1 }
 0x18c   : > { %v8707_v13 = vadd.f32 %v5807_v63, %v1963_v4  ;;  %v1961_v32 = vadd.f32 %v1860_v58, %v8509_v11 }
 0x18d   : > { %v2551_v60 = vpop.f32.mrf.mxu0  ;;  %v5776_v55 = vpop.f32.mrf.mxu1 }
 0x18e   : > { %v8710_v15 = vadd.f32 %v2538_v52, %v1961_v32  ;;  %v1966_v10 = vadd.f32 %v5776_v55, %v8531_v17 }
 0x18f   : > { %v5811_v51 = vpop.f32.mrf.mxu0  ;;  %v1873_v3 = vpop.f32.mrf.mxu1 }
 0x190   : > { %v8713_v56 = vadd.f32 %v5810_v61, %v1966_v10  ;;  %v1964_v9 = vadd.f32 %v1873_v3, %v8540_v5 }
 0x191   : > { %v2554_v12 = vpop.f32.mrf.mxu0  ;;  %v5777_v2 = vpop.f32.mrf.mxu1 }
 0x192   : > { %v8716_v38 = vadd.f32 %v2551_v60, %v1964_v9  ;;  %v1967_v44 = vadd.f32 %v5777_v2, %v8558_v53 }
 0x193   : > { %v5814_v30 = vpop.f32.mrf.mxu0  ;;  %v1876_v11 = vpop.f32.mrf.mxu1 }
 0x194   : > { %v8719_v35 = vadd.f32 %v5811_v51, %v1967_v44  ;;  %v1965_v22 = vadd.f32 %v1876_v11, %v8572_v27 }
 0x195   : > { %v2567_v20 = vpop.f32.mrf.mxu0  ;;  %v5780_v17 = vpop.f32.mrf.mxu1 }
 0x196   : > { %v8722_v18 = vadd.f32 %v2554_v12, %v1965_v22  ;;  %v1970_v16 = vadd.f32 %v5780_v17, %v8578_v34 }
 0x197   : > { %v5815_v39 = vpop.f32.mrf.mxu0  ;;  %v1889_v5 = vpop.f32.mrf.mxu1 }
 0x198   : > { %v8725_v49 = vadd.f32 %v5814_v30, %v1970_v16  ;;  %v1968_v41 = vadd.f32 %v1889_v5, %v8587_v28 }
 0x199   : > { %v2570_v47 = vpop.f32.mrf.mxu0  ;;  %v5781_v53 = vpop.f32.mrf.mxu1 }
 0x19a   : > { %v8728_v24 = vadd.f32 %v2567_v20, %v1968_v41  ;;  %v1971_v63 = vadd.f32 %v5781_v53, %v8600_v48 }
 0x19b   : > { %v5818_v37 = vpop.f32.mrf.mxu0  ;;  %v1892_v27 = vpop.f32.mrf.mxu1 }
 0x19c   : > { %v8731_v46 = vadd.f32 %v5815_v39, %v1971_v63  ;;  %v1969_v52 = vadd.f32 %v1892_v27, %v8615_v54 }
 0x19d   : > { %v2583_v0 = vpop.f32.mrf.mxu0  ;;  %v5784_v34 = vpop.f32.mrf.mxu1 }
 0x19e   : > { %v8734_v4 = vadd.f32 %v2570_v47, %v1969_v52  ;;  %v1974_v61 = vadd.f32 %v5784_v34, %v8624_v23 }
 0x19f   : > { %v5819_v58 = vpop.f32.mrf.mxu0  ;;  %v1905_v28 = vpop.f32.mrf.mxu1 }
 0x1a0   : > { %v8737_v32 = vadd.f32 %v5818_v37, %v1974_v61  ;;  %v1972_v60 = vadd.f32 %v1905_v28, %v8627_v36 }
 0x1a1   : > { %v2586_v55 = vpop.f32.mrf.mxu0  ;;  %v5785_v48 = vpop.f32.mrf.mxu1 }
 0x1a2   : > { %v8740_v10 = vadd.f32 %v2583_v0, %v1972_v60  ;;  %v1975_v51 = vadd.f32 %v5785_v48, %v8638_v1 }
 0x1a3   : > { %v5822_v3 = vpop.f32.mrf.mxu0  ;;  %v1908_v54 = vpop.f32.mrf.mxu1 }
 0x1a4   : > { %v8743_v9 = vadd.f32 %v5819_v58, %v1975_v51  ;;  %v1973_v12 = vadd.f32 %v1908_v54, %v8645_v7 }
 0x1a5   : > { %v2599_v2 = vpop.f32.mrf.mxu0  ;;  %v5788_v23 = vpop.f32.mrf.mxu1 }
 0x1a6   : > { %v8746_v44 = vadd.f32 %v2586_v55, %v1973_v12  ;;  %v1978_v30 = vadd.f32 %v5788_v23, %v8651_v26 }
 0x1a7   : > { %v5823_v11 = vpop.f32.mrf.mxu0  ;;  %v1921_v36 = vpop.f32.mrf.mxu1 }
 0x1a8   : > { %v8749_v22 = vadd.f32 %v5822_v3, %v1978_v30  ;;  %v1976_v20 = vadd.f32 %v1921_v36, %v8654_v45 }
 0x1a9   : > { %v2602_v17 = vpop.f32.mrf.mxu0  ;;  %v5789_v1 = vpop.f32.mrf.mxu1 }
 0x1aa   : > { %v8752_v16 = vadd.f32 %v2599_v2, %v1976_v20  ;;  %v1979_v39 = vadd.f32 %v5789_v1, %v8658_v40 }
 0x1ab   : > { %v5826_v5 = vpop.f32.mrf.mxu0  ;;  %v1924_v7 = vpop.f32.mrf.mxu1 }
 0x1ac   : > { %v8755_v41 = vadd.f32 %v5823_v11, %v1979_v39  ;;  %v1977_v47 = vadd.f32 %v1924_v7, %v8662_v21 }
 0x1ad   : > { %v2615_v53 = vpop.f32.mrf.mxu0  ;;  %v5792_v26 = vpop.f32.mrf.mxu1 }
 0x1ae   : > { %9455 = vst [vmem:[#allocation8_spill] sm:$0xff] %v8755_v41  ;;  %v8758_v63 = vadd.f32 %v2602_v17, %v1977_v47  ;;  %v1982_v37 = vadd.f32 %v5792_v26, %v8665_v50 }
 0x1af   : > { %v5827_v27 = vpop.f32.mrf.mxu0  ;;  %v1937_v45 = vpop.f32.mrf.mxu1 }
 0x1b0   : > { %9456 = vst [vmem:[#allocation18_spill] sm:$0xff] %v8758_v63  ;;  %v8761_v52 = vadd.f32 %v5826_v5, %v1982_v37  ;;  %v1980_v0 = vadd.f32 %v1937_v45, %v8668_v57 }
 0x1b1   : > { %v2618_v34 = vpop.f32.mrf.mxu0  ;;  %v5793_v40 = vpop.f32.mrf.mxu1 }
 0x1b2   : > { %v8764_v61 = vadd.f32 %v2615_v53, %v1980_v0  ;;  %v1983_v58 = vadd.f32 %v5793_v40, %v8671_v25 }
 0x1b3   : > { %v5866_v28 = vpop.f32.mrf.mxu0  ;;  %v1940_v21 = vpop.f32.mrf.mxu1 }
 0x1b4   : > { %v8767_v60 = vadd.f32 %v5827_v27, %v1983_v58  ;;  %v1981_v55 = vadd.f32 %v1940_v21, %v8674_v8 }
 0x1b5   : > { %v3303_v48 = vpop.f32.mrf.mxu0  ;;  %v5832_v50 = vpop.f32.mrf.mxu1 }
 0x1b6   : > { %9457 = vst [vmem:[#allocation29_spill] sm:$0xff] %v8767_v60  ;;  %v8770_v51 = vadd.f32 %v2618_v34, %v1981_v55  ;;  %v3054_v3 = vadd.f32 %v5832_v50, %v8677_v31 }
 0x1b7   : > { %v8773_v54 = vpop.f32.mrf.mxu0  ;;  %v2925_v57 = vpop.f32.mrf.mxu1 }
 0x1b8   : > { %9458 = vst [vmem:[#allocation21_spill] sm:$0xff] %v8770_v51  ;;  %v8775_v12 = vadd.f32 %v5866_v28, %v3054_v3  ;;  %v3052_v2 = vadd.f32 %v2925_v57, %v8680_v29 }
 0x1b9   : > { %v8778_v25 = vpop.f32.mrf.mxu0  ;;  %v8780_v23 = vpop.f32.mrf.mxu1 }
 0x1ba   : > { %v8782_v30 = vadd.f32 %v3303_v48, %v3052_v2 }
 0x1bb   : > { %v5870_v8 = vpop.f32.mrf.mxu0  ;;  %v8784_v11 = vpop.f32.mrf.mxu1 }
 0x1bd   : > { %v3319_v36 = vpop.f32.mrf.mxu0  ;;  %v5836_v20 = vpop.f32.mrf.mxu1 }
 0x1be   : > { %v3058_v31 = vadd.f32 %v5836_v20, %v8689_v33 }
 0x1bf   : > { %v8787_v17 = vpop.f32.mrf.mxu0  ;;  %v2941_v1 = vpop.f32.mrf.mxu1 }
 0x1c0   : > { %v8789_v39 = vadd.f32 %v5870_v8, %v3058_v31  ;;  %v3056_v29 = vadd.f32 %v2941_v1, %v8692_v14 }
 0x1c1   : > { %v8792_v5 = vpop.f32.mrf.mxu0  ;;  %v8794_v7 = vpop.f32.mrf.mxu1 }
 0x1c2   : > { %v8796_v47 = vadd.f32 %v3319_v36, %v3056_v29 }
 0x1c3   : > { %v5874_v53 = vpop.f32.mrf.mxu0  ;;  %v8798_v26 = vpop.f32.mrf.mxu1 }
 0x1c5   : > { %v3335_v37 = vpop.f32.mrf.mxu0  ;;  %v5840_v27 = vpop.f32.mrf.mxu1 }
 0x1c6   : > { %v3062_v33 = vadd.f32 %v5840_v27, %v8701_v42 }
 0x1c7   : > { %v8801_v45 = vpop.f32.mrf.mxu0  ;;  %v2957_v0 = vpop.f32.mrf.mxu1 }
 0x1c8   : > { %v8803_v34 = vadd.f32 %v5874_v53, %v3062_v33  ;;  %v3060_v14 = vadd.f32 %v2957_v0, %v8704_v19 }
 0x1c9   : > { %v8806_v40 = vpop.f32.mrf.mxu0  ;;  %v8808_v58 = vpop.f32.mrf.mxu1 }
 0x1ca   : > { %v8810_v28 = vadd.f32 %v3335_v37, %v3060_v14 }
 0x1cb   : > { %v5878_v21 = vpop.f32.mrf.mxu0  ;;  %v8812_v55 = vpop.f32.mrf.mxu1 }
 0x1cd   : > { %v3351_v48 = vpop.f32.mrf.mxu0  ;;  %v5844_v50 = vpop.f32.mrf.mxu1 }
 0x1ce   : > { %v3066_v42 = vadd.f32 %v5844_v50, %v8713_v56 }
 0x1cf   : > { %v8815_v3 = vpop.f32.mrf.mxu0  ;;  %v2973_v57 = vpop.f32.mrf.mxu1 }
 0x1d0   : > { %v8817_v2 = vadd.f32 %v5878_v21, %v3066_v42  ;;  %v3064_v19 = vadd.f32 %v2973_v57, %v8716_v38 }
 0x1d1   : > { %v8820_v8 = vpop.f32.mrf.mxu0  ;;  %v8822_v36 = vpop.f32.mrf.mxu1 }
 0x1d2   : > { %v8824_v20 = vadd.f32 %v3351_v48, %v3064_v19 }
 0x1d3   : > { %v5882_v31 = vpop.f32.mrf.mxu0  ;;  %v8826_v1 = vpop.f32.mrf.mxu1 }
 0x1d5   : > { %v3367_v29 = vpop.f32.mrf.mxu0  ;;  %v5848_v53 = vpop.f32.mrf.mxu1 }
 0x1d6   : > { %v3070_v56 = vadd.f32 %v5848_v53, %v8725_v49 }
 0x1d7   : > { %v8829_v37 = vpop.f32.mrf.mxu0  ;;  %v2989_v27 = vpop.f32.mrf.mxu1 }
 0x1d8   : > { %v8831_v33 = vadd.f32 %v5882_v31, %v3070_v56  ;;  %v3068_v38 = vadd.f32 %v2989_v27, %v8728_v24 }
 0x1d9   : > { %v8834_v0 = vpop.f32.mrf.mxu0  ;;  %v8836_v14 = vpop.f32.mrf.mxu1 }
 0x1da   : > { %v8838_v21 = vadd.f32 %v3367_v29, %v3068_v38 }
 0x1db   : > { %v5886_v48 = vpop.f32.mrf.mxu0  ;;  %v8840_v50 = vpop.f32.mrf.mxu1 }
 0x1dd   : > { %v3383_v42 = vpop.f32.mrf.mxu0  ;;  %v5852_v57 = vpop.f32.mrf.mxu1 }
 0x1de   : > { %v3074_v49 = vadd.f32 %v5852_v57, %v8737_v32 }
 0x1df   : > { %v8843_v19 = vpop.f32.mrf.mxu0  ;;  %v3005_v53 = vpop.f32.mrf.mxu1 }
 0x1e0   : > { %9459 = vst [vmem:[#allocation19_spill] sm:$0xff] %v8843_v19  ;;  %v8845_v31 = vadd.f32 %v5886_v48, %v3074_v49  ;;  %v3072_v24 = vadd.f32 %v3005_v53, %v8740_v10 }
 0x1e1   : > { %v8848_v56 = vpop.f32.mrf.mxu0  ;;  %v8850_v27 = vpop.f32.mrf.mxu1 }
 0x1e2   : > { %9460 = vst [vmem:[#allocation20_spill] sm:$0xff] %v8848_v56  ;;  %v8852_v29 = vadd.f32 %v3383_v42, %v3072_v24 }
 0x1e3   : > { %v5890_v38 = vpop.f32.mrf.mxu0  ;;  %v8854_v51 = vpop.f32.mrf.mxu1 }
 0x1e4   : > { %9461 = vst [vmem:[#allocation30_spill] sm:$0xff] %v8852_v29 }
 0x1e5   : > { %v3399_v60 = vpop.f32.mrf.mxu0  ;;  %v5856_v63 = vpop.f32.mrf.mxu1 }
 0x1e6   : > { %v3078_v32 = vadd.f32 %v5856_v63, %v8749_v22 }
 0x1e7   : > { %v8857_v57 = vpop.f32.mrf.mxu0  ;;  %v3021_v41 = vpop.f32.mrf.mxu1 }
 0x1e8   : > { %9462 = vst [vmem:[#allocation31_spill] sm:$0xff] %v8857_v57  ;;  %v8859_v48 = vadd.f32 %v5890_v38, %v3078_v32  ;;  %v3076_v10 = vadd.f32 %v3021_v41, %v8752_v16 }
 0x1e9   : > { %v8862_v49 = vpop.f32.mrf.mxu0  ;;  %v8864_v53 = vpop.f32.mrf.mxu1 }
 0x1ea   : > { %9463 = vst [vmem:[#allocation32_spill] sm:$0xff] %v8862_v49  ;;  %v8866_v42 = vadd.f32 %v3399_v60, %v3076_v10 }
 0x1eb   : > { %v5894_v24 = vpop.f32.mrf.mxu0  ;;  %v8868_v56 = vpop.f32.mrf.mxu1 }
 0x1ec   : > { %9464 = vst [vmem:[#allocation37_spill] sm:$0xff] %v8866_v42  ;;  %v3055_v42 = vadd.f32 %v8780_v23, %v8683_v62  ;;  %v8894_v62 = vld [vmem:[%s9064_s2] ss:$0 sm:$0xff] }
 0x1ed   : > { %v3415_v29 = vpop.f32.mrf.mxu0  ;;  %v5860_v19 = vpop.f32.mrf.mxu1 }
 0x1ee   : > { %v3082_v22 = vadd.f32 %v5860_v19, %v8761_v52 }
 0x1ef   : > { %v8871_v63 = vpop.f32.mrf.mxu0  ;;  %v3037_v57 = vpop.f32.mrf.mxu1 }
 0x1f0   : > { %9465 = vst [vmem:[#allocation24_spill] sm:$0xff] %v8871_v63  ;;  %v8873_v38 = vadd.f32 %v5894_v24, %v3082_v22  ;;  %v3080_v16 = vadd.f32 %v3037_v57, %v8764_v61  ;;  %v3053_v24 = vadd.f32 %v8784_v11, %v8686_v59 }
 0x1f1   : > { %v8876_v41 = vpop.f32.mrf.mxu0  ;;  %v8878_v32 = vpop.f32.mrf.mxu1 }
 0x1f2   : > { %9466 = vst [vmem:[#allocation36_spill] sm:$0xff] %v8873_v38  ;;  %9467 = vst [vmem:[#allocation34_spill] sm:$0xff] %v8876_v41  ;;  %v8880_v60 = vadd.f32 %v3415_v29, %v3080_v16  ;;  %v3433_v41 = vadd.f32 %v8773_v54, %v3055_v42 }
 0x1f3   : > { %v5934_v10 = vpop.f32.mrf.mxu0  ;;  %v8882_v49 = vpop.f32.mrf.mxu1 }
 0x1f4   : > { %9468 = vst [vmem:[#allocation40_spill] sm:$0xff] %v8880_v60  ;;  %9469 = vst [vmem:[#allocation33_spill] sm:$0xff] %v8882_v49  ;;  %v3431_v60 = vadd.f32 %v8778_v25, %v3053_v24 }
 0x1f5   : > { %v4403_v52 = vpop.f32.mrf.mxu0  ;;  %v5900_v19 = vpop.f32.mrf.mxu1 }
 0x1f6   : > { %v4110_v61 = vadd.f32 %v5900_v19, %v8775_v12 }
 0x1f7   : > { %v5935_v57 = vpop.f32.mrf.mxu0  ;;  %v3981_v22 = vpop.f32.mrf.mxu1 }
 0x1f8   : > { %v4532_v29 = vadd.f32 %v5934_v10, %v4110_v61  ;;  %v4108_v16 = vadd.f32 %v3981_v22, %v8782_v30  ;;  %v3059_v61 = vadd.f32 %v8794_v7, %v8695_v43  ;;  %v3057_v22 = vadd.f32 %v8798_v26, %v8698_v6 }
 0x1f9   : > { %v4406_v63 = vpop.f32.mrf.mxu0  ;;  %v5901_v23 = vpop.f32.mrf.mxu1 }
 0x1fa   : > { %v4530_v59 = vadd.f32 %v4403_v52, %v4108_v16  ;;  %v4111_v11 = vadd.f32 %v5901_v23, %v3433_v41  ;;  %v4571_v54 = vadd.f32 %v8894_v62, %v4532_v29  ;;  %v3437_v6 = vadd.f32 %v8787_v17, %v3059_v61 }
 0x1fb   : > { %v5938_v12 = vpop.f32.mrf.mxu0  ;;  %v3984_v19 = vpop.f32.mrf.mxu1  ;;  %v3435_v26 = vadd.f32 %v8792_v5, %v3057_v22 }
 0x1fc   : > { %v4533_v42 = vadd.f32 %v5935_v57, %v4111_v11  ;;  %v4109_v10 = vadd.f32 %v3984_v19, %v3431_v60  ;;  %v4569_v49 = vadd.f32 %v8894_v62, %v4530_v59  ;;  %v4603_v60 = vmax.f32 %v4571_v54, 0.0 }
 0x1fd   : > { %v4419_v30 = vpop.f32.mrf.mxu0  ;;  %v5904_v38 = vpop.f32.mrf.mxu1  ;;  %v3063_v54 = vadd.f32 %v8808_v58, %v8707_v13  ;;  %v3061_v13 = vadd.f32 %v8812_v55, %v8710_v15 }
 0x1fe   : > { %v4572_v25 = vadd.f32 %v8894_v62, %v4533_v42  ;;  %v4531_v41 = vadd.f32 %v4406_v63, %v4109_v10  ;;  %v4114_v52 = vadd.f32 %v5904_v38, %v8789_v39  ;;  %v4601_v11 = vmax.f32 %v4569_v49, 0.0 }
 0x1ff   : > { %v5939_v24 = vpop.f32.mrf.mxu0  ;;  %v3997_v57 = vpop.f32.mrf.mxu1  ;;  %v3439_v55 = vadd.f32 %v8806_v40, %v3061_v13 }
 0x200   : > { %v4604_v29 = vmax.f32 %v4572_v25, 0.0  ;;  %v4570_v16 = vadd.f32 %v8894_v62, %v4531_v41  ;;  %v4112_v43 = vadd.f32 %v3997_v57, %v8796_v47  ;;  %v4536_v23 = vadd.f32 %v5938_v12, %v4114_v52 }
 0x201   : > { %v4422_v7 = vpop.f32.mrf.mxu0  ;;  %v5905_v59 = vpop.f32.mrf.mxu1  ;;  %v3441_v57 = vadd.f32 %v8801_v45, %v3063_v54  ;;  %v3067_v45 = vadd.f32 %v8822_v36, %v8719_v35  ;;  %v3065_v54 = vadd.f32 %v8826_v1, %v8722_v18 }
 0x202   : > { %v5418_v19 = vpack.c.bf16 %v4604_v29, %v4603_v60  ;;  %v4602_v63 = vmax.f32 %v4570_v16, 0.0  ;;  %v4534_v42 = vadd.f32 %v4419_v30, %v4112_v43  ;;  %v4115_v38 = vadd.f32 %v5905_v59, %v3437_v6 }
 0x203   : > { %v5942_v39 = vpop.f32.mrf.mxu0  ;;  %v4000_v10 = vpop.f32.mrf.mxu1  ;;  %v4575_v12 = vadd.f32 %v8894_v62, %v4536_v23  ;;  %v3445_v36 = vadd.f32 %v8815_v3, %v3067_v45 }
 0x204   : > { %5490 = vst [vmem:[%s8914_s9 + $0x8] sm:$0xff] %v5418_v19   ;;  %v5413_v17 = vpack.c.bf16 %v4602_v63, %v4601_v11  ;;  %v4113_v47 = vadd.f32 %v4000_v10, %v3435_v26  ;;  %v4537_v49 = vadd.f32 %v5939_v24, %v4115_v38  ;;  %v4573_v30 = vadd.f32 %v8894_v62, %v4534_v42 }
 0x205   : > { %v4435_v5 = vpop.f32.mrf.mxu0  ;;  %v5908_v61 = vpop.f32.mrf.mxu1  ;;  %v4607_v43 = vmax.f32 %v4575_v12, 0.0 }
 0x206   : > { %5414 = vst [vmem:[%s8914_s9] sm:$0xff] %v5413_v17   ;;  %v4535_v22 = vadd.f32 %v4422_v7, %v4113_v47  ;;  %v4118_v25 = vadd.f32 %v5908_v61, %v8803_v34  ;;  %v4576_v58 = vadd.f32 %v8894_v62, %v4537_v49  ;;  %v4605_v34 = vmax.f32 %v4573_v30, 0.0 }
 0x207   : > { %v5943_v41 = vpop.f32.mrf.mxu0  ;;  %v4013_v52 = vpop.f32.mrf.mxu1 }
 0x208   : > { %v4574_v60 = vadd.f32 %v8894_v62, %v4535_v22  ;;  %v4540_v29 = vadd.f32 %v5942_v39, %v4118_v25  ;;  %v4116_v24 = vadd.f32 %v4013_v52, %v8810_v28  ;;  %v4608_v7 = vmax.f32 %v4576_v58, 0.0 }
 0x209   : > { %v4438_v16 = vpop.f32.mrf.mxu0  ;;  %v5909_v6 = vpop.f32.mrf.mxu1 }
 0x20a   : > { %v4606_v26 = vmax.f32 %v4574_v60, 0.0  ;;  %v4119_v23 = vadd.f32 %v5909_v6, %v3441_v57  ;;  %v5428_v59 = vpack.c.bf16 %v4608_v7, %v4607_v43  ;;  %v4538_v11 = vadd.f32 %v4435_v5, %v4116_v24 }
 0x20b   : > { %v4016_v19 = vpop.f32.mrf.mxu1  ;;  %v4579_v28 = vadd.f32 %v8894_v62, %v4540_v29  ;;  %v3071_v43 = vadd.f32 %v8836_v14, %v8731_v46 }
 0x20c   : > { %v5946_v15 = vpop.f32.mrf.mxu0  ;;  %v5423_v63 = vpack.c.bf16 %v4606_v26, %v4605_v34  ;;  %v4541_v42 = vadd.f32 %v5943_v41, %v4119_v23  ;;  %5492 = vst [vmem:[%s8914_s9 + $0x18] sm:$0xff] %v5428_v59   ;;  %v4117_v38 = vadd.f32 %v4016_v19, %v3439_v55  ;;  %v4577_v47 = vadd.f32 %v8894_v62, %v4538_v11 }
 0x20d   : > { %v5912_v10 = vpop.f32.mrf.mxu1  ;;  %v4611_v49 = vmax.f32 %v4579_v28, 0.0  ;;  %v3443_v41 = vadd.f32 %v8820_v8, %v3065_v54  ;;  %v3069_v8 = vadd.f32 %v8840_v50, %v8734_v4  ;;  %v3449_v50 = vadd.f32 %v8829_v37, %v3071_v43 }
 0x20e   : > { %v4451_v39 = vpop.f32.mrf.mxu0  ;;  %5491 = vst [vmem:[%s8914_s9 + $0x10] sm:$0xff] %v5423_v63   ;;  %v4580_v40 = vadd.f32 %v8894_v62, %v4541_v42  ;;  %v4122_v17 = vadd.f32 %v5912_v10, %v8817_v2  ;;  %v4539_v5 = vadd.f32 %v4438_v16, %v4117_v38  ;;  %v4609_v52 = vmax.f32 %v4577_v47, 0.0 }
 0x20f   : > { %v4029_v12 = vpop.f32.mrf.mxu1  ;;  %v3447_v19 = vadd.f32 %v8834_v0, %v3069_v8 }
 0x210   : > { %v5947_v35 = vpop.f32.mrf.mxu0  ;;  %v4612_v61 = vmax.f32 %v4580_v40, 0.0  ;;  %v4544_v30 = vadd.f32 %v5946_v15, %v4122_v17  ;;  %v4120_v22 = vadd.f32 %v4029_v12, %v8824_v20  ;;  %v4578_v18 = vadd.f32 %v8894_v62, %v4539_v5 }
 0x211   : > { %v5913_v1 = vpop.f32.mrf.mxu1  ;;  %v3075_v17 = vadd.f32 %v8850_v27, %v8743_v9 }
 0x212   : > { %v4454_v25 = vpop.f32.mrf.mxu0  ;;  %v5438_v2 = vpack.c.bf16 %v4612_v61, %v4611_v49  ;;  %v4542_v13 = vadd.f32 %v4451_v39, %v4120_v22  ;;  %v4123_v58 = vadd.f32 %v5913_v1, %v3445_v36  ;;  %v4610_v57 = vmax.f32 %v4578_v18, 0.0  ;;  %v9470_v22 = vld [vmem:[#allocation19_spill] sm:$0xff] }
 0x213   : > { %v4032_v60 = vpop.f32.mrf.mxu1  ;;  %v4583_v29 = vadd.f32 %v8894_v62, %v4544_v30  ;;  %v3073_v30 = vadd.f32 %v8854_v51, %v8746_v44  ;;  %v9472_v51 = vld [vmem:[#allocation20_spill] sm:$0xff] }
 0x214   : > { %v5950_v3 = vpop.f32.mrf.mxu0  ;;  %5494 = vst [vmem:[%s8914_s9 + $0x28] sm:$0xff] %v5438_v2   ;;  %v4545_v24 = vadd.f32 %v5947_v35, %v4123_v58  ;;  %v4121_v16 = vadd.f32 %v4032_v60, %v3443_v41  ;;  %v5433_v7 = vpack.c.bf16 %v4610_v57, %v4609_v52  ;;  %v4581_v34 = vadd.f32 %v8894_v62, %v4542_v13  ;;  %v9471_v41 = vld [vmem:[#allocation30_spill] sm:$0xff] }
 0x215   : > { %v5916_v6 = vpop.f32.mrf.mxu1  ;;  %v4615_v59 = vmax.f32 %v4583_v29, 0.0  ;;  %v3451_v29 = vadd.f32 %v9472_v51, %v3073_v30  ;;  %v9479_v30 = vld [vmem:[#allocation21_spill] sm:$0xff] }
 0x216   : > { %v4467_v20 = vpop.f32.mrf.mxu0  ;;  %v4584_v26 = vadd.f32 %v8894_v62, %v4545_v24  ;;  %v4543_v23 = vadd.f32 %v4454_v25, %v4121_v16  ;;  %v4126_v15 = vadd.f32 %v5916_v6, %v8831_v33  ;;  %5493 = vst [vmem:[%s8914_s9 + $0x20] sm:$0xff] %v5433_v7   ;;  %v4613_v42 = vmax.f32 %v4581_v34, 0.0  ;;  %v9473_v24 = vld [vmem:[#allocation8_spill] sm:$0xff] }
 0x217   : > { %v4045_v45 = vpop.f32.mrf.mxu1  ;;  %v3453_v25 = vadd.f32 %v9470_v22, %v3075_v17  ;;  %v3079_v16 = vadd.f32 %v8864_v53, %v9473_v24 }
 0x218   : > { %v5951_v55 = vpop.f32.mrf.mxu0  ;;  %v4616_v11 = vmax.f32 %v4584_v26, 0.0  ;;  %v4582_v46 = vadd.f32 %v8894_v62, %v4543_v23  ;;  %v4124_v14 = vadd.f32 %v4045_v45, %v8838_v21  ;;  %v4548_v63 = vadd.f32 %v5950_v3, %v4126_v15 }
 0x219   : > { %v5917_v28 = vpop.f32.mrf.mxu1 }
 0x21a   : > { %v4470_v4 = vpop.f32.mrf.mxu0  ;;  %v5448_v33 = vpack.c.bf16 %v4616_v11, %v4615_v59  ;;  %v4614_v39 = vmax.f32 %v4582_v46, 0.0  ;;  %v4546_v38 = vadd.f32 %v4467_v20, %v4124_v14  ;;  %v4127_v54 = vadd.f32 %v5917_v28, %v3449_v50  ;;  %v9475_v46 = vld [vmem:[#allocation31_spill] sm:$0xff] }
 0x21b   : > { %v4048_v40 = vpop.f32.mrf.mxu1  ;;  %v4587_v37 = vadd.f32 %v8894_v62, %v4548_v63  ;;  %v3457_v14 = vadd.f32 %v9475_v46, %v3079_v16 }
 0x21c   : > { %v5954_v10 = vpop.f32.mrf.mxu0  ;;  %5496 = vst [vmem:[%s8914_s9 + $0x38] sm:$0xff] %v5448_v33   ;;  %v5443_v21 = vpack.c.bf16 %v4614_v39, %v4613_v42  ;;  %v4125_v35 = vadd.f32 %v4048_v40, %v3447_v19  ;;  %v4549_v0 = vadd.f32 %v5951_v55, %v4127_v54  ;;  %v4585_v5 = vadd.f32 %v8894_v62, %v4546_v38  ;;  %v9474_v55 = vld [vmem:[#allocation18_spill] sm:$0xff]  ;;  %v9476_v33 = vld [vmem:[#allocation37_spill] sm:$0xff]  ;;  %v9477_v54 = vld [vmem:[#allocation32_spill] sm:$0xff] }
 0x21d   : > { %v5920_v47 = vpop.f32.mrf.mxu1  ;;  %v4619_v58 = vmax.f32 %v4587_v37, 0.0  ;;  %v3077_v45 = vadd.f32 %v8868_v56, %v9474_v55 }
 0x21e   : > { %v4483_v36 = vpop.f32.mrf.mxu0  ;;  %5495 = vst [vmem:[%s8914_s9 + $0x30] sm:$0xff] %v5443_v21   ;;  %v4547_v12 = vadd.f32 %v4470_v4, %v4125_v35  ;;  %v4130_v49 = vadd.f32 %v5920_v47, %v8845_v31  ;;  %v4588_v9 = vadd.f32 %v8894_v62, %v4549_v0  ;;  %v4617_v31 = vmax.f32 %v4585_v5, 0.0 }
 0x21f   : > { %v4061_v27 = vpop.f32.mrf.mxu1  ;;  %v3455_v40 = vadd.f32 %v9477_v54, %v3077_v45 }
 0x220   : > { %v5955_v61 = vpop.f32.mrf.mxu0  ;;  %v4586_v18 = vadd.f32 %v8894_v62, %v4547_v12  ;;  %v4552_v1 = vadd.f32 %v5954_v10, %v4130_v49  ;;  %v4128_v2 = vadd.f32 %v4061_v27, %v9471_v41  ;;  %v4620_v3 = vmax.f32 %v4588_v9, 0.0  ;;  %v9478_v49 = vld [vmem:[#allocation29_spill] sm:$0xff] }
 0x221   : > { %v5921_v52 = vpop.f32.mrf.mxu1  ;;  %v9480_v9 = vld [vmem:[#allocation33_spill] sm:$0xff] }
 0x222   : > { %v4486_v13 = vpop.f32.mrf.mxu0  ;;  %v4618_v57 = vmax.f32 %v4586_v18, 0.0  ;;  %v4131_v60 = vadd.f32 %v5921_v52, %v3453_v25  ;;  %v5458_v20 = vpack.c.bf16 %v4620_v3, %v4619_v58  ;;  %v4550_v43 = vadd.f32 %v4483_v36, %v4128_v2 }
 0x223   : > { %v4064_v8 = vpop.f32.mrf.mxu1  ;;  %v4591_v6 = vadd.f32 %v8894_v62, %v4552_v1  ;;  %v3081_v27 = vadd.f32 %v9480_v9, %v9479_v30 }
 0x224   : > { %v5958_v44 = vpop.f32.mrf.mxu0  ;;  %v5453_v7 = vpack.c.bf16 %v4618_v57, %v4617_v31  ;;  %v4553_v34 = vadd.f32 %v5955_v61, %v4131_v60  ;;  %5498 = vst [vmem:[%s8914_s9 + $0x48] sm:$0xff] %v5458_v20   ;;  %v4129_v23 = vadd.f32 %v4064_v8, %v3451_v29  ;;  %v4589_v4 = vadd.f32 %v8894_v62, %v4550_v43  ;;  %v9482_v57 = vld [vmem:[#allocation40_spill] sm:$0xff]  ;;  %v9484_v29 = vld [vmem:[#allocation34_spill] sm:$0xff] }
 0x225   : > { %v5924_v15 = vpop.f32.mrf.mxu1  ;;  %v4623_v63 = vmax.f32 %v4591_v6, 0.0  ;;  %v3083_v61 = vadd.f32 %v8878_v32, %v9478_v49  ;;  %v3459_v24 = vadd.f32 %v9484_v29, %v3081_v27 }
 0x226   : > { %v4499_v26 = vpop.f32.mrf.mxu0  ;;  %5497 = vst [vmem:[%s8914_s9 + $0x40] sm:$0xff] %v5453_v7   ;;  %v4592_v59 = vadd.f32 %v8894_v62, %v4553_v34  ;;  %v4134_v11 = vadd.f32 %v5924_v15, %v8859_v48  ;;  %v4551_v50 = vadd.f32 %v4486_v13, %v4129_v23  ;;  %v4621_v36 = vmax.f32 %v4589_v4, 0.0  ;;  %v9481_v13 = vld [vmem:[#allocation36_spill] sm:$0xff] }
 0x227   : > { %v4077_v19 = vpop.f32.mrf.mxu1 }
 0x228   : > { %v5959_v53 = vpop.f32.mrf.mxu0  ;;  %v4624_v28 = vmax.f32 %v4592_v59, 0.0  ;;  %v4556_v42 = vadd.f32 %v5958_v44, %v4134_v11  ;;  %v4132_v39 = vadd.f32 %v4077_v19, %v9476_v33  ;;  %v4590_v56 = vadd.f32 %v8894_v62, %v4551_v50  ;;  %v9483_v44 = vld [vmem:[#allocation24_spill] sm:$0xff] }
 0x229   : > { %v5925_v10 = vpop.f32.mrf.mxu1  ;;  %v3461_v51 = vadd.f32 %v9483_v44, %v3083_v61 }
 0x22a   : > { %v4502_v38 = vpop.f32.mrf.mxu0  ;;  %v5468_v48 = vpack.c.bf16 %v4624_v28, %v4623_v63  ;;  %v4554_v17 = vadd.f32 %v4499_v26, %v4132_v39  ;;  %v4135_v21 = vadd.f32 %v5925_v10, %v3457_v14  ;;  %v4622_v37 = vmax.f32 %v4590_v56, 0.0 }
 0x22b   : > { %v4080_v0 = vpop.f32.mrf.mxu1  ;;  %v4595_v47 = vadd.f32 %v8894_v62, %v4556_v42 }
 0x22c   : > { %v5962_v35 = vpop.f32.mrf.mxu0  ;;  %5500 = vst [vmem:[%s8914_s9 + $0x58] sm:$0xff] %v5468_v48   ;;  %v4557_v5 = vadd.f32 %v5959_v53, %v4135_v21  ;;  %v4133_v12 = vadd.f32 %v4080_v0, %v3455_v40  ;;  %v5463_v22 = vpack.c.bf16 %v4622_v37, %v4621_v36  ;;  %v4593_v1 = vadd.f32 %v8894_v62, %v4554_v17 }
 0x22d   : > { %v5928_v25 = vpop.f32.mrf.mxu1  ;;  %v4627_v52 = vmax.f32 %v4595_v47, 0.0 }
 0x22e   : > { %v4515_v18 = vpop.f32.mrf.mxu0  ;;  %v4596_v41 = vadd.f32 %v8894_v62, %v4557_v5  ;;  %v4555_v2 = vadd.f32 %v4502_v38, %v4133_v12  ;;  %v4138_v58 = vadd.f32 %v5928_v25, %v9481_v13  ;;  %5499 = vst [vmem:[%s8914_s9 + $0x50] sm:$0xff] %v5463_v22   ;;  %v4625_v8 = vmax.f32 %v4593_v1, 0.0 }
 0x22f   : > { %v4093_v3 = vpop.f32.mrf.mxu1 }
 0x230   : > { %v4628_v31 = vmax.f32 %v4596_v41, 0.0  ;;  %v4594_v32 = vadd.f32 %v8894_v62, %v4555_v2  ;;  %v4136_v60 = vadd.f32 %v4093_v3, %v9482_v57  ;;  %v4560_v16 = vadd.f32 %v5962_v35, %v4138_v58  ;;  %v5963_v43 = vpop.f32.mrf.mxu0 }
 0x231   : > { %v5929_v20 = vpop.f32.mrf.mxu1 }
 0x232   : > { %v5478_v7 = vpack.c.bf16 %v4628_v31, %v4627_v52  ;;  %v4626_v6 = vmax.f32 %v4594_v32, 0.0  ;;  %v4558_v34 = vadd.f32 %v4515_v18, %v4136_v60  ;;  %v4139_v26 = vadd.f32 %v5929_v20, %v3461_v51  ;;  %v4518_v11 = vpop.f32.mrf.mxu0 }
 0x233   : > { %v4096_v23 = vpop.f32.mrf.mxu1  ;;  %v4599_v45 = vadd.f32 %v8894_v62, %v4560_v16 }
 0x234   : > { %5502 = vst [vmem:[%s8914_s9 + $0x68] sm:$0xff] %v5478_v7   ;;  %v5473_v15 = vpack.c.bf16 %v4626_v6, %v4625_v8  ;;  %v4137_v55 = vadd.f32 %v4096_v23, %v3459_v24  ;;  %v4561_v59 = vadd.f32 %v5963_v43, %v4139_v26  ;;  %v4597_v53 = vadd.f32 %v8894_v62, %v4558_v34 }
 0x235   : > { %v4631_v50 = vmax.f32 %v4599_v45, 0.0 }
 0x236   : > { %5501 = vst [vmem:[%s8914_s9 + $0x60] sm:$0xff] %v5473_v15   ;;  %v4559_v46 = vadd.f32 %v4518_v11, %v4137_v55  ;;  %v4600_v14 = vadd.f32 %v8894_v62, %v4561_v59  ;;  %v4629_v63 = vmax.f32 %v4597_v53, 0.0 }
 0x238   : > { %v4598_v4 = vadd.f32 %v8894_v62, %v4559_v46  ;;  %v4632_v19 = vmax.f32 %v4600_v14, 0.0 }
 0x23a   : > { %v4630_v28 = vmax.f32 %v4598_v4, 0.0  ;;  %v5488_v42 = vpack.c.bf16 %v4632_v19, %v4631_v50 }
 0x23c   : > { %v5483_v33 = vpack.c.bf16 %v4630_v28, %v4629_v63  ;;  %5504 = vst [vmem:[%s8914_s9 + $0x78] sm:$0xff] %v5488_v42  }
 0x23e   : > { %5503 = vst [vmem:[%s8914_s9 + $0x70] sm:$0xff] %v5483_v33  }
 0x23f   : > { %6095 = shalt.err (!%p6092_p5)
}
 0x240   : > { %s6096_s29 = scalar_lea.hbm %s9009_s21, 2048  ;;  %s6100_s5 = scalar_lea.hbm %s9065_s3, 4096 }
 0x241   : > { %p6097_p6 = scmp.ne.s32.totalorder %s9009_s21, %s6096_s29  ;;  %p6101_p10 = scmp.lt.s32.totalorder %s9009_s21, %s9065_s3 }
 0x242   : > { %p6102_p11 = scmp.lt.s32.totalorder %s6100_s5, %s6096_s29 }
 0x243   : > { %p6098_p7 = pnand %p6097_p6, %p6223_p4 }
 0x244   : > { %p6103_p12 = por %p6102_p11, %p6101_p10 }
 0x245   : > { %p6099_p9 = pneg %p6098_p7 }
 0x247   : > { %p6104_p13 = pnand %p6103_p12, %p6099_p9 }
 0x249   : > { %6107 = shalt.err (!%p6104_p13)
}
 0x24a   : > { %s6161_s8 = smov 64   ;;  %s6162_s9 = smov 4  }
 0x24b   : > { %5977 = dma.vmem_to_hbm [thread:$0]  (%p6223_p4), %s9011_s11, 2048, %s9009_s21, %s9017_s15, %s6161_s8, %s6161_s8, %s6162_s9  }
 0x24c PF: > { %p5983_p0 = scmp.ge.s32.totalorder %s6158_s17, 2  ;;  %s4824_s10 = sand.u32 1, %s6138_s12  }
 0x24d   : > { %s4825_s18 = scalar_lea.sflag [#allocation3], %s4824_s10 }
 0x24e   : > { %p5980_p1 = pnand %p5983_p0, %p6230_p8 }
 0x250   : > { %p5981_p2 = pneg %p5980_p1 }
 0x252   : > { %6133 = dma.done.wait (%p5981_p2), %s4825_s18, 2048  }
 0x253   : > { %6135 = vsyncadd (%p5981_p2), %s4825_s18, 4294965248  ;;  %s16_s17 = sadd.s32 1, %s6158_s17   ;;  %s9485_s12 = smov %s6142_s13 }
 0x254   : > { %p13_p3 = scmp.ge.s32.totalorder %s16_s17, 4   ;;  %s9486_s13 = smov %s6146_s14 }
 0x255   : > { %s9487_s14 = smov %s6236_s25  ;;  %s9488_s15 = smov %s6154_s16 }
 0x256   : > { %s9489_s16 = smov %s9491_s20  ;;  %15 = sbr.rel (!%p13_p3) target bundleno = 4 (0x4), region = 78 }
 0x25b   :  { %4830 = vsyncpa [#allocation3], 1 }
 0x25c   :  { %4832 = vsyncpa [#allocation3 + $0x1], 1 }

</bundles_post_ra>
